<compile_context>
chip_gen: v5e
topology: v5e:2x2
jax: 0.10.0
libtpu: 0.0.40
codegen_flags: <defaults>
</compile_context>

<pallas_src>
import functools

import jax
import jax.numpy as jnp
from jax.experimental import pallas as pl
from jax.experimental.pallas import tpu as pltpu

_INV_SQRT2 = 0.7071067811865476
_MAX_MODE_TILE = 2048          # absolute cap on the spectral lane tile


def _gelu_exact(x):
    # PyTorch nn.GELU() default (erf formulation).
    return 0.5 * x * (1.0 + jax.lax.erf(x * _INV_SQRT2))


# ---------------------------------------------------------------------------
# Per-generation hardware budgets
# ---------------------------------------------------------------------------
@functools.lru_cache(maxsize=None)
def _device_kind():
    try:
        return jax.devices()[0].device_kind.lower()
    except Exception:
        return ""


@functools.lru_cache(maxsize=None)
def _vmem_capacity_bytes():
    """Physical VMEM per TensorCore (64 MiB on v7x, 128 MiB on v5e/v6e)."""
    try:
        info = pltpu.get_tpu_info()
        cap = getattr(info, "vmem_capacity_bytes", None)
        if cap:
            return int(cap)
    except Exception:
        pass
    kind = _device_kind()
    if "v7" in kind or "7x" in kind:
        return 64 * 1024 * 1024
    return 128 * 1024 * 1024


@functools.lru_cache(maxsize=None)
def _num_tensorcores():
    kind = _device_kind()
    return 2 if ("v7" in kind or "7x" in kind) else 1


def _compiler_params(dimension_semantics):
    # Raise the scoped VMEM limit (default is only 16/32 MiB) with headroom.
    limit = min(int(_vmem_capacity_bytes() * 0.75), 96 * 1024 * 1024)
    return pltpu.CompilerParams(
        dimension_semantics=dimension_semantics, vmem_limit_bytes=limit)


# ---------------------------------------------------------------------------
# Pallas kernels (all lane-dense: spatial / mode axis is the last dim)
# ---------------------------------------------------------------------------
def _lift_kernel(x_ref, w1_ref, b1_ref, w2_ref, b2_ref, o_ref):
    # x: (1, Cin, TS)   w1: (H, Cin)   w2: (Cout, H)   b1: (H,1)   b2: (Cout,1)
    h = jnp.dot(w1_ref[...], x_ref[0], preferred_element_type=jnp.float32)
    h = _gelu_exact(h + b1_ref[...])
    y = jnp.dot(w2_ref[...], h, preferred_element_type=jnp.float32) + b2_ref[...]
    o_ref[0] = y.astype(o_ref.dtype)


def _pw_kernel(x_ref, w_ref, b_ref, o_ref, *, act):
    # x: (1, Cin, TS)   w: (Cout, Cin)   b: (Cout, 1)   o: (1, Cout, TS)
    y = jnp.dot(w_ref[...], x_ref[0], preferred_element_type=jnp.float32) + b_ref[...]
    if act:
        y = _gelu_exact(y)
    o_ref[0] = y.astype(o_ref.dtype)


def _pw_res_kernel(x_ref, w_ref, b_ref, r_ref, o_ref, *, act):
    y = jnp.dot(w_ref[...], x_ref[0], preferred_element_type=jnp.float32)
    y = y + b_ref[...] + r_ref[0]
    if act:
        y = _gelu_exact(y)
    o_ref[0] = y.astype(o_ref.dtype)


def _spectral_kernel(x_ref, w_ref, o_ref, *, c_in):
    # x: (2, 1, Cin, TM)   w: (2, Cin, Cout, TM)   o: (2, 1, Cout, TM)
    # Complex multiply, contract over Cin.  Batch is on the grid, so the
    # (Cout, TM) accumulator pair stays vreg-resident across the contraction.
    c_out, tm = o_ref.shape[2], o_ref.shape[3]
    xr = x_ref[0, 0]                          # (Cin, TM) -- small, vreg-resident
    xi = x_ref[1, 0]
    acc_r = jnp.zeros((c_out, tm), jnp.float32)
    acc_i = jnp.zeros((c_out, tm), jnp.float32)

    if c_in <= 32:
        # Fully unrolled lane-dense VPU FMAs for small channel counts.
        for i in range(c_in):
            xr_i = xr[i:i + 1, :]             # (1, TM) sublane broadcast
            xi_i = xi[i:i + 1, :]
            wr_i = w_ref[0, i]                # (Cout, TM)
            wi_i = w_ref[1, i]
            acc_r = acc_r + xr_i * wr_i - xi_i * wi_i
            acc_i = acc_i + xr_i * wi_i + xi_i * wr_i
    else:
        # Large Cin: bounded fori_loop keeps vreg pressure / IR size flat.
        def body(i, carry):
            a_r, a_i = carry
            xr_i = jax.lax.dynamic_slice_in_dim(xr, i, 1, axis=0)
            xi_i = jax.lax.dynamic_slice_in_dim(xi, i, 1, axis=0)
            wr_i = w_ref[0, i]
            wi_i = w_ref[1, i]
            a_r = a_r + xr_i * wr_i - xi_i * wi_i
            a_i = a_i + xr_i * wi_i + xi_i * wr_i
            return a_r, a_i
        acc_r, acc_i = jax.lax.fori_loop(0, c_in, body, (acc_r, acc_i), unroll=4)

    o_ref[0, 0] = acc_r.astype(o_ref.dtype)
    o_ref[1, 0] = acc_i.astype(o_ref.dtype)


# ---------------------------------------------------------------------------
# Tiling helpers (VMEM- and generation-aware)
# ---------------------------------------------------------------------------
def _spatial_tile(s, lane_bytes, batch):
    """Pick the lane tile for the flattened-spatial axis.

    lane_bytes = VMEM bytes needed per lane element of one grid step
    (streamed blocks double-buffered + in-kernel intermediates).
    Prefers full-extent or divisor tiles so no pad/slice HBM round trips.
    """
    cap_bytes = _vmem_capacity_bytes()
    budget = cap_bytes // 2                       # leave half of VMEM as headroom
    hard_cap = 16384 if cap_bytes <= 64 * 1024 * 1024 else 32768
    cap = max(128, min(hard_cap, (budget // max(lane_bytes, 1)) // 128 * 128))

    if s <= cap:
        ts = s                                     # full-extent block, no padding
        # Multi-TC chips: expose >=2 programs if we can do it without padding.
        if _num_tensorcores() >= 2 and batch < 2:
            half = ((s // 2) // 128) * 128
            if half >= 128 and s % half == 0:
                ts = half
        return ts, s

    # Prefer the largest multiple-of-128 tile <= cap that divides s exactly.
    start = min(cap, (s // 128) * 128)
    ts = 0
    for cand in range(start, 0, -128):
        if s % cand == 0:
            ts = cand
            break
    if ts == 0:                                    # no clean divisor: pad
        ts = cap
    s_pad = pl.cdiv(s, ts) * ts
    return ts, s_pad


def _padded_mode_count(modes):
    m1, m2, m3 = modes
    m_total = 4 * m1 * m2 * m3
    return m_total, pl.cdiv(m_total, 128) * 128


def _mode_tiling(modes, c_in, c_out, batch):
    """Lane tile for the 4-corner flattened-mode axis (divides m128 exactly)."""
    m_total, m128 = _padded_mode_count(modes)
    budget = _vmem_capacity_bytes() // 2
    # Streamed f32 blocks per lane (double-buffered): w (2*Cin*Cout) + x (2*Cin)
    # + out (2*Cout).
    per_lane = 16 * (c_in * c_out + c_in + c_out)
    tm_vmem = budget // max(per_lane, 1)
    # Keep the (Cout, TM) complex accumulator pair within ~32 vregs (vreg=4KiB).
    tm_vreg = (32 * 4096) // (8 * c_out)
    cap = max(128, min(tm_vmem, tm_vreg, _MAX_MODE_TILE))

    tm = 128
    for cand in range(128, m128 + 1, 128):
        if cand <= cap and m128 % cand == 0:
            tm = cand

    # Multi-TC chips only: make sure the grid exposes >=2 programs.
    if (_num_tensorcores() >= 2 and batch * (m128 // tm) < 2 and m128 >= 256):
        tm_split = 128
        for cand in range(128, m128 // 2 + 1, 128):
            if cand <= cap and m128 % cand == 0:
                tm_split = cand
        tm = tm_split

    return m_total, tm, m128


# ---------------------------------------------------------------------------
# Pallas-backed building blocks
# ---------------------------------------------------------------------------
def _lift_network(x, w1, b1, w2, b2):
    """Fused FC(Cin->H) + GELU + FC(H->Cout), channels-first, spatial-last."""
    B, c_in, X, Y, Z = x.shape
    half = w1.shape[0]
    c_out = w2.shape[0]
    s = X * Y * Z
    lane_bytes = 4 * (2 * (c_in + c_out) + half + c_out)
    ts, s_pad = _spatial_tile(s, lane_bytes, B)
    xf = x.reshape(B, c_in, s)                 # free reshape (trailing dims merge)
    if s_pad != s:
        xf = jnp.pad(xf, ((0, 0), (0, 0), (0, s_pad - s)))

    out = pl.pallas_call(
        _lift_kernel,
        out_shape=jax.ShapeDtypeStruct((B, c_out, s_pad), jnp.float32),
        grid=(B, s_pad // ts),
        in_specs=[
            pl.BlockSpec((1, c_in, ts), lambda bi, si: (bi, 0, si)),
            pl.BlockSpec(w1.shape, lambda bi, si: (0, 0)),
            pl.BlockSpec(b1.shape, lambda bi, si: (0, 0)),
            pl.BlockSpec(w2.shape, lambda bi, si: (0, 0)),
            pl.BlockSpec(b2.shape, lambda bi, si: (0, 0)),
        ],
        out_specs=pl.BlockSpec((1, c_out, ts), lambda bi, si: (bi, 0, si)),
        compiler_params=_compiler_params(("parallel", "parallel")),
    )(xf, w1, b1, w2, b2)

    if s_pad != s:
        out = out[:, :, :s]
    return out.reshape(B, c_out, X, Y, Z)


def _pointwise_conv(x, w, b, residual=None, act=False):
    """1x1x1 conv (+bias, +optional residual, +optional GELU), channels-first."""
    B, c_in, X, Y, Z = x.shape
    c_out = w.shape[0]
    s = X * Y * Z
    c_res = c_out if residual is not None else 0
    lane_bytes = 4 * (2 * (c_in + c_out + c_res) + c_out)
    ts, s_pad = _spatial_tile(s, lane_bytes, B)
    xf = x.reshape(B, c_in, s)
    if s_pad != s:
        xf = jnp.pad(xf, ((0, 0), (0, 0), (0, s_pad - s)))

    x_spec = pl.BlockSpec((1, c_in, ts), lambda bi, si: (bi, 0, si))
    w_spec = pl.BlockSpec(w.shape, lambda bi, si: (0, 0))
    b_spec = pl.BlockSpec(b.shape, lambda bi, si: (0, 0))
    o_spec = pl.BlockSpec((1, c_out, ts), lambda bi, si: (bi, 0, si))
    out_shape = jax.ShapeDtypeStruct((B, c_out, s_pad), jnp.float32)
    cparams = _compiler_params(("parallel", "parallel"))
    grid = (B, s_pad // ts)

    if residual is None:
        out = pl.pallas_call(
            functools.partial(_pw_kernel, act=act),
            out_shape=out_shape, grid=grid,
            in_specs=[x_spec, w_spec, b_spec], out_specs=o_spec,
            compiler_params=cparams,
        )(xf, w, b)
    else:
        rf = residual.reshape(B, c_out, s)     # channels-first already: free
        if s_pad != s:
            rf = jnp.pad(rf, ((0, 0), (0, 0), (0, s_pad - s)))
        r_spec = pl.BlockSpec((1, c_out, ts), lambda bi, si: (bi, 0, si))
        out = pl.pallas_call(
            functools.partial(_pw_res_kernel, act=act),
            out_shape=out_shape, grid=grid,
            in_specs=[x_spec, w_spec, b_spec, r_spec], out_specs=o_spec,
            compiler_params=cparams,
        )(xf, w, b, rf)

    if s_pad != s:
        out = out[:, :, :s]
    return out.reshape(B, c_out, X, Y, Z)


def _spectral_conv3d(x, w_packed, modes):
    """SpectralConv3d forward: rfftn -> mode-last complex mixing (Pallas) -> irfftn."""
    B, c_in, X, Y, Z = x.shape
    m1, m2, m3 = modes
    mc = m1 * m2 * m3
    c_out = w_packed.shape[2]
    zf = Z // 2 + 1
    # The 4 spectral corners must not overlap on the (padded) grid.
    assert 2 * m1 <= X and 2 * m2 <= Y and m3 <= zf, (
        f"num_fno_modes {modes} too large for padded grid ({X},{Y},{Z})")
    m_total, tm, m_pad = _mode_tiling(modes, c_in, c_out, B)

    # TODO(synk): FFT has no Pallas primitive on TPU; rfftn/irfftn stay in plain JAX.
    x_ft = jnp.fft.rfftn(x, axes=(-3, -2, -1))   # (B, Cin, X, Y, Z//2+1) complex64

    corners = [
        x_ft[:, :, :m1, :m2, :m3],
        x_ft[:, :, X - m1:, :m2, :m3],
        x_ft[:, :, :m1, Y - m2:, :m3],
        x_ft[:, :, X - m1:, Y - m2:, :m3],
    ]
    xm = jnp.concatenate([c.reshape(B, c_in, mc) for c in corners], axis=-1)
    xp = jnp.stack([jnp.real(xm), jnp.imag(xm)], axis=0)      # (2, B, Cin, m_total)
    if m_pad != m_total:
        xp = jnp.pad(xp, ((0, 0), (0, 0), (0, 0), (0, m_pad - m_total)))

    out = pl.pallas_call(
        functools.partial(_spectral_kernel, c_in=c_in),
        out_shape=jax.ShapeDtypeStruct((2, B, c_out, m_pad), jnp.float32),
        grid=(m_pad // tm, B),          # mode tiles outer -> weight block reused over B
        in_specs=[
            pl.BlockSpec((2, 1, c_in, tm), lambda mi, bi: (0, bi, 0, mi)),
            pl.BlockSpec((2, c_in, c_out, tm), lambda mi, bi: (0, 0, 0, mi)),
        ],
        out_specs=pl.BlockSpec((2, 1, c_out, tm), lambda mi, bi: (0, bi, 0, mi)),
        compiler_params=_compiler_params(("parallel", "parallel")),
    )(xp, w_packed)

    o = out[..., :m_total]
    oc = o[0] + 1j * o[1]                                     # (B, Cout, m_total)

    out_ft = jnp.zeros((B, c_out, X, Y, zf), dtype=x_ft.dtype)

    def corner(i):
        return oc[:, :, i * mc:(i + 1) * mc].reshape(B, c_out, m1, m2, m3)

    out_ft = out_ft.at[:, :, :m1, :m2, :m3].set(corner(0))
    out_ft = out_ft.at[:, :, X - m1:, :m2, :m3].set(corner(1))
    out_ft = out_ft.at[:, :, :m1, Y - m2:, :m3].set(corner(2))
    out_ft = out_ft.at[:, :, X - m1:, Y - m2:, :m3].set(corner(3))
    return jnp.fft.irfftn(out_ft, s=(X, Y, Z), axes=(-3, -2, -1)).astype(x.dtype)


def prepare_spectral_weights(spw_raw, modes):
    """Static kernel-layout prep (hoisted out of the forward pass, run once)."""
    m1, m2, m3 = modes
    mc = m1 * m2 * m3
    m_total, m_pad = _padded_mode_count(modes)
    packed = []
    for layer in spw_raw:
        c_in, c_out = layer[0][0].shape[:2]
        wr = jnp.concatenate([w[0].reshape(c_in, c_out, mc) for w in layer], axis=-1)
        wi = jnp.concatenate([w[1].reshape(c_in, c_out, mc) for w in layer], axis=-1)
        w = jnp.stack([wr, wi], axis=0)                       # (2, Cin, Cout, m_total)
        if m_pad != m_total:
            w = jnp.pad(w, ((0, 0), (0, 0), (0, 0), (0, m_pad - m_total)))
        packed.append(w)
    return packed


# ---------------------------------------------------------------------------
# FNO3DEncoder forward
# ---------------------------------------------------------------------------
def _coord_features(B, X, Y, Z):
    gx = jnp.linspace(0.0, 1.0, X, dtype=jnp.float32)
    gy = jnp.linspace(0.0, 1.0, Y, dtype=jnp.float32)
    gz = jnp.linspace(0.0, 1.0, Z, dtype=jnp.float32)
    GX, GY, GZ = jnp.meshgrid(gx, gy, gz, indexing="ij")
    return jnp.broadcast_to(jnp.stack([GX, GY, GZ], axis=0)[None], (B, 3, X, Y, Z))


def fno3d_encoder_forward(x, params, *, pad, modes, num_layers):
    B, _, X, Y, Z = x.shape
    x = jnp.concatenate([x, _coord_features(B, X, Y, Z)], axis=1)

    # fused lift network: FC(4 -> width/2) + GELU + FC(width/2 -> width)
    x = _lift_network(x, params["lift_w1"], params["lift_b1"],
                      params["lift_w2"], params["lift_b2"])

    # domain padding: F.pad(x, (0, p0, 0, p1, 0, p2), mode="constant")
    p0, p1, p2 = pad
    x = jnp.pad(x, ((0, 0), (0, 0), (0, p2), (0, p1), (0, p0)))

    for k in range(num_layers):
        sp = _spectral_conv3d(x, params["spw_packed"][k], modes)
        x = _pointwise_conv(x, params["conv_w"][k], params["conv_b"][k],
                            residual=sp, act=(k < num_layers - 1))

    # unpad: x[..., :-p2, :-p1, :-p0]
    Xp, Yp, Zp = x.shape[-3:]
    xe = Xp - p2 if p2 > 0 else Xp
    ye = Yp - p1 if p1 > 0 else Yp
    ze = Zp - p0 if p0 > 0 else Zp
    return x[:, :, :xe, :ye, :ze]


# ---------------------------------------------------------------------------
# Pure-JAX reference (numerical check)
# ---------------------------------------------------------------------------
def _ref_pointwise(x, w, b, residual=None, act=False):
    y = jnp.einsum("bcxyz,dc->bdxyz", x, w) + b.reshape(1, -1, 1, 1, 1)
    if residual is not None:
        y = y + residual
    if act:
        y = _gelu_exact(y)
    return y


def _ref_spectral(x, layer_weights, modes):
    B, c_in, X, Y, Z = x.shape
    m1, m2, m3 = modes
    c_out = layer_weights[0][0].shape[1]
    x_ft = jnp.fft.rfftn(x, axes=(-3, -2, -1))
    out_ft = jnp.zeros((B, c_out, X, Y, Z // 2 + 1), dtype=x_ft.dtype)

    def mul(blk, w):
        return jnp.einsum("bixyz,ioxyz->boxyz", blk, w[0] + 1j * w[1])

    out_ft = out_ft.at[:, :, :m1, :m2, :m3].set(mul(x_ft[:, :, :m1, :m2, :m3], layer_weights[0]))
    out_ft = out_ft.at[:, :, X - m1:, :m2, :m3].set(mul(x_ft[:, :, X - m1:, :m2, :m3], layer_weights[1]))
    out_ft = out_ft.at[:, :, :m1, Y - m2:, :m3].set(mul(x_ft[:, :, :m1, Y - m2:, :m3], layer_weights[2]))
    out_ft = out_ft.at[:, :, X - m1:, Y - m2:, :m3].set(mul(x_ft[:, :, X - m1:, Y - m2:, :m3], layer_weights[3]))
    return jnp.fft.irfftn(out_ft, s=(X, Y, Z), axes=(-3, -2, -1)).astype(x.dtype)


def _reference_forward(x, params, *, pad, modes, num_layers):
    B, _, X, Y, Z = x.shape
    x = jnp.concatenate([x, _coord_features(B, X, Y, Z)], axis=1)
    x = _ref_pointwise(x, params["lift_w1"], params["lift_b1"], act=True)
    x = _ref_pointwise(x, params["lift_w2"], params["lift_b2"], act=False)
    p0, p1, p2 = pad
    x = jnp.pad(x, ((0, 0), (0, 0), (0, p2), (0, p1), (0, p0)))
    for k in range(num_layers):
        sp = _ref_spectral(x, params["spw_raw"][k], modes)
        x = _ref_pointwise(x, params["conv_w"][k], params["conv_b"][k],
                           residual=sp, act=(k < num_layers - 1))
    Xp, Yp, Zp = x.shape[-3:]
    xe = Xp - p2 if p2 > 0 else Xp
    ye = Yp - p1 if p1 > 0 else Yp
    ze = Zp - p0 if p0 > 0 else Zp
    return x[:, :, :xe, :ye, :ze]


# ---------------------------------------------------------------------------
# Deterministic synthetic parameters
# ---------------------------------------------------------------------------
def init_params(key, in_channels, fno_width, modes, num_layers):
    c_in = in_channels + 3          # coord_features=True
    half = fno_width // 2
    m1, m2, m3 = modes
    keys = iter(jax.random.split(key, 4 + 10 * num_layers))

    def uniform(k, shape, bound):
        return jax.random.uniform(k, shape, jnp.float32, -bound, bound)

    params = {
        # Conv3dFCLayer: xavier-uniform weight, zero bias; stored as (Cout, Cin)
        "lift_w1": uniform(next(keys), (half, c_in), (6.0 / (c_in + half)) ** 0.5),
        "lift_b1": jnp.zeros((half, 1), jnp.float32),
        "lift_w2": uniform(next(keys), (fno_width, half), (6.0 / (half + fno_width)) ** 0.5),
        "lift_b2": jnp.zeros((fno_width, 1), jnp.float32),
        "conv_w": [],
        "conv_b": [],
        "spw_raw": [],
    }
    sc = 1.0 / (fno_width * fno_width)   # SpectralConv3d scale = 1/(Cin*Cout)
    for _ in range(num_layers):
        bound = 1.0 / (fno_width ** 0.5)  # nn.Conv3d(k=1) kaiming-style bound
        params["conv_w"].append(uniform(next(keys), (fno_width, fno_width), bound))
        params["conv_b"].append(uniform(next(keys), (fno_width, 1), bound))
        layer_w = []
        for _c in range(4):
            wr = sc * jax.random.uniform(next(keys), (fno_width, fno_width, m1, m2, m3), jnp.float32)
            wi = sc * jax.random.uniform(next(keys), (fno_width, fno_width, m1, m2, m3), jnp.float32)
            layer_w.append((wr, wi))
        params["spw_raw"].append(layer_w)
    # Hoist the static spectral-weight re-layout out of the forward pass.
    params["spw_packed"] = prepare_spectral_weights(params["spw_raw"], modes)
    return params


# ---------------------------------------------------------------------------
if __name__ == "__main__":
    B, C_IN = 2, 1
    X, Y, Z = 8, 8, 8
    FNO_WIDTH = 16
    MODES = (4, 4, 4)
    PAD = (4, 4, 4)          # padding for (z, y, x) dims, as in F.pad order
    NUM_LAYERS = 2

    key = jax.random.PRNGKey(0)
    kx, kp = jax.random.split(key)
    x = jax.random.normal(kx, (B, C_IN, X, Y, Z), jnp.float32)
    params = init_params(kp, C_IN, FNO_WIDTH, MODES, NUM_LAYERS)

    fwd = jax.jit(
        functools.partial(
            fno3d_encoder_forward, pad=PAD, modes=MODES, num_layers=NUM_LAYERS
        )
    )
    out = jax.block_until_ready(fwd(x, params))

    assert out.shape == (B, FNO_WIDTH, X, Y, Z), out.shape
    assert bool(jnp.all(jnp.isfinite(out)))

    ref = _reference_forward(x, params, pad=PAD, modes=MODES, num_layers=NUM_LAYERS)
    max_err = float(jnp.max(jnp.abs(out - ref)))
    assert max_err < 2e-3, f"mismatch vs pure-JAX reference: {max_err}"

    print("KERNEL_OK")
</pallas_src>

<mosaic_0001>
module attributes {stable_mosaic.version = 11 : i64} {
  func.func @_lift_kernel(%arg0: i32, %arg1: i32, %arg2: memref<1x4x512xf32, #tpu.memory_space<vmem>>, %arg3: memref<8x4xf32, #tpu.memory_space<vmem>>, %arg4: memref<8x1xf32, #tpu.memory_space<vmem>>, %arg5: memref<16x8xf32, #tpu.memory_space<vmem>>, %arg6: memref<16x1xf32, #tpu.memory_space<vmem>>, %arg7: memref<1x16x512xf32, #tpu.memory_space<vmem>>) attributes {dimension_semantics = [#tpu.dimension_semantics<parallel>, #tpu.dimension_semantics<parallel>], iteration_bounds = array<i64: 2, 1>, scalar_prefetch = 0 : i64, scratch_operands = 0 : i64, tpu.core_type = #tpu.core_type<tc>, window_params = [{transform_indices = @transform_0, window_bounds = array<i64: 1, 4, 512>}, {pipeline_mode = #tpu.pipeline_mode<synchronous>, transform_indices = @transform_1, window_bounds = array<i64: 8, 4>}, {pipeline_mode = #tpu.pipeline_mode<synchronous>, transform_indices = @transform_2, window_bounds = array<i64: 8, 1>}, {pipeline_mode = #tpu.pipeline_mode<synchronous>, transform_indices = @transform_3, window_bounds = array<i64: 16, 8>}, {pipeline_mode = #tpu.pipeline_mode<synchronous>, transform_indices = @transform_4, window_bounds = array<i64: 16, 1>}, {transform_indices = @transform_5, window_bounds = array<i64: 1, 16, 512>}]} {
    %c0 = arith.constant 0 : index
    %c0_0 = arith.constant 0 : index
    %0 = vector.load %arg3[%c0, %c0_0] : memref<8x4xf32, #tpu.memory_space<vmem>>, vector<8x4xf32>
    %c0_1 = arith.constant 0 : index
    %c0_2 = arith.constant 0 : index
    %c0_3 = arith.constant 0 : index
    %1 = vector.load %arg2[%c0_1, %c0_2, %c0_3] : memref<1x4x512xf32, #tpu.memory_space<vmem>>, vector<1x4x512xf32>
    %2 = vector.shape_cast %1 : vector<1x4x512xf32> to vector<4x512xf32>
    %cst = arith.constant dense<0.000000e+00> : vector<8x512xf32>
    %3 = tpu.matmul %0, %2, %cst {dimension_numbers = #tpu.dot_dimension_numbers<[1], [0], [0], [1], [0, 0, 1, 1], [], []>} : vector<8x4xf32>, vector<4x512xf32>, vector<8x512xf32> -> vector<8x512xf32>
    %c0_4 = arith.constant 0 : index
    %c0_5 = arith.constant 0 : index
    %4 = vector.load %arg4[%c0_4, %c0_5] : memref<8x1xf32, #tpu.memory_space<vmem>>, vector<8x1xf32>
    %5 = vector.broadcast %4 : vector<8x1xf32> to vector<8x512xf32>
    %6 = arith.addf %3, %5 : vector<8x512xf32>
    %cst_6 = arith.constant 5.000000e-01 : f32
    %7 = vector.broadcast %cst_6 : f32 to vector<8x512xf32>
    %8 = arith.mulf %7, %6 : vector<8x512xf32>
    %cst_7 = arith.constant 0.707106769 : f32
    %9 = vector.broadcast %cst_7 : f32 to vector<8x512xf32>
    %10 = arith.mulf %6, %9 : vector<8x512xf32>
    %11 = math.erf %10 : vector<8x512xf32>
    %cst_8 = arith.constant 1.000000e+00 : f32
    %12 = vector.broadcast %cst_8 : f32 to vector<8x512xf32>
    %13 = arith.addf %12, %11 : vector<8x512xf32>
    %14 = arith.mulf %8, %13 : vector<8x512xf32>
    %c0_9 = arith.constant 0 : index
    %c0_10 = arith.constant 0 : index
    %15 = vector.load %arg5[%c0_9, %c0_10] : memref<16x8xf32, #tpu.memory_space<vmem>>, vector<16x8xf32>
    %cst_11 = arith.constant dense<0.000000e+00> : vector<16x512xf32>
    %16 = tpu.matmul %15, %14, %cst_11 {dimension_numbers = #tpu.dot_dimension_numbers<[1], [0], [0], [1], [0, 0, 1, 1], [], []>} : vector<16x8xf32>, vector<8x512xf32>, vector<16x512xf32> -> vector<16x512xf32>
    %c0_12 = arith.constant 0 : index
    %c0_13 = arith.constant 0 : index
    %17 = vector.load %arg6[%c0_12, %c0_13] : memref<16x1xf32, #tpu.memory_space<vmem>>, vector<16x1xf32>
    %18 = vector.broadcast %17 : vector<16x1xf32> to vector<16x512xf32>
    %19 = arith.addf %16, %18 : vector<16x512xf32>
    %c0_14 = arith.constant 0 : index
    %c0_15 = arith.constant 0 : index
    %c0_16 = arith.constant 0 : index
    %20 = vector.load %arg7[%c0_14, %c0_15, %c0_16] : memref<1x16x512xf32, #tpu.memory_space<vmem>>, vector<1x16x512xf32>
    %21 = vector.shape_cast %20 : vector<1x16x512xf32> to vector<16x512xf32>
    %22 = vector.shape_cast %19 : vector<16x512xf32> to vector<1x16x512xf32>
    tpu.vector_store %arg7[%c0_14, %c0_15, %c0_16], %22 {strides = array<i32>} : memref<1x16x512xf32, #tpu.memory_space<vmem>>, vector<1x16x512xf32>,
    return
  }
  func.func @transform_0(%arg0: i32, %arg1: i32) -> (i32, i32, i32) {
    %c0_i32 = arith.constant 0 : i32
    %c0_i32_0 = arith.constant 0 : i32
    return %arg0, %c0_i32, %arg1 : i32, i32, i32
  }
  func.func @transform_1(%arg0: i32, %arg1: i32) -> (i32, i32) {
    %c0_i32 = arith.constant 0 : i32
    %c0_i32_0 = arith.constant 0 : i32
    %c0_i32_1 = arith.constant 0 : i32
    return %c0_i32, %c0_i32_0 : i32, i32
  }
  func.func @transform_2(%arg0: i32, %arg1: i32) -> (i32, i32) {
    %c0_i32 = arith.constant 0 : i32
    %c0_i32_0 = arith.constant 0 : i32
    %c0_i32_1 = arith.constant 0 : i32
    return %c0_i32, %c0_i32_0 : i32, i32
  }
  func.func @transform_3(%arg0: i32, %arg1: i32) -> (i32, i32) {
    %c0_i32 = arith.constant 0 : i32
    %c0_i32_0 = arith.constant 0 : i32
    %c0_i32_1 = arith.constant 0 : i32
    return %c0_i32, %c0_i32_0 : i32, i32
  }
  func.func @transform_4(%arg0: i32, %arg1: i32) -> (i32, i32) {
    %c0_i32 = arith.constant 0 : i32
    %c0_i32_0 = arith.constant 0 : i32
    %c0_i32_1 = arith.constant 0 : i32
    return %c0_i32, %c0_i32_0 : i32, i32
  }
  func.func @transform_5(%arg0: i32, %arg1: i32) -> (i32, i32, i32) {
    %c0_i32 = arith.constant 0 : i32
    %c0_i32_0 = arith.constant 0 : i32
    return %arg0, %c0_i32, %arg1 : i32, i32, i32
  }
}

module attributes {stable_mosaic.version = 11 : i64} {
  func.func @_spectral_kernel(%arg0: i32, %arg1: i32, %arg2: memref<2x1x16x256xf32, #tpu.memory_space<vmem>>, %arg3: memref<2x16x16x256xf32, #tpu.memory_space<vmem>>, %arg4: memref<2x1x16x256xf32, #tpu.memory_space<vmem>>) attributes {dimension_semantics = [#tpu.dimension_semantics<parallel>, #tpu.dimension_semantics<parallel>], iteration_bounds = array<i64: 1, 2>, scalar_prefetch = 0 : i64, scratch_operands = 0 : i64, tpu.core_type = #tpu.core_type<tc>, window_params = [{transform_indices = @transform_0, window_bounds = array<i64: 2, 1, 16, 256>}, {transform_indices = @transform_1, window_bounds = array<i64: 2, 16, 16, 256>}, {transform_indices = @transform_2, window_bounds = array<i64: 2, 1, 16, 256>}]} {
    %c0 = arith.constant 0 : index
    %c0_0 = arith.constant 0 : index
    %c0_1 = arith.constant 0 : index
    %c0_2 = arith.constant 0 : index
    %0 = vector.load %arg2[%c0, %c0_0, %c0_1, %c0_2] : memref<2x1x16x256xf32, #tpu.memory_space<vmem>>, vector<1x1x16x256xf32>
    %1 = vector.shape_cast %0 : vector<1x1x16x256xf32> to vector<16x256xf32>
    %c1 = arith.constant 1 : index
    %c0_3 = arith.constant 0 : index
    %c0_4 = arith.constant 0 : index
    %c0_5 = arith.constant 0 : index
    %2 = vector.load %arg2[%c1, %c0_3, %c0_4, %c0_5] : memref<2x1x16x256xf32, #tpu.memory_space<vmem>>, vector<1x1x16x256xf32>
    %3 = vector.shape_cast %2 : vector<1x1x16x256xf32> to vector<16x256xf32>
    %cst = arith.constant 0.000000e+00 : f32
    %4 = vector.broadcast %cst : f32 to vector<16x256xf32>
    %cst_6 = arith.constant 0.000000e+00 : f32
    %5 = vector.broadcast %cst_6 : f32 to vector<16x256xf32>
    %6 = vector.extract_strided_slice %1 {offsets = [0, 0], sizes = [1, 256], strides = [1, 1]} : vector<16x256xf32> to vector<1x256xf32>
    %7 = vector.extract_strided_slice %3 {offsets = [0, 0], sizes = [1, 256], strides = [1, 1]} : vector<16x256xf32> to vector<1x256xf32>
    %c0_7 = arith.constant 0 : index
    %c0_8 = arith.constant 0 : index
    %c0_9 = arith.constant 0 : index
    %c0_10 = arith.constant 0 : index
    %8 = vector.load %arg3[%c0_7, %c0_8, %c0_9, %c0_10] : memref<2x16x16x256xf32, #tpu.memory_space<vmem>>, vector<1x1x16x256xf32>
    %9 = vector.shape_cast %8 : vector<1x1x16x256xf32> to vector<16x256xf32>
    %c1_11 = arith.constant 1 : index
    %c0_12 = arith.constant 0 : index
    %c0_13 = arith.constant 0 : index
    %c0_14 = arith.constant 0 : index
    %10 = vector.load %arg3[%c1_11, %c0_12, %c0_13, %c0_14] : memref<2x16x16x256xf32, #tpu.memory_space<vmem>>, vector<1x1x16x256xf32>
    %11 = vector.shape_cast %10 : vector<1x1x16x256xf32> to vector<16x256xf32>
    %12 = vector.broadcast %6 : vector<1x256xf32> to vector<16x256xf32>
    %13 = arith.mulf %12, %9 : vector<16x256xf32>
    %14 = arith.addf %4, %13 : vector<16x256xf32>
    %15 = vector.broadcast %7 : vector<1x256xf32> to vector<16x256xf32>
    %16 = arith.mulf %15, %11 : vector<16x256xf32>
    %17 = arith.subf %14, %16 : vector<16x256xf32>
    %18 = vector.broadcast %6 : vector<1x256xf32> to vector<16x256xf32>
    %19 = arith.mulf %18, %11 : vector<16x256xf32>
    %20 = arith.addf %5, %19 : vector<16x256xf32>
    %21 = vector.broadcast %7 : vector<1x256xf32> to vector<16x256xf32>
    %22 = arith.mulf %21, %9 : vector<16x256xf32>
    %23 = arith.addf %20, %22 : vector<16x256xf32>
    %24 = vector.extract_strided_slice %1 {offsets = [1, 0], sizes = [1, 256], strides = [1, 1]} : vector<16x256xf32> to vector<1x256xf32>
    %25 = vector.extract_strided_slice %3 {offsets = [1, 0], sizes = [1, 256], strides = [1, 1]} : vector<16x256xf32> to vector<1x256xf32>
    %c0_15 = arith.constant 0 : index
    %c1_16 = arith.constant 1 : index
    %c0_17 = arith.constant 0 : index
    %c0_18 = arith.constant 0 : index
    %26 = vector.load %arg3[%c0_15, %c1_16, %c0_17, %c0_18] : memref<2x16x16x256xf32, #tpu.memory_space<vmem>>, vector<1x1x16x256xf32>
    %27 = vector.shape_cast %26 : vector<1x1x16x256xf32> to vector<16x256xf32>
    %c1_19 = arith.constant 1 : index
    %c1_20 = arith.constant 1 : index
    %c0_21 = arith.constant 0 : index
    %c0_22 = arith.constant 0 : index
    %28 = vector.load %arg3[%c1_19, %c1_20, %c0_21, %c0_22] : memref<2x16x16x256xf32, #tpu.memory_space<vmem>>, vector<1x1x16x256xf32>
    %29 = vector.shape_cast %28 : vector<1x1x16x256xf32> to vector<16x256xf32>
    %30 = vector.broadcast %24 : vector<1x256xf32> to vector<16x256xf32>
    %31 = arith.mulf %30, %27 : vector<16x256xf32>
    %32 = arith.addf %17, %31 : vector<16x256xf32>
    %33 = vector.broadcast %25 : vector<1x256xf32> to vector<16x256xf32>
    %34 = arith.mulf %33, %29 : vector<16x256xf32>
    %35 = arith.subf %32, %34 : vector<16x256xf32>
    %36 = vector.broadcast %24 : vector<1x256xf32> to vector<16x256xf32>
    %37 = arith.mulf %36, %29 : vector<16x256xf32>
    %38 = arith.addf %23, %37 : vector<16x256xf32>
    %39 = vector.broadcast %25 : vector<1x256xf32> to vector<16x256xf32>
    %40 = arith.mulf %39, %27 : vector<16x256xf32>
    %41 = arith.addf %38, %40 : vector<16x256xf32>
    %42 = vector.extract_strided_slice %1 {offsets = [2, 0], sizes = [1, 256], strides = [1, 1]} : vector<16x256xf32> to vector<1x256xf32>
    %43 = vector.extract_strided_slice %3 {offsets = [2, 0], sizes = [1, 256], strides = [1, 1]} : vector<16x256xf32> to vector<1x256xf32>
    %c0_23 = arith.constant 0 : index
    %c2 = arith.constant 2 : index
    %c0_24 = arith.constant 0 : index
    %c0_25 = arith.constant 0 : index
    %44 = vector.load %arg3[%c0_23, %c2, %c0_24, %c0_25] : memref<2x16x16x256xf32, #tpu.memory_space<vmem>>, vector<1x1x16x256xf32>
    %45 = vector.shape_cast %44 : vector<1x1x16x256xf32> to vector<16x256xf32>
    %c1_26 = arith.constant 1 : index
    %c2_27 = arith.constant 2 : index
    %c0_28 = arith.constant 0 : index
    %c0_29 = arith.constant 0 : index
    %46 = vector.load %arg3[%c1_26, %c2_27, %c0_28, %c0_29] : memref<2x16x16x256xf32, #tpu.memory_space<vmem>>, vector<1x1x16x256xf32>
    %47 = vector.shape_cast %46 : vector<1x1x16x256xf32> to vector<16x256xf32>
    %48 = vector.broadcast %42 : vector<1x256xf32> to vector<16x256xf32>
    %49 = arith.mulf %48, %45 : vector<16x256xf32>
    %50 = arith.addf %35, %49 : vector<16x256xf32>
    %51 = vector.broadcast %43 : vector<1x256xf32> to vector<16x256xf32>
    %52 = arith.mulf %51, %47 : vector<16x256xf32>
    %53 = arith.subf %50, %52 : vector<16x256xf32>
    %54 = vector.broadcast %42 : vector<1x256xf32> to vector<16x256xf32>
    %55 = arith.mulf %54, %47 : vector<16x256xf32>
    %56 = arith.addf %41, %55 : vector<16x256xf32>
    %57 = vector.broadcast %43 : vector<1x256xf32> to vector<16x256xf32>
    %58 = arith.mulf %57, %45 : vector<16x256xf32>
    %59 = arith.addf %56, %58 : vector<16x256xf32>
    %60 = vector.extract_strided_slice %1 {offsets = [3, 0], sizes = [1, 256], strides = [1, 1]} : vector<16x256xf32> to vector<1x256xf32>
    %61 = vector.extract_strided_slice %3 {offsets = [3, 0], sizes = [1, 256], strides = [1, 1]} : vector<16x256xf32> to vector<1x256xf32>
    %c0_30 = arith.constant 0 : index
    %c3 = arith.constant 3 : index
    %c0_31 = arith.constant 0 : index
    %c0_32 = arith.constant 0 : index
    %62 = vector.load %arg3[%c0_30, %c3, %c0_31, %c0_32] : memref<2x16x16x256xf32, #tpu.memory_space<vmem>>, vector<1x1x16x256xf32>
    %63 = vector.shape_cast %62 : vector<1x1x16x256xf32> to vector<16x256xf32>
    %c1_33 = arith.constant 1 : index
    %c3_34 = arith.constant 3 : index
    %c0_35 = arith.constant 0 : index
    %c0_36 = arith.constant 0 : index
    %64 = vector.load %arg3[%c1_33, %c3_34, %c0_35, %c0_36] : memref<2x16x16x256xf32, #tpu.memory_space<vmem>>, vector<1x1x16x256xf32>
    %65 = vector.shape_cast %64 : vector<1x1x16x256xf32> to vector<16x256xf32>
    %66 = vector.broadcast %60 : vector<1x256xf32> to vector<16x256xf32>
    %67 = arith.mulf %66, %63 : vector<16x256xf32>
    %68 = arith.addf %53, %67 : vector<16x256xf32>
    %69 = vector.broadcast %61 : vector<1x256xf32> to vector<16x256xf32>
    %70 = arith.mulf %69, %65 : vector<16x256xf32>
    %71 = arith.subf %68, %70 : vector<16x256xf32>
    %72 = vector.broadcast %60 : vector<1x256xf32> to vector<16x256xf32>
    %73 = arith.mulf %72, %65 : vector<16x256xf32>
    %74 = arith.addf %59, %73 : vector<16x256xf32>
    %75 = vector.broadcast %61 : vector<1x256xf32> to vector<16x256xf32>
    %76 = arith.mulf %75, %63 : vector<16x256xf32>
    %77 = arith.addf %74, %76 : vector<16x256xf32>
    %78 = vector.extract_strided_slice %1 {offsets = [4, 0], sizes = [1, 256], strides = [1, 1]} : vector<16x256xf32> to vector<1x256xf32>
    %79 = vector.extract_strided_slice %3 {offsets = [4, 0], sizes = [1, 256], strides = [1, 1]} : vector<16x256xf32> to vector<1x256xf32>
    %c0_37 = arith.constant 0 : index
    %c4 = arith.constant 4 : index
    %c0_38 = arith.constant 0 : index
    %c0_39 = arith.constant 0 : index
    %80 = vector.load %arg3[%c0_37, %c4, %c0_38, %c0_39] : memref<2x16x16x256xf32, #tpu.memory_space<vmem>>, vector<1x1x16x256xf32>
    %81 = vector.shape_cast %80 : vector<1x1x16x256xf32> to vector<16x256xf32>
    %c1_40 = arith.constant 1 : index
    %c4_41 = arith.constant 4 : index
    %c0_42 = arith.constant 0 : index
    %c0_43 = arith.constant 0 : index
    %82 = vector.load %arg3[%c1_40, %c4_41, %c0_42, %c0_43] : memref<2x16x16x256xf32, #tpu.memory_space<vmem>>, vector<1x1x16x256xf32>
    %83 = vector.shape_cast %82 : vector<1x1x16x256xf32> to vector<16x256xf32>
    %84 = vector.broadcast %78 : vector<1x256xf32> to vector<16x256xf32>
    %85 = arith.mulf %84, %81 : vector<16x256xf32>
    %86 = arith.addf %71, %85 : vector<16x256xf32>
    %87 = vector.broadcast %79 : vector<1x256xf32> to vector<16x256xf32>
    %88 = arith.mulf %87, %83 : vector<16x256xf32>
    %89 = arith.subf %86, %88 : vector<16x256xf32>
    %90 = vector.broadcast %78 : vector<1x256xf32> to vector<16x256xf32>
    %91 = arith.mulf %90, %83 : vector<16x256xf32>
    %92 = arith.addf %77, %91 : vector<16x256xf32>
    %93 = vector.broadcast %79 : vector<1x256xf32> to vector<16x256xf32>
    %94 = arith.mulf %93, %81 : vector<16x256xf32>
    %95 = arith.addf %92, %94 : vector<16x256xf32>
    %96 = vector.extract_strided_slice %1 {offsets = [5, 0], sizes = [1, 256], strides = [1, 1]} : vector<16x256xf32> to vector<1x256xf32>
    %97 = vector.extract_strided_slice %3 {offsets = [5, 0], sizes = [1, 256], strides = [1, 1]} : vector<16x256xf32> to vector<1x256xf32>
    %c0_44 = arith.constant 0 : index
    %c5 = arith.constant 5 : index
    %c0_45 = arith.constant 0 : index
    %c0_46 = arith.constant 0 : index
    %98 = vector.load %arg3[%c0_44, %c5, %c0_45, %c0_46] : memref<2x16x16x256xf32, #tpu.memory_space<vmem>>, vector<1x1x16x256xf32>
    %99 = vector.shape_cast %98 : vector<1x1x16x256xf32> to vector<16x256xf32>
    %c1_47 = arith.constant 1 : index
    %c5_48 = arith.constant 5 : index
    %c0_49 = arith.constant 0 : index
    %c0_50 = arith.constant 0 : index
    %100 = vector.load %arg3[%c1_47, %c5_48, %c0_49, %c0_50] : memref<2x16x16x256xf32, #tpu.memory_space<vmem>>, vector<1x1x16x256xf32>
    %101 = vector.shape_cast %100 : vector<1x1x16x256xf32> to vector<16x256xf32>
    %102 = vector.broadcast %96 : vector<1x256xf32> to vector<16x256xf32>
    %103 = arith.mulf %102, %99 : vector<16x256xf32>
    %104 = arith.addf %89, %103 : vector<16x256xf32>
    %105 = vector.broadcast %97 : vector<1x256xf32> to vector<16x256xf32>
    %106 = arith.mulf %105, %101 : vector<16x256xf32>
    %107 = arith.subf %104, %106 : vector<16x256xf32>
    %108 = vector.broadcast %96 : vector<1x256xf32> to vector<16x256xf32>
    %109 = arith.mulf %108, %101 : vector<16x256xf32>
    %110 = arith.addf %95, %109 : vector<16x256xf32>
    %111 = vector.broadcast %97 : vector<1x256xf32> to vector<16x256xf32>
    %112 = arith.mulf %111, %99 : vector<16x256xf32>
    %113 = arith.addf %110, %112 : vector<16x256xf32>
    %114 = vector.extract_strided_slice %1 {offsets = [6, 0], sizes = [1, 256], strides = [1, 1]} : vector<16x256xf32> to vector<1x256xf32>
    %115 = vector.extract_strided_slice %3 {offsets = [6, 0], sizes = [1, 256], strides = [1, 1]} : vector<16x256xf32> to vector<1x256xf32>
    %c0_51 = arith.constant 0 : index
    %c6 = arith.constant 6 : index
    %c0_52 = arith.constant 0 : index
    %c0_53 = arith.constant 0 : index
    %116 = vector.load %arg3[%c0_51, %c6, %c0_52, %c0_53] : memref<2x16x16x256xf32, #tpu.memory_space<vmem>>, vector<1x1x16x256xf32>
    %117 = vector.shape_cast %116 : vector<1x1x16x256xf32> to vector<16x256xf32>
    %c1_54 = arith.constant 1 : index
    %c6_55 = arith.constant 6 : index
    %c0_56 = arith.constant 0 : index
    %c0_57 = arith.constant 0 : index
    %118 = vector.load %arg3[%c1_54, %c6_55, %c0_56, %c0_57] : memref<2x16x16x256xf32, #tpu.memory_space<vmem>>, vector<1x1x16x256xf32>
    %119 = vector.shape_cast %118 : vector<1x1x16x256xf32> to vector<16x256xf32>
    %120 = vector.broadcast %114 : vector<1x256xf32> to vector<16x256xf32>
    %121 = arith.mulf %120, %117 : vector<16x256xf32>
    %122 = arith.addf %107, %121 : vector<16x256xf32>
    %123 = vector.broadcast %115 : vector<1x256xf32> to vector<16x256xf32>
    %124 = arith.mulf %123, %119 : vector<16x256xf32>
    %125 = arith.subf %122, %124 : vector<16x256xf32>
    %126 = vector.broadcast %114 : vector<1x256xf32> to vector<16x256xf32>
    %127 = arith.mulf %126, %119 : vector<16x256xf32>
    %128 = arith.addf %113, %127 : vector<16x256xf32>
    %129 = vector.broadcast %115 : vector<1x256xf32> to vector<16x256xf32>
    %130 = arith.mulf %129, %117 : vector<16x256xf32>
    %131 = arith.addf %128, %130 : vector<16x256xf32>
    %132 = vector.extract_strided_slice %1 {offsets = [7, 0], sizes = [1, 256], strides = [1, 1]} : vector<16x256xf32> to vector<1x256xf32>
    %133 = vector.extract_strided_slice %3 {offsets = [7, 0], sizes = [1, 256], strides = [1, 1]} : vector<16x256xf32> to vector<1x256xf32>
    %c0_58 = arith.constant 0 : index
    %c7 = arith.constant 7 : index
    %c0_59 = arith.constant 0 : index
    %c0_60 = arith.constant 0 : index
    %134 = vector.load %arg3[%c0_58, %c7, %c0_59, %c0_60] : memref<2x16x16x256xf32, #tpu.memory_space<vmem>>, vector<1x1x16x256xf32>
    %135 = vector.shape_cast %134 : vector<1x1x16x256xf32> to vector<16x256xf32>
    %c1_61 = arith.constant 1 : index
    %c7_62 = arith.constant 7 : index
    %c0_63 = arith.constant 0 : index
    %c0_64 = arith.constant 0 : index
    %136 = vector.load %arg3[%c1_61, %c7_62, %c0_63, %c0_64] : memref<2x16x16x256xf32, #tpu.memory_space<vmem>>, vector<1x1x16x256xf32>
    %137 = vector.shape_cast %136 : vector<1x1x16x256xf32> to vector<16x256xf32>
    %138 = vector.broadcast %132 : vector<1x256xf32> to vector<16x256xf32>
    %139 = arith.mulf %138, %135 : vector<16x256xf32>
    %140 = arith.addf %125, %139 : vector<16x256xf32>
    %141 = vector.broadcast %133 : vector<1x256xf32> to vector<16x256xf32>
    %142 = arith.mulf %141, %137 : vector<16x256xf32>
    %143 = arith.subf %140, %142 : vector<16x256xf32>
    %144 = vector.broadcast %132 : vector<1x256xf32> to vector<16x256xf32>
    %145 = arith.mulf %144, %137 : vector<16x256xf32>
    %146 = arith.addf %131, %145 : vector<16x256xf32>
    %147 = vector.broadcast %133 : vector<1x256xf32> to vector<16x256xf32>
    %148 = arith.mulf %147, %135 : vector<16x256xf32>
    %149 = arith.addf %146, %148 : vector<16x256xf32>
    %150 = vector.extract_strided_slice %1 {offsets = [8, 0], sizes = [1, 256], strides = [1, 1]} : vector<16x256xf32> to vector<1x256xf32>
    %151 = vector.extract_strided_slice %3 {offsets = [8, 0], sizes = [1, 256], strides = [1, 1]} : vector<16x256xf32> to vector<1x256xf32>
    %c0_65 = arith.constant 0 : index
    %c8 = arith.constant 8 : index
    %c0_66 = arith.constant 0 : index
    %c0_67 = arith.constant 0 : index
    %152 = vector.load %arg3[%c0_65, %c8, %c0_66, %c0_67] : memref<2x16x16x256xf32, #tpu.memory_space<vmem>>, vector<1x1x16x256xf32>
    %153 = vector.shape_cast %152 : vector<1x1x16x256xf32> to vector<16x256xf32>
    %c1_68 = arith.constant 1 : index
    %c8_69 = arith.constant 8 : index
    %c0_70 = arith.constant 0 : index
    %c0_71 = arith.constant 0 : index
    %154 = vector.load %arg3[%c1_68, %c8_69, %c0_70, %c0_71] : memref<2x16x16x256xf32, #tpu.memory_space<vmem>>, vector<1x1x16x256xf32>
    %155 = vector.shape_cast %154 : vector<1x1x16x256xf32> to vector<16x256xf32>
    %156 = vector.broadcast %150 : vector<1x256xf32> to vector<16x256xf32>
    %157 = arith.mulf %156, %153 : vector<16x256xf32>
    %158 = arith.addf %143, %157 : vector<16x256xf32>
    %159 = vector.broadcast %151 : vector<1x256xf32> to vector<16x256xf32>
    %160 = arith.mulf %159, %155 : vector<16x256xf32>
    %161 = arith.subf %158, %160 : vector<16x256xf32>
    %162 = vector.broadcast %150 : vector<1x256xf32> to vector<16x256xf32>
    %163 = arith.mulf %162, %155 : vector<16x256xf32>
    %164 = arith.addf %149, %163 : vector<16x256xf32>
    %165 = vector.broadcast %151 : vector<1x256xf32> to vector<16x256xf32>
    %166 = arith.mulf %165, %153 : vector<16x256xf32>
    %167 = arith.addf %164, %166 : vector<16x256xf32>
    %168 = vector.extract_strided_slice %1 {offsets = [9, 0], sizes = [1, 256], strides = [1, 1]} : vector<16x256xf32> to vector<1x256xf32>
    %169 = vector.extract_strided_slice %3 {offsets = [9, 0], sizes = [1, 256], strides = [1, 1]} : vector<16x256xf32> to vector<1x256xf32>
    %c0_72 = arith.constant 0 : index
    %c9 = arith.constant 9 : index
    %c0_73 = arith.constant 0 : index
    %c0_74 = arith.constant 0 : index
    %170 = vector.load %arg3[%c0_72, %c9, %c0_73, %c0_74] : memref<2x16x16x256xf32, #tpu.memory_space<vmem>>, vector<1x1x16x256xf32>
    %171 = vector.shape_cast %170 : vector<1x1x16x256xf32> to vector<16x256xf32>
    %c1_75 = arith.constant 1 : index
    %c9_76 = arith.constant 9 : index
    %c0_77 = arith.constant 0 : index
    %c0_78 = arith.constant 0 : index
    %172 = vector.load %arg3[%c1_75, %c9_76, %c0_77, %c0_78] : memref<2x16x16x256xf32, #tpu.memory_space<vmem>>, vector<1x1x16x256xf32>
    %173 = vector.shape_cast %172 : vector<1x1x16x256xf32> to vector<16x256xf32>
    %174 = vector.broadcast %168 : vector<1x256xf32> to vector<16x256xf32>
    %175 = arith.mulf %174, %171 : vector<16x256xf32>
    %176 = arith.addf %161, %175 : vector<16x256xf32>
    %177 = vector.broadcast %169 : vector<1x256xf32> to vector<16x256xf32>
    %178 = arith.mulf %177, %173 : vector<16x256xf32>
    %179 = arith.subf %176, %178 : vector<16x256xf32>
    %180 = vector.broadcast %168 : vector<1x256xf32> to vector<16x256xf32>
    %181 = arith.mulf %180, %173 : vector<16x256xf32>
    %182 = arith.addf %167, %181 : vector<16x256xf32>
    %183 = vector.broadcast %169 : vector<1x256xf32> to vector<16x256xf32>
    %184 = arith.mulf %183, %171 : vector<16x256xf32>
    %185 = arith.addf %182, %184 : vector<16x256xf32>
    %186 = vector.extract_strided_slice %1 {offsets = [10, 0], sizes = [1, 256], strides = [1, 1]} : vector<16x256xf32> to vector<1x256xf32>
    %187 = vector.extract_strided_slice %3 {offsets = [10, 0], sizes = [1, 256], strides = [1, 1]} : vector<16x256xf32> to vector<1x256xf32>
    %c0_79 = arith.constant 0 : index
    %c10 = arith.constant 10 : index
    %c0_80 = arith.constant 0 : index
    %c0_81 = arith.constant 0 : index
    %188 = vector.load %arg3[%c0_79, %c10, %c0_80, %c0_81] : memref<2x16x16x256xf32, #tpu.memory_space<vmem>>, vector<1x1x16x256xf32>
    %189 = vector.shape_cast %188 : vector<1x1x16x256xf32> to vector<16x256xf32>
    %c1_82 = arith.constant 1 : index
    %c10_83 = arith.constant 10 : index
    %c0_84 = arith.constant 0 : index
    %c0_85 = arith.constant 0 : index
    %190 = vector.load %arg3[%c1_82, %c10_83, %c0_84, %c0_85] : memref<2x16x16x256xf32, #tpu.memory_space<vmem>>, vector<1x1x16x256xf32>
    %191 = vector.shape_cast %190 : vector<1x1x16x256xf32> to vector<16x256xf32>
    %192 = vector.broadcast %186 : vector<1x256xf32> to vector<16x256xf32>
    %193 = arith.mulf %192, %189 : vector<16x256xf32>
    %194 = arith.addf %179, %193 : vector<16x256xf32>
    %195 = vector.broadcast %187 : vector<1x256xf32> to vector<16x256xf32>
    %196 = arith.mulf %195, %191 : vector<16x256xf32>
    %197 = arith.subf %194, %196 : vector<16x256xf32>
    %198 = vector.broadcast %186 : vector<1x256xf32> to vector<16x256xf32>
    %199 = arith.mulf %198, %191 : vector<16x256xf32>
    %200 = arith.addf %185, %199 : vector<16x256xf32>
    %201 = vector.broadcast %187 : vector<1x256xf32> to vector<16x256xf32>
    %202 = arith.mulf %201, %189 : vector<16x256xf32>
    %203 = arith.addf %200, %202 : vector<16x256xf32>
    %204 = vector.extract_strided_slice %1 {offsets = [11, 0], sizes = [1, 256], strides = [1, 1]} : vector<16x256xf32> to vector<1x256xf32>
    %205 = vector.extract_strided_slice %3 {offsets = [11, 0], sizes = [1, 256], strides = [1, 1]} : vector<16x256xf32> to vector<1x256xf32>
    %c0_86 = arith.constant 0 : index
    %c11 = arith.constant 11 : index
    %c0_87 = arith.constant 0 : index
    %c0_88 = arith.constant 0 : index
    %206 = vector.load %arg3[%c0_86, %c11, %c0_87, %c0_88] : memref<2x16x16x256xf32, #tpu.memory_space<vmem>>, vector<1x1x16x256xf32>
    %207 = vector.shape_cast %206 : vector<1x1x16x256xf32> to vector<16x256xf32>
    %c1_89 = arith.constant 1 : index
    %c11_90 = arith.constant 11 : index
    %c0_91 = arith.constant 0 : index
    %c0_92 = arith.constant 0 : index
    %208 = vector.load %arg3[%c1_89, %c11_90, %c0_91, %c0_92] : memref<2x16x16x256xf32, #tpu.memory_space<vmem>>, vector<1x1x16x256xf32>
    %209 = vector.shape_cast %208 : vector<1x1x16x256xf32> to vector<16x256xf32>
    %210 = vector.broadcast %204 : vector<1x256xf32> to vector<16x256xf32>
    %211 = arith.mulf %210, %207 : vector<16x256xf32>
    %212 = arith.addf %197, %211 : vector<16x256xf32>
    %213 = vector.broadcast %205 : vector<1x256xf32> to vector<16x256xf32>
    %214 = arith.mulf %213, %209 : vector<16x256xf32>
    %215 = arith.subf %212, %214 : vector<16x256xf32>
    %216 = vector.broadcast %204 : vector<1x256xf32> to vector<16x256xf32>
    %217 = arith.mulf %216, %209 : vector<16x256xf32>
    %218 = arith.addf %203, %217 : vector<16x256xf32>
    %219 = vector.broadcast %205 : vector<1x256xf32> to vector<16x256xf32>
    %220 = arith.mulf %219, %207 : vector<16x256xf32>
    %221 = arith.addf %218, %220 : vector<16x256xf32>
    %222 = vector.extract_strided_slice %1 {offsets = [12, 0], sizes = [1, 256], strides = [1, 1]} : vector<16x256xf32> to vector<1x256xf32>
    %223 = vector.extract_strided_slice %3 {offsets = [12, 0], sizes = [1, 256], strides = [1, 1]} : vector<16x256xf32> to vector<1x256xf32>
    %c0_93 = arith.constant 0 : index
    %c12 = arith.constant 12 : index
    %c0_94 = arith.constant 0 : index
    %c0_95 = arith.constant 0 : index
    %224 = vector.load %arg3[%c0_93, %c12, %c0_94, %c0_95] : memref<2x16x16x256xf32, #tpu.memory_space<vmem>>, vector<1x1x16x256xf32>
    %225 = vector.shape_cast %224 : vector<1x1x16x256xf32> to vector<16x256xf32>
    %c1_96 = arith.constant 1 : index
    %c12_97 = arith.constant 12 : index
    %c0_98 = arith.constant 0 : index
    %c0_99 = arith.constant 0 : index
    %226 = vector.load %arg3[%c1_96, %c12_97, %c0_98, %c0_99] : memref<2x16x16x256xf32, #tpu.memory_space<vmem>>, vector<1x1x16x256xf32>
    %227 = vector.shape_cast %226 : vector<1x1x16x256xf32> to vector<16x256xf32>
    %228 = vector.broadcast %222 : vector<1x256xf32> to vector<16x256xf32>
    %229 = arith.mulf %228, %225 : vector<16x256xf32>
    %230 = arith.addf %215, %229 : vector<16x256xf32>
    %231 = vector.broadcast %223 : vector<1x256xf32> to vector<16x256xf32>
    %232 = arith.mulf %231, %227 : vector<16x256xf32>
    %233 = arith.subf %230, %232 : vector<16x256xf32>
    %234 = vector.broadcast %222 : vector<1x256xf32> to vector<16x256xf32>
    %235 = arith.mulf %234, %227 : vector<16x256xf32>
    %236 = arith.addf %221, %235 : vector<16x256xf32>
    %237 = vector.broadcast %223 : vector<1x256xf32> to vector<16x256xf32>
    %238 = arith.mulf %237, %225 : vector<16x256xf32>
    %239 = arith.addf %236, %238 : vector<16x256xf32>
    %240 = vector.extract_strided_slice %1 {offsets = [13, 0], sizes = [1, 256], strides = [1, 1]} : vector<16x256xf32> to vector<1x256xf32>
    %241 = vector.extract_strided_slice %3 {offsets = [13, 0], sizes = [1, 256], strides = [1, 1]} : vector<16x256xf32> to vector<1x256xf32>
    %c0_100 = arith.constant 0 : index
    %c13 = arith.constant 13 : index
    %c0_101 = arith.constant 0 : index
    %c0_102 = arith.constant 0 : index
    %242 = vector.load %arg3[%c0_100, %c13, %c0_101, %c0_102] : memref<2x16x16x256xf32, #tpu.memory_space<vmem>>, vector<1x1x16x256xf32>
    %243 = vector.shape_cast %242 : vector<1x1x16x256xf32> to vector<16x256xf32>
    %c1_103 = arith.constant 1 : index
    %c13_104 = arith.constant 13 : index
    %c0_105 = arith.constant 0 : index
    %c0_106 = arith.constant 0 : index
    %244 = vector.load %arg3[%c1_103, %c13_104, %c0_105, %c0_106] : memref<2x16x16x256xf32, #tpu.memory_space<vmem>>, vector<1x1x16x256xf32>
    %245 = vector.shape_cast %244 : vector<1x1x16x256xf32> to vector<16x256xf32>
    %246 = vector.broadcast %240 : vector<1x256xf32> to vector<16x256xf32>
    %247 = arith.mulf %246, %243 : vector<16x256xf32>
    %248 = arith.addf %233, %247 : vector<16x256xf32>
    %249 = vector.broadcast %241 : vector<1x256xf32> to vector<16x256xf32>
    %250 = arith.mulf %249, %245 : vector<16x256xf32>
    %251 = arith.subf %248, %250 : vector<16x256xf32>
    %252 = vector.broadcast %240 : vector<1x256xf32> to vector<16x256xf32>
    %253 = arith.mulf %252, %245 : vector<16x256xf32>
    %254 = arith.addf %239, %253 : vector<16x256xf32>
    %255 = vector.broadcast %241 : vector<1x256xf32> to vector<16x256xf32>
    %256 = arith.mulf %255, %243 : vector<16x256xf32>
    %257 = arith.addf %254, %256 : vector<16x256xf32>
    %258 = vector.extract_strided_slice %1 {offsets = [14, 0], sizes = [1, 256], strides = [1, 1]} : vector<16x256xf32> to vector<1x256xf32>
    %259 = vector.extract_strided_slice %3 {offsets = [14, 0], sizes = [1, 256], strides = [1, 1]} : vector<16x256xf32> to vector<1x256xf32>
    %c0_107 = arith.constant 0 : index
    %c14 = arith.constant 14 : index
    %c0_108 = arith.constant 0 : index
    %c0_109 = arith.constant 0 : index
    %260 = vector.load %arg3[%c0_107, %c14, %c0_108, %c0_109] : memref<2x16x16x256xf32, #tpu.memory_space<vmem>>, vector<1x1x16x256xf32>
    %261 = vector.shape_cast %260 : vector<1x1x16x256xf32> to vector<16x256xf32>
    %c1_110 = arith.constant 1 : index
    %c14_111 = arith.constant 14 : index
    %c0_112 = arith.constant 0 : index
    %c0_113 = arith.constant 0 : index
    %262 = vector.load %arg3[%c1_110, %c14_111, %c0_112, %c0_113] : memref<2x16x16x256xf32, #tpu.memory_space<vmem>>, vector<1x1x16x256xf32>
    %263 = vector.shape_cast %262 : vector<1x1x16x256xf32> to vector<16x256xf32>
    %264 = vector.broadcast %258 : vector<1x256xf32> to vector<16x256xf32>
    %265 = arith.mulf %264, %261 : vector<16x256xf32>
    %266 = arith.addf %251, %265 : vector<16x256xf32>
    %267 = vector.broadcast %259 : vector<1x256xf32> to vector<16x256xf32>
    %268 = arith.mulf %267, %263 : vector<16x256xf32>
    %269 = arith.subf %266, %268 : vector<16x256xf32>
    %270 = vector.broadcast %258 : vector<1x256xf32> to vector<16x256xf32>
    %271 = arith.mulf %270, %263 : vector<16x256xf32>
    %272 = arith.addf %257, %271 : vector<16x256xf32>
    %273 = vector.broadcast %259 : vector<1x256xf32> to vector<16x256xf32>
    %274 = arith.mulf %273, %261 : vector<16x256xf32>
    %275 = arith.addf %272, %274 : vector<16x256xf32>
    %276 = vector.extract_strided_slice %1 {offsets = [15, 0], sizes = [1, 256], strides = [1, 1]} : vector<16x256xf32> to vector<1x256xf32>
    %277 = vector.extract_strided_slice %3 {offsets = [15, 0], sizes = [1, 256], strides = [1, 1]} : vector<16x256xf32> to vector<1x256xf32>
    %c0_114 = arith.constant 0 : index
    %c15 = arith.constant 15 : index
    %c0_115 = arith.constant 0 : index
    %c0_116 = arith.constant 0 : index
    %278 = vector.load %arg3[%c0_114, %c15, %c0_115, %c0_116] : memref<2x16x16x256xf32, #tpu.memory_space<vmem>>, vector<1x1x16x256xf32>
    %279 = vector.shape_cast %278 : vector<1x1x16x256xf32> to vector<16x256xf32>
    %c1_117 = arith.constant 1 : index
    %c15_118 = arith.constant 15 : index
    %c0_119 = arith.constant 0 : index
    %c0_120 = arith.constant 0 : index
    %280 = vector.load %arg3[%c1_117, %c15_118, %c0_119, %c0_120] : memref<2x16x16x256xf32, #tpu.memory_space<vmem>>, vector<1x1x16x256xf32>
    %281 = vector.shape_cast %280 : vector<1x1x16x256xf32> to vector<16x256xf32>
    %282 = vector.broadcast %276 : vector<1x256xf32> to vector<16x256xf32>
    %283 = arith.mulf %282, %279 : vector<16x256xf32>
    %284 = arith.addf %269, %283 : vector<16x256xf32>
    %285 = vector.broadcast %277 : vector<1x256xf32> to vector<16x256xf32>
    %286 = arith.mulf %285, %281 : vector<16x256xf32>
    %287 = arith.subf %284, %286 : vector<16x256xf32>
    %288 = vector.broadcast %276 : vector<1x256xf32> to vector<16x256xf32>
    %289 = arith.mulf %288, %281 : vector<16x256xf32>
    %290 = arith.addf %275, %289 : vector<16x256xf32>
    %291 = vector.broadcast %277 : vector<1x256xf32> to vector<16x256xf32>
    %292 = arith.mulf %291, %279 : vector<16x256xf32>
    %293 = arith.addf %290, %292 : vector<16x256xf32>
    %c0_121 = arith.constant 0 : index
    %c0_122 = arith.constant 0 : index
    %c0_123 = arith.constant 0 : index
    %c0_124 = arith.constant 0 : index
    %294 = vector.load %arg4[%c0_121, %c0_122, %c0_123, %c0_124] : memref<2x1x16x256xf32, #tpu.memory_space<vmem>>, vector<1x1x16x256xf32>
    %295 = vector.shape_cast %294 : vector<1x1x16x256xf32> to vector<16x256xf32>
    %296 = vector.shape_cast %287 : vector<16x256xf32> to vector<1x1x16x256xf32>
    tpu.vector_store %arg4[%c0_121, %c0_122, %c0_123, %c0_124], %296 {strides = array<i32>} : memref<2x1x16x256xf32, #tpu.memory_space<vmem>>, vector<1x1x16x256xf32>,
    %c1_125 = arith.constant 1 : index
    %c0_126 = arith.constant 0 : index
    %c0_127 = arith.constant 0 : index
    %c0_128 = arith.constant 0 : index
    %297 = vector.load %arg4[%c1_125, %c0_126, %c0_127, %c0_128] : memref<2x1x16x256xf32, #tpu.memory_space<vmem>>, vector<1x1x16x256xf32>
    %298 = vector.shape_cast %297 : vector<1x1x16x256xf32> to vector<16x256xf32>
    %299 = vector.shape_cast %293 : vector<16x256xf32> to vector<1x1x16x256xf32>
    tpu.vector_store %arg4[%c1_125, %c0_126, %c0_127, %c0_128], %299 {strides = array<i32>} : memref<2x1x16x256xf32, #tpu.memory_space<vmem>>, vector<1x1x16x256xf32>,
    return
  }
  func.func @transform_0(%arg0: i32, %arg1: i32) -> (i32, i32, i32, i32) {
    %c0_i32 = arith.constant 0 : i32
    %c0_i32_0 = arith.constant 0 : i32
    %c0_i32_1 = arith.constant 0 : i32
    return %c0_i32, %arg1, %c0_i32_0, %arg0 : i32, i32, i32, i32
  }
  func.func @transform_1(%arg0: i32, %arg1: i32) -> (i32, i32, i32, i32) {
    %c0_i32 = arith.constant 0 : i32
    %c0_i32_0 = arith.constant 0 : i32
    %c0_i32_1 = arith.constant 0 : i32
    %c0_i32_2 = arith.constant 0 : i32
    return %c0_i32, %c0_i32_0, %c0_i32_1, %arg0 : i32, i32, i32, i32
  }
  func.func @transform_2(%arg0: i32, %arg1: i32) -> (i32, i32, i32, i32) {
    %c0_i32 = arith.constant 0 : i32
    %c0_i32_0 = arith.constant 0 : i32
    %c0_i32_1 = arith.constant 0 : i32
    return %c0_i32, %arg1, %c0_i32_0, %arg0 : i32, i32, i32, i32
  }
}

module attributes {stable_mosaic.version = 11 : i64} {
  func.func @_pw_res_kernel(%arg0: i32, %arg1: i32, %arg2: memref<1x16x1728xf32, #tpu.memory_space<vmem>>, %arg3: memref<16x16xf32, #tpu.memory_space<vmem>>, %arg4: memref<16x1xf32, #tpu.memory_space<vmem>>, %arg5: memref<1x16x1728xf32, #tpu.memory_space<vmem>>, %arg6: memref<1x16x1728xf32, #tpu.memory_space<vmem>>) attributes {dimension_semantics = [#tpu.dimension_semantics<parallel>, #tpu.dimension_semantics<parallel>], iteration_bounds = array<i64: 2, 1>, scalar_prefetch = 0 : i64, scratch_operands = 0 : i64, tpu.core_type = #tpu.core_type<tc>, window_params = [{transform_indices = @transform_0, window_bounds = array<i64: 1, 16, 1728>}, {pipeline_mode = #tpu.pipeline_mode<synchronous>, transform_indices = @transform_1, window_bounds = array<i64: 16, 16>}, {pipeline_mode = #tpu.pipeline_mode<synchronous>, transform_indices = @transform_2, window_bounds = array<i64: 16, 1>}, {transform_indices = @transform_3, window_bounds = array<i64: 1, 16, 1728>}, {transform_indices = @transform_4, window_bounds = array<i64: 1, 16, 1728>}]} {
    %c0 = arith.constant 0 : index
    %c0_0 = arith.constant 0 : index
    %0 = vector.load %arg3[%c0, %c0_0] : memref<16x16xf32, #tpu.memory_space<vmem>>, vector<16x16xf32>
    %c0_1 = arith.constant 0 : index
    %c0_2 = arith.constant 0 : index
    %c0_3 = arith.constant 0 : index
    %1 = vector.load %arg2[%c0_1, %c0_2, %c0_3] : memref<1x16x1728xf32, #tpu.memory_space<vmem>>, vector<1x16x1728xf32>
    %2 = vector.shape_cast %1 : vector<1x16x1728xf32> to vector<16x1728xf32>
    %cst = arith.constant dense<0.000000e+00> : vector<16x1728xf32>
    %3 = tpu.matmul %0, %2, %cst {dimension_numbers = #tpu.dot_dimension_numbers<[1], [0], [0], [1], [0, 0, 1, 1], [], []>} : vector<16x16xf32>, vector<16x1728xf32>, vector<16x1728xf32> -> vector<16x1728xf32>
    %c0_4 = arith.constant 0 : index
    %c0_5 = arith.constant 0 : index
    %4 = vector.load %arg4[%c0_4, %c0_5] : memref<16x1xf32, #tpu.memory_space<vmem>>, vector<16x1xf32>
    %5 = vector.broadcast %4 : vector<16x1xf32> to vector<16x1728xf32>
    %6 = arith.addf %3, %5 : vector<16x1728xf32>
    %c0_6 = arith.constant 0 : index
    %c0_7 = arith.constant 0 : index
    %c0_8 = arith.constant 0 : index
    %7 = vector.load %arg5[%c0_6, %c0_7, %c0_8] : memref<1x16x1728xf32, #tpu.memory_space<vmem>>, vector<1x16x1728xf32>
    %8 = vector.shape_cast %7 : vector<1x16x1728xf32> to vector<16x1728xf32>
    %9 = arith.addf %6, %8 : vector<16x1728xf32>
    %cst_9 = arith.constant 5.000000e-01 : f32
    %10 = vector.broadcast %cst_9 : f32 to vector<16x1728xf32>
    %11 = arith.mulf %10, %9 : vector<16x1728xf32>
    %cst_10 = arith.constant 0.707106769 : f32
    %12 = vector.broadcast %cst_10 : f32 to vector<16x1728xf32>
    %13 = arith.mulf %9, %12 : vector<16x1728xf32>
    %14 = math.erf %13 : vector<16x1728xf32>
    %cst_11 = arith.constant 1.000000e+00 : f32
    %15 = vector.broadcast %cst_11 : f32 to vector<16x1728xf32>
    %16 = arith.addf %15, %14 : vector<16x1728xf32>
    %17 = arith.mulf %11, %16 : vector<16x1728xf32>
    %c0_12 = arith.constant 0 : index
    %c0_13 = arith.constant 0 : index
    %c0_14 = arith.constant 0 : index
    %18 = vector.load %arg6[%c0_12, %c0_13, %c0_14] : memref<1x16x1728xf32, #tpu.memory_space<vmem>>, vector<1x16x1728xf32>
    %19 = vector.shape_cast %18 : vector<1x16x1728xf32> to vector<16x1728xf32>
    %20 = vector.shape_cast %17 : vector<16x1728xf32> to vector<1x16x1728xf32>
    tpu.vector_store %arg6[%c0_12, %c0_13, %c0_14], %20 {strides = array<i32>} : memref<1x16x1728xf32, #tpu.memory_space<vmem>>, vector<1x16x1728xf32>,
    return
  }
  func.func @transform_0(%arg0: i32, %arg1: i32) -> (i32, i32, i32) {
    %c0_i32 = arith.constant 0 : i32
    %c0_i32_0 = arith.constant 0 : i32
    return %arg0, %c0_i32, %arg1 : i32, i32, i32
  }
  func.func @transform_1(%arg0: i32, %arg1: i32) -> (i32, i32) {
    %c0_i32 = arith.constant 0 : i32
    %c0_i32_0 = arith.constant 0 : i32
    %c0_i32_1 = arith.constant 0 : i32
    return %c0_i32, %c0_i32_0 : i32, i32
  }
  func.func @transform_2(%arg0: i32, %arg1: i32) -> (i32, i32) {
    %c0_i32 = arith.constant 0 : i32
    %c0_i32_0 = arith.constant 0 : i32
    %c0_i32_1 = arith.constant 0 : i32
    return %c0_i32, %c0_i32_0 : i32, i32
  }
  func.func @transform_3(%arg0: i32, %arg1: i32) -> (i32, i32, i32) {
    %c0_i32 = arith.constant 0 : i32
    %c0_i32_0 = arith.constant 0 : i32
    return %arg0, %c0_i32, %arg1 : i32, i32, i32
  }
  func.func @transform_4(%arg0: i32, %arg1: i32) -> (i32, i32, i32) {
    %c0_i32 = arith.constant 0 : i32
    %c0_i32_0 = arith.constant 0 : i32
    return %arg0, %c0_i32, %arg1 : i32, i32, i32
  }
}

module attributes {stable_mosaic.version = 11 : i64} {
  func.func @_pw_res_kernel(%arg0: i32, %arg1: i32, %arg2: memref<1x16x1728xf32, #tpu.memory_space<vmem>>, %arg3: memref<16x16xf32, #tpu.memory_space<vmem>>, %arg4: memref<16x1xf32, #tpu.memory_space<vmem>>, %arg5: memref<1x16x1728xf32, #tpu.memory_space<vmem>>, %arg6: memref<1x16x1728xf32, #tpu.memory_space<vmem>>) attributes {dimension_semantics = [#tpu.dimension_semantics<parallel>, #tpu.dimension_semantics<parallel>], iteration_bounds = array<i64: 2, 1>, scalar_prefetch = 0 : i64, scratch_operands = 0 : i64, tpu.core_type = #tpu.core_type<tc>, window_params = [{transform_indices = @transform_0, window_bounds = array<i64: 1, 16, 1728>}, {pipeline_mode = #tpu.pipeline_mode<synchronous>, transform_indices = @transform_1, window_bounds = array<i64: 16, 16>}, {pipeline_mode = #tpu.pipeline_mode<synchronous>, transform_indices = @transform_2, window_bounds = array<i64: 16, 1>}, {transform_indices = @transform_3, window_bounds = array<i64: 1, 16, 1728>}, {transform_indices = @transform_4, window_bounds = array<i64: 1, 16, 1728>}]} {
    %c0 = arith.constant 0 : index
    %c0_0 = arith.constant 0 : index
    %0 = vector.load %arg3[%c0, %c0_0] : memref<16x16xf32, #tpu.memory_space<vmem>>, vector<16x16xf32>
    %c0_1 = arith.constant 0 : index
    %c0_2 = arith.constant 0 : index
    %c0_3 = arith.constant 0 : index
    %1 = vector.load %arg2[%c0_1, %c0_2, %c0_3] : memref<1x16x1728xf32, #tpu.memory_space<vmem>>, vector<1x16x1728xf32>
    %2 = vector.shape_cast %1 : vector<1x16x1728xf32> to vector<16x1728xf32>
    %cst = arith.constant dense<0.000000e+00> : vector<16x1728xf32>
    %3 = tpu.matmul %0, %2, %cst {dimension_numbers = #tpu.dot_dimension_numbers<[1], [0], [0], [1], [0, 0, 1, 1], [], []>} : vector<16x16xf32>, vector<16x1728xf32>, vector<16x1728xf32> -> vector<16x1728xf32>
    %c0_4 = arith.constant 0 : index
    %c0_5 = arith.constant 0 : index
    %4 = vector.load %arg4[%c0_4, %c0_5] : memref<16x1xf32, #tpu.memory_space<vmem>>, vector<16x1xf32>
    %5 = vector.broadcast %4 : vector<16x1xf32> to vector<16x1728xf32>
    %6 = arith.addf %3, %5 : vector<16x1728xf32>
    %c0_6 = arith.constant 0 : index
    %c0_7 = arith.constant 0 : index
    %c0_8 = arith.constant 0 : index
    %7 = vector.load %arg5[%c0_6, %c0_7, %c0_8] : memref<1x16x1728xf32, #tpu.memory_space<vmem>>, vector<1x16x1728xf32>
    %8 = vector.shape_cast %7 : vector<1x16x1728xf32> to vector<16x1728xf32>
    %9 = arith.addf %6, %8 : vector<16x1728xf32>
    %c0_9 = arith.constant 0 : index
    %c0_10 = arith.constant 0 : index
    %c0_11 = arith.constant 0 : index
    %10 = vector.load %arg6[%c0_9, %c0_10, %c0_11] : memref<1x16x1728xf32, #tpu.memory_space<vmem>>, vector<1x16x1728xf32>
    %11 = vector.shape_cast %10 : vector<1x16x1728xf32> to vector<16x1728xf32>
    %12 = vector.shape_cast %9 : vector<16x1728xf32> to vector<1x16x1728xf32>
    tpu.vector_store %arg6[%c0_9, %c0_10, %c0_11], %12 {strides = array<i32>} : memref<1x16x1728xf32, #tpu.memory_space<vmem>>, vector<1x16x1728xf32>,
    return
  }
  func.func @transform_0(%arg0: i32, %arg1: i32) -> (i32, i32, i32) {
    %c0_i32 = arith.constant 0 : i32
    %c0_i32_0 = arith.constant 0 : i32
    return %arg0, %c0_i32, %arg1 : i32, i32, i32
  }
  func.func @transform_1(%arg0: i32, %arg1: i32) -> (i32, i32) {
    %c0_i32 = arith.constant 0 : i32
    %c0_i32_0 = arith.constant 0 : i32
    %c0_i32_1 = arith.constant 0 : i32
    return %c0_i32, %c0_i32_0 : i32, i32
  }
  func.func @transform_2(%arg0: i32, %arg1: i32) -> (i32, i32) {
    %c0_i32 = arith.constant 0 : i32
    %c0_i32_0 = arith.constant 0 : i32
    %c0_i32_1 = arith.constant 0 : i32
    return %c0_i32, %c0_i32_0 : i32, i32
  }
  func.func @transform_3(%arg0: i32, %arg1: i32) -> (i32, i32, i32) {
    %c0_i32 = arith.constant 0 : i32
    %c0_i32_0 = arith.constant 0 : i32
    return %arg0, %c0_i32, %arg1 : i32, i32, i32
  }
  func.func @transform_4(%arg0: i32, %arg1: i32) -> (i32, i32, i32) {
    %c0_i32 = arith.constant 0 : i32
    %c0_i32_0 = arith.constant 0 : i32
    return %arg0, %c0_i32, %arg1 : i32, i32, i32
  }
}

</mosaic_0001>

<bundles_post_ra>
// kernel: fno3d_encoder_forward.5
= control target key start
LH: loop header
LB: loop body
LE: loop exit
PB: predicated region body
PF: predicated region fallthrough
CT: control target
= control target key end

     0   :  { %s882_s18 = smov 0   ;;  %s884_s19 = smov 0   ;;  %s1043_s0 = inlined_call_operand.vmem [shape: f32[2,4,512], index: 0, kind: input, shape index: {}]   ;;  %s1044_s1 = inlined_call_operand.vmem [shape: f32[8,4], index: 1, kind: input, shape index: {}]   ;;  %s1045_s2 = inlined_call_operand.vmem [shape: f32[8,1], index: 2, kind: input, shape index: {}]   ;;  %s1046_s3 = inlined_call_operand.vmem [shape: f32[16,8], index: 3, kind: input, shape index: {}]   ;;  %s1047_s4 = inlined_call_operand.vmem [shape: f32[16,1], index: 4, kind: input, shape index: {}]   ;;  %s1048_s5 = inlined_call_operand.vmem [shape: f32[2,16,512], index: 5, kind: output, shape index: {}]  }
   0x1   :  { %s886_s20 = smov 0  }
   0x2 LB: > { %s27_s21 = sadd.s32 1, %s845_s19  ;;  %p763_p0 = scmp.ge.s32.totalorder %s849_s20, 1  ;;  %s849_s20 = sphi %s886_s20, %s15_s20   ;;  %s845_s19 = sphi %s884_s19, %s1050_s19   ;;  %s841_s18 = sphi %s882_s18, %s1049_s18  }
   0x3   : > { %p29_p1 = scmp.ge.s32.totalorder %s27_s21, 2  ;;  %p208_p2 = scmp.lt.s32.totalorder %s849_s20, 3 }
   0x5   : > { %s1052_s21 = smov (%p29_p1, %s27_s21), 0  ;;  %p209_p3 = pnand %p763_p0, %p208_p2 }
   0x6   : > { %p245_p4 = scmp.lt.s32.totalorder (!%p209_p3), %s841_s18, 1 }
   0x7   : > { %212 = sbr.rel (%p209_p3) target bundleno = 359 (0x167), region = 40 }
   0xc   : > { %v267_v0 = vld [vmem:[%s1045_s2] sm:$0xff]  ;;  %v851_v1 = vmov 0   ;;  %s1054_s18 = smov (!%p245_p4, %s841_s18), 1  ;;  %vm286_vm0 = vcmask 1043456   ;;  %vm282_vm1 = vcmask 31744   ;;  %vm565_vm10 = vcmask 64512  }
   0xd   : > { %817 = vset.pattern.permute.xlu0 %v851_v1  ;;  %818 = vset.pattern.permute.xlu1 %v851_v1  ;;  %s790_s24 = sshll.u32 %s1054_s18, 4  ;;  %v553_v4 = vld [vmem:[%s1047_s4] sm:$0xff]  ;;  %s791_s13 = sshll.u32 %s1054_s18, 6 }
   0xe   : > { %270 = vperm.xlu0 %817, %v267_v0   ;;  %s252_s27 = scalar_lea.vmem %s1043_s0, %s790_s24  ;;  %v264_v5 = vld [vmem:[%s1044_s1] sm:$0xff]  ;;  %s262_s16 = scalar_lea.vmem %s1048_s5, %s791_s13 }
   0xf   : > { %v265_v2 = vld [vmem:[%s252_s27] sm:$0xff]  ;;  %v266_v3 = vld [vmem:[%s252_s27 + $0x8] sm:$0xff] }
  0x10   : > { %275 = vst [vmem:[#allocation1] ss:$2 sm:$0xff] %v265_v2 }
  0x11   : > { %277 = vst [vmem:[#allocation1 + $0x10] ss:$2 sm:$0xff] %v266_v3 }
  0x16   : > { %557 = vperm.xlu0 %817, %v553_v4  }
  0x17   : > { %v278_v6 = vld.sshfl [vmem:[#allocation1] sm:$0xff pattern:$0x75316420]  ;;  %v279_v7 = vld.sshfl [vmem:[#allocation1 + $0x8] sm:$0xff pattern:$0x75316420] }
  0x18   : > { %768 = vmatpush.msk.msra.mxu0 %vm286_vm0, %v278_v6  ;;  %770 = vmatpush.msk.msra.mxu1 %vm286_vm0, %v279_v7  ;;  %v280_v8 = vld.sshfl [vmem:[#allocation1 + $0x10] sm:$0xff pattern:$0x75316420]  ;;  %v281_v9 = vld.sshfl [vmem:[#allocation1 + $0x18] sm:$0xff pattern:$0x75316420] }
  0x19   : > { %772 = vmatpush.msk.msra.mxu2 %vm286_vm0, %v280_v8  ;;  %774 = vmatpush.msk.msra.mxu3 %vm286_vm0, %v281_v9 }
  0x1a   : > { %769 = vmatmul.msk.f32.vlgmr.msra.gmra.mxu0 %vm282_vm1, %v264_v5  ;;  %771 = vmatmul.msk.f32.vlgmr.msra.gmra.mxu1 %vm282_vm1, %v264_v5 }
  0x1b   : > { %773 = vmatmul.msk.f32.vlgmr.msra.gmra.mxu2 %vm282_vm1, %v264_v5  ;;  %775 = vmatmul.msk.f32.vlgmr.msra.gmra.mxu3 %vm282_vm1, %v264_v5 }
  0x80   : > { %v271_v10 = vpop.permute.xlu0 %270 }
  0x97   : > { %v312_v11 = vpop.f32.mrf.mxu0  ;;  %v332_v12 = vpop.f32.mrf.mxu1 }
  0x98   : > { %v915_v13 = vadd.f32 %v312_v11, %v271_v10  ;;  %v917_v14 = vadd.f32 %v332_v12, %v271_v10 }
  0x9a   : > { %v920_v15 = vmul.f32 0.70710677, %v915_v13  ;;  %v923_v16 = vmul.f32 0.70710677, %v917_v14 }
  0x9c   : > { %v383_v17 = vmul.f32 %v920_v15, %v920_v15  ;;  %v423_v18 = vmul.f32 %v923_v16, %v923_v16 }
  0x9e   : > { %v929_v19 = vmin.f32 %v383_v17, 16.0  ;;  %v931_v20 = vmin.f32 %v423_v18, 16.0  ;;  %v352_v21 = vpop.f32.mrf.mxu2  ;;  %v372_v22 = vpop.f32.mrf.mxu3 }
  0x9f   : > { %v933_v23 = vadd.f32 %v352_v21, %v271_v10  ;;  %v935_v24 = vadd.f32 %v372_v22, %v271_v10 }
  0xa0   : > { %v385_v25 = vmul.f32 2.1237322e-06, %v929_v19  ;;  %v425_v26 = vmul.f32 2.1237322e-06, %v931_v20  ;;  %v396_v27 = vmul.f32 3.8918573e-05, %v929_v19 }
  0xa1   : > { %v941_v28 = vmul.f32 0.70710677, %v933_v23  ;;  %v944_v29 = vmul.f32 0.70710677, %v935_v24  ;;  %v436_v35 = vmul.f32 3.8918573e-05, %v931_v20 }
  0xa2   : > { %v386_v30 = vadd.f32 0.00028619796, %v385_v25  ;;  %v426_v31 = vadd.f32 0.00028619796, %v425_v26  ;;  %v397_v32 = vadd.f32 0.001143296, %v396_v27 }
  0xa3   : > { %v463_v33 = vmul.f32 %v941_v28, %v941_v28  ;;  %v503_v34 = vmul.f32 %v944_v29, %v944_v29  ;;  %v437_v41 = vadd.f32 0.001143296, %v436_v35 }
  0xa4   : > { %v387_v36 = vmul.f32 %v386_v30, %v929_v19  ;;  %v427_v37 = vmul.f32 %v426_v31, %v931_v20  ;;  %v398_v38 = vmul.f32 %v397_v32, %v929_v19 }
  0xa5   : > { %v954_v39 = vmin.f32 %v463_v33, 16.0  ;;  %v956_v40 = vmin.f32 %v503_v34, 16.0  ;;  %v438_v47 = vmul.f32 %v437_v41, %v931_v20 }
  0xa6   : > { %v388_v42 = vadd.f32 0.0036580483, %v387_v36  ;;  %v428_v43 = vadd.f32 0.0036580483, %v427_v37  ;;  %v399_v44 = vadd.f32 0.014752088, %v398_v38 }
  0xa7   : > { %v465_v45 = vmul.f32 2.1237322e-06, %v954_v39  ;;  %v505_v46 = vmul.f32 2.1237322e-06, %v956_v40  ;;  %v476_v48 = vmul.f32 3.8918573e-05, %v954_v39 }
  0xa8   : > { %v389_v49 = vmul.f32 %v388_v42, %v929_v19  ;;  %v400_v50 = vmul.f32 %v399_v44, %v929_v19  ;;  %v516_v51 = vmul.f32 3.8918573e-05, %v956_v40  ;;  %v429_v52 = vmul.f32 %v428_v43, %v931_v20 }
  0xa9   : > { %v439_v53 = vadd.f32 0.014752088, %v438_v47  ;;  %v466_v55 = vadd.f32 0.00028619796, %v465_v45  ;;  %v506_v56 = vadd.f32 0.00028619796, %v505_v46 }
  0xaa   : > { %v401_v54 = vadd.f32 0.112945676, %v400_v50  ;;  %v477_v58 = vadd.f32 0.001143296, %v476_v48  ;;  %v390_v59 = vadd.f32 0.05243302, %v389_v49 }
  0xab   : > { %v440_v57 = vmul.f32 %v439_v53, %v931_v20  ;;  %v517_v61 = vadd.f32 0.001143296, %v516_v51  ;;  %v430_v62 = vadd.f32 0.05243302, %v429_v52  ;;  %v467_v3 = vmul.f32 %v466_v55, %v954_v39 }
  0xac   : > { %v402_v60 = vmul.f32 %v401_v54, %v929_v19  ;;  %v478_v0 = vmul.f32 %v477_v58, %v954_v39  ;;  %v507_v4 = vmul.f32 %v506_v56, %v956_v40  ;;  %v391_v7 = vmul.f32 %v390_v59, %v929_v19 }
  0xad   : > { %v441_v63 = vadd.f32 0.112945676, %v440_v57  ;;  %v518_v2 = vmul.f32 %v517_v61, %v956_v40  ;;  %v431_v10 = vmul.f32 %v430_v62, %v931_v20  ;;  %v468_v21 = vadd.f32 0.0036580483, %v467_v3 }
  0xae   : > { %v403_v1 = vadd.f32 0.4994258, %v402_v60  ;;  %v479_v6 = vadd.f32 0.014752088, %v478_v0  ;;  %v508_v22 = vadd.f32 0.0036580483, %v507_v4 }
  0xaf   : > { %v442_v5 = vmul.f32 %v441_v63, %v931_v20  ;;  %v519_v9 = vadd.f32 0.014752088, %v518_v2  ;;  %v392_v26 = vadd.f32 0.18741608, %v391_v7  ;;  %v432_v27 = vadd.f32 0.18741608, %v431_v10 }
  0xb0   : > { %v404_v8 = vmul.f32 %v403_v1, %v929_v19  ;;  %v480_v17 = vmul.f32 %v479_v6, %v954_v39  ;;  %v469_v33 = vmul.f32 %v468_v21, %v954_v39  ;;  %v509_v34 = vmul.f32 %v508_v22, %v956_v40  ;;  %v554_v6 = vld [vmem:[%s1047_s4 + $0x8] sm:$0xff] }
  0xb1   : > { %v443_v11 = vadd.f32 0.4994258, %v442_v5  ;;  %v520_v18 = vmul.f32 %v519_v9, %v956_v40  ;;  %v393_v35 = vmul.f32 %v392_v26, %v929_v19  ;;  %v433_v38 = vmul.f32 %v432_v27, %v931_v20  ;;  %562 = vperm.xlu1 %818, %v554_v6  }
  0xb2   : > { %v405_v12 = vadd.f32 1.0, %v404_v8  ;;  %v481_v31 = vadd.f32 0.112945676, %v480_v17  ;;  %v470_v42 = vadd.f32 0.05243302, %v469_v33  ;;  %v375_v22 = vmul.f32 0.5, %v915_v13 }
  0xb3   : > { %v444_v25 = vmul.f32 %v443_v11, %v931_v20  ;;  %v521_v32 = vadd.f32 0.112945676, %v520_v18  ;;  %v510_v43 = vadd.f32 0.05243302, %v509_v34  ;;  %v394_v45 = vadd.f32 1.1283791, %v393_v35 }
  0xb4   : > { %819 = vrcp.f32 %v405_v12  ;;  %v482_v36 = vmul.f32 %v481_v31, %v954_v39  ;;  %v415_v49 = vand.u32 2147483647, %v405_v12  ;;  %v434_v51 = vadd.f32 1.1283791, %v433_v38 }
  0xb5   : > { %v445_v30 = vadd.f32 1.0, %v444_v25  ;;  %v522_v41 = vmul.f32 %v521_v32, %v956_v40  ;;  %v417_v52 = vand.u32 2147483648, %v405_v12  ;;  %v471_v54 = vmul.f32 %v470_v42, %v954_v39 }
  0xb6   : > { %v483_v46 = vadd.f32 0.4994258, %v482_v36  ;;  %v395_v56 = vmul.f32 %v394_v45, %v920_v15  ;;  %v511_v57 = vmul.f32 %v510_v43, %v956_v40  ;;  %vm411_vm3 = vweird.f32 %v405_v12 }
  0xb7   : > { %821 = vrcp.f32 %v445_v30  ;;  %v523_v47 = vadd.f32 0.4994258, %v522_v41  ;;  %vm416_vm4 = vcmp.eq.f32.partialorder %v415_v49, 8.507059e+37  ;;  %v418_v62 = vor.u32 1.1754944e-38, %v417_v52 }
  0xb8   : > { %v484_v19 = vmul.f32 %v483_v46, %v954_v39  ;;  %v455_v63 = vand.u32 2147483647, %v445_v30  ;;  %v457_v0 = vand.u32 2147483648, %v445_v30  ;;  %v472_v15 = vadd.f32 0.18741608, %v471_v54 }
  0xb9   : > { %v524_v53 = vmul.f32 %v523_v47, %v956_v40  ;;  %vm451_vm7 = vweird.f32 %v445_v30  ;;  %v512_v7 = vadd.f32 0.18741608, %v511_v57  ;;  %v435_v9 = vmul.f32 %v434_v51, %v923_v16 }
  0xba   : > { %v820_v37 = vpop.eup %819  ;;  %v990_v58 = vadd.f32 1.0, %v484_v19  ;;  %v458_v8 = vor.u32 1.1754944e-38, %v457_v0  ;;  %vm456_vm9 = vcmp.eq.f32.partialorder %v455_v63, 8.507059e+37  ;;  %v473_v17 = vmul.f32 %v472_v15, %v954_v39  ;;  %v551_v39 = vld [vmem:[%s1046_s3] sm:$0xff] }
  0xbb   : > { %v407_v44 = vmul.f32 %v820_v37, %v405_v12  ;;  %vm412_vm2 = vweird.f32 %v820_v37  ;;  %v992_v59 = vadd.f32 1.0, %v524_v53  ;;  %v513_v31 = vmul.f32 %v512_v7, %v956_v40 }
  0xbc   : > { %vm413_vm5 = vmor %vm411_vm3, %vm412_vm2  ;;  %823 = vrcp.f32 %v990_v58  ;;  %v474_v35 = vadd.f32 1.1283791, %v473_v17  ;;  %v495_v13 = vand.u32 2147483647, %v990_v58  ;;  %v497_v36 = vand.u32 2147483648, %v990_v58 }
  0xbd   : > { %v408_v48 = vsub.f32 1.0, %v407_v44  ;;  %v822_v50 = vpop.eup %821  ;;  %825 = vrcp.f32 %v992_v59  ;;  %v537_v40 = vand.u32 2147483648, %v992_v59  ;;  %v514_v41 = vadd.f32 1.1283791, %v513_v31 }
  0xbe   : > { %v447_v55 = vmul.f32 %v822_v50, %v445_v30  ;;  %vm452_vm6 = vweird.f32 %v822_v50  ;;  %v376_v30 = vmul.f32 0.5, %v917_v14  ;;  %v535_v43 = vand.u32 2147483647, %v992_v59 }
  0xbf   : > { %v409_v20 = vmul.f32 %v820_v37, %v408_v48  ;;  %vm453_vm8 = vmor %vm451_vm7, %vm452_vm6  ;;  %vm491_vm13 = vweird.f32 %v990_v58  ;;  %v498_v46 = vor.u32 1.1754944e-38, %v497_v36  ;;  %vm531_vm15 = vweird.f32 %v992_v59 }
  0xc0   : > { %v448_v61 = vsub.f32 1.0, %v447_v55  ;;  %v475_v48 = vmul.f32 %v474_v35, %v941_v28  ;;  %vm496_vm0 = vcmp.eq.f32.partialorder %v495_v13, 8.507059e+37  ;;  %v515_v51 = vmul.f32 %v514_v41, %v944_v29  ;;  %v552_v28 = vld [vmem:[%s1046_s3 + $0x8] sm:$0xff] }
  0xc1   : > { %v410_v60 = vadd.f32 %v820_v37, %v409_v20  ;;  %vm536_vm2 = vcmp.eq.f32.partialorder %v535_v43, 8.507059e+37  ;;  %v377_v57 = vmul.f32 0.5, %v933_v23  ;;  %v558_v23 = vpop.permute.xlu0 %557 }
  0xc2   : > { %v449_v2 = vmul.f32 %v822_v50, %v448_v61  ;;  %v824_v12 = vpop.eup %823 }
  0xc3   : > { %v414_v1 = vsel %vm413_vm5, %v820_v37, %v410_v60  ;;  %v826_v21 = vpop.eup %825  ;;  %v487_v27 = vmul.f32 %v824_v12, %v990_v58  ;;  %vm492_vm11 = vweird.f32 %v824_v12  ;;  %v378_v58 = vmul.f32 0.5, %v935_v24 }
  0xc4   : > { %v419_v3 = vsel %vm416_vm4, %v418_v62, %v414_v1  ;;  %v450_v5 = vadd.f32 %v822_v50, %v449_v2  ;;  %v527_v16 = vmul.f32 %v826_v21, %v992_v59  ;;  %vm532_vm12 = vweird.f32 %v826_v21  ;;  %vm493_vm14 = vmor %vm491_vm13, %vm492_vm11 }
  0xc5   : > { %v420_v4 = vmul.f32 %v419_v3, %v395_v56  ;;  %v488_v34 = vsub.f32 1.0, %v487_v27  ;;  %vm533_vm1 = vmor %vm531_vm15, %vm532_vm12 }
  0xc6   : > { %v454_v11 = vsel %vm453_vm8, %v822_v50, %v450_v5  ;;  %v528_v37 = vsub.f32 1.0, %v527_v16  ;;  %v538_v50 = vor.u32 1.1754944e-38, %v537_v40 }
  0xc7   : > { %v776_v10 = vclamps-f32 %v420_v4, 1.0  ;;  %v459_v18 = vsel %vm456_vm9, %v458_v8, %v454_v11  ;;  %v489_v38 = vmul.f32 %v824_v12, %v488_v34 }
  0xc8   : > { %v460_v26 = vmul.f32 %v459_v18, %v435_v9  ;;  %v529_v42 = vmul.f32 %v826_v21, %v528_v37 }
  0xc9   : > { %v543_v25 = vadd.f32 1.0, %v776_v10  ;;  %v490_v45 = vadd.f32 %v824_v12, %v489_v38 }
  0xca   : > { %v777_v33 = vclamps-f32 %v460_v26, 1.0  ;;  %v530_v47 = vadd.f32 %v826_v21, %v529_v42 }
  0xcb   : > { %v547_v32 = vmul.f32 %v543_v25, %v375_v22  ;;  %v494_v49 = vsel %vm493_vm14, %v824_v12, %v490_v45 }
  0xcc   : > { %v544_v14 = vadd.f32 1.0, %v777_v33  ;;  %v499_v52 = vsel %vm496_vm0, %v498_v46, %v494_v49  ;;  %v534_v19 = vsel %vm533_vm1, %v826_v21, %v530_v47 }
  0xcd   : > { %587 = vmatpush.msrb.mxu0 %v547_v32  ;;  %v500_v53 = vmul.f32 %v499_v52, %v475_v48  ;;  %v539_v54 = vsel %vm536_vm2, %v538_v50, %v534_v19 }
  0xce   : > { %780 = vmatmul.msk.f32.vlgmr.msrb.gmra.mxu0 %vm565_vm10, %v551_v39  ;;  %v548_v44 = vmul.f32 %v544_v14, %v376_v30  ;;  %v540_v20 = vmul.f32 %v539_v54, %v515_v51 }
  0xcf   : > { %v778_v55 = vclamps-f32 %v500_v53, 1.0 }
  0xd0   : > { %610 = vmatpush.msrb.mxu1 %v548_v44  ;;  %v779_v56 = vclamps-f32 %v540_v20, 1.0 }
  0xd1   : > { %782 = vmatmul.msk.f32.vlgmr.msrb.gmra.mxu1 %vm565_vm10, %v551_v39  ;;  %v545_v29 = vadd.f32 1.0, %v778_v55 }
  0xd2   : > { %v546_v59 = vadd.f32 1.0, %v779_v56 }
  0xd3   : > { %v549_v60 = vmul.f32 %v545_v29, %v377_v57 }
  0xd4   : > { %v550_v61 = vmul.f32 %v546_v59, %v378_v58 }
  0xd5   : > { %633 = vmatpush.msrb.mxu2 %v549_v60 }
  0xd6   : > { %781 = vmatmul.msk.f32.gmra.mxu0 %vm565_vm10, %v552_v28  ;;  %656 = vmatpush.msrb.mxu3 %v550_v61 }
  0xd7   : > { %784 = vmatmul.msk.f32.vlgmr.msrb.gmra.mxu2 %vm565_vm10, %v551_v39  ;;  %786 = vmatmul.msk.f32.vlgmr.msrb.gmra.mxu3 %vm565_vm10, %v551_v39 }
  0xd9   : > { %783 = vmatmul.msk.f32.gmra.mxu1 %vm565_vm10, %v552_v28 }
  0xdf   : > { %785 = vmatmul.msk.f32.gmra.mxu2 %vm565_vm10, %v552_v28  ;;  %787 = vmatmul.msk.f32.gmra.mxu3 %vm565_vm10, %v552_v28 }
 0x123   : > { %v563_v1 = vpop.permute.xlu1 %562 }
 0x14b   : > { %v589_v24 = vpop.f32.mrf.mxu0 }
 0x14c   : > { %v590_v62 = vadd.f32 %v589_v24, %v558_v23 }
 0x14e   : > { %664 = vst [vmem:[%s262_s16] sm:$0xff] %v590_v62  ;;  %v612_v63 = vpop.f32.mrf.mxu1 }
 0x14f   : > { %v613_v0 = vadd.f32 %v612_v63, %v558_v23 }
 0x151   : > { %665 = vst [vmem:[%s262_s16 + $0x8] sm:$0xff] %v613_v0 }
 0x153   : > { %v592_v2 = vpop.f32.mrf.mxu0 }
 0x154   : > { %v593_v15 = vadd.f32 %v592_v2, %v563_v1 }
 0x156   : > { %668 = vst [vmem:[%s262_s16 + $0x20] sm:$0xff] %v593_v15  ;;  %v615_v3 = vpop.f32.mrf.mxu1 }
 0x157   : > { %v616_v4 = vadd.f32 %v615_v3, %v563_v1 }
 0x159   : > { %669 = vst [vmem:[%s262_s16 + $0x28] sm:$0xff] %v616_v4 }
 0x15a   : > { %v635_v5 = vpop.f32.mrf.mxu2  ;;  %v658_v7 = vpop.f32.mrf.mxu3 }
 0x15b   : > { %v636_v6 = vadd.f32 %v635_v5, %v558_v23  ;;  %v659_v8 = vadd.f32 %v658_v7, %v558_v23 }
 0x15d   : > { %666 = vst [vmem:[%s262_s16 + $0x10] sm:$0xff] %v636_v6 }
 0x15e   : > { %667 = vst [vmem:[%s262_s16 + $0x18] sm:$0xff] %v659_v8 }
 0x162   : > { %v638_v9 = vpop.f32.mrf.mxu2  ;;  %v661_v11 = vpop.f32.mrf.mxu3 }
 0x163   : > { %v639_v10 = vadd.f32 %v638_v9, %v563_v1  ;;  %v662_v12 = vadd.f32 %v661_v11, %v563_v1 }
 0x165   : > { %670 = vst [vmem:[%s262_s16 + $0x30] sm:$0xff] %v639_v10 }
 0x166   : > { %671 = vst [vmem:[%s262_s16 + $0x38] sm:$0xff] %v662_v12 }
 0x167 PF: > { %s15_s20 = sadd.s32 1, %s849_s20   ;;  %s1049_s18 = smov %s845_s19 }
 0x168   : > { %p12_p5 = scmp.ge.s32.totalorder %s15_s20, 4   ;;  %s1050_s19 = smov %s1052_s21 }
 0x16a   :  { %14 = sbr.rel (!%p12_p5) target bundleno = 2 (0x2), region = 71 }

// kernel: fno3d_encoder_forward.6
= control target key start
LH: loop header
LB: loop body
LE: loop exit
PB: predicated region body
PF: predicated region fallthrough
CT: control target
= control target key end

     0   :  { %s1341_s9 = smov 0   ;;  %s1343_s10 = smov 0   ;;  %s1891_s0 = inlined_call_operand.vmem [shape: f32[2,2,16,256], index: 0, kind: input, shape index: {}]   ;;  %s1892_s1 = inlined_call_operand.vmem [shape: f32[2,16,16,256], index: 1, kind: input, shape index: {}]   ;;  %s1893_s2 = inlined_call_operand.vmem [shape: f32[2,2,16,256], index: 2, kind: output, shape index: {}]  }
   0x1   :  { %s1345_s11 = smov 0   ;;  %s1347_s12 = smov 0  }
   0x2   :  { %s1349_s13 = smov 0  }
   0x3 LB: > { %s21_s14 = sadd.s32 1, %s1320_s12  ;;  %s1096_s15 = sadd.s32 4294967295, %s1324_s13   ;;  %s1324_s13 = sphi %s1349_s13, %s12_s13   ;;  %s1320_s12 = sphi %s1347_s12, %s1898_s12   ;;  %s1316_s11 = sphi %s1345_s11, %s1897_s11   ;;  %s1312_s10 = sphi %s1343_s10, %s1896_s10   ;;  %s1308_s9 = sphi %s1341_s9, %s1895_s9  }
   0x4   : > { %p22_p0 = scmp.ge.s32.totalorder %s21_s14, 2  ;;  %p40_p1 = scmp.ne.s32.totalorder %s1312_s10, %s1308_s9 }
   0x5   : > { %p41_p2 = scmp.eq.s32.totalorder %s1324_s13, 0  ;;  %p98_p4 = scmp.eq.s32.totalorder %s1096_s15, 1 }
   0x6   : > { %s1900_s14 = smov (%p22_p0, %s21_s14), 0  ;;  %s33_s17 = sadd.s32 1, %s1312_s10 }
   0x7   : > { %p42_p3 = por %p41_p2, %p40_p1  ;;  %s28_s16 = ssub.s32 %s1320_s12, %s1900_s14 }
   0x8   : > { %p31_p5 = scmp.eq.s32.totalorder %s28_s16, 0  ;;  %p1376_p6 = por %p98_p4, %p40_p1 }
   0x9   : > { %p1100_p7 = scmp.ge.s32.totalorder %s1324_s13, 2 }
   0xa   : > { %s1381_s19 = scalar_select %p31_p5, %s1312_s10, %s33_s17  }
   0xb   : > { %129 = sbr.rel (%p1100_p7) target bundleno = 28 (0x1c), region = 20 }
  0x10   : > { %132 = sbr.rel (!%p42_p3) target bundleno = 28 (0x1c), region = 24  ;;  %s134_s20 = sand.u32 (%p42_p3), 1, %s1312_s10  }
  0x11   : > { %s1244_s21 = sshll.u32 (%p42_p3), %s1320_s12, 5  ;;  %s1101_s22 = sshll.u32 (%p42_p3), %s134_s20, 6 }
  0x12   : > { %s141_s25 = scalar_lea.vmem (%p42_p3), %s1891_s0, %s1244_s21  ;;  %s136_s26 = scalar_lea.vmem (%p42_p3), [#allocation2], %s1101_s22 }
  0x13   : > { %v154_v0 = vld [vmem:[%s141_s25] sm:$0xff] (%p42_p3)  ;;  %v156_v1 = vld [vmem:[%s141_s25 + $0x8] sm:$0xff] (%p42_p3)  ;;  %v158_v2 = vld [vmem:[%s141_s25 + $0x10] sm:$0xff] (%p42_p3) }
  0x14   : > { %155 = vst [vmem:[%s136_s26] sm:$0xff] (%p42_p3), %v154_v0  ;;  %v160_v3 = vld [vmem:[%s141_s25 + $0x18] sm:$0xff] (%p42_p3)  ;;  %v162_v4 = vld [vmem:[%s141_s25 + $0x40] sm:$0xff] (%p42_p3)  ;;  %v164_v5 = vld [vmem:[%s141_s25 + $0x48] sm:$0xff] (%p42_p3) }
  0x15   : > { %157 = vst [vmem:[%s136_s26 + $0x8] sm:$0xff] %v156_v1  ;;  %v166_v6 = vld [vmem:[%s141_s25 + $0x50] sm:$0xff]  ;;  %v168_v7 = vld [vmem:[%s141_s25 + $0x58] sm:$0xff] }
  0x16   : > { %159 = vst [vmem:[%s136_s26 + $0x10] sm:$0xff] %v158_v2 }
  0x17   : > { %161 = vst [vmem:[%s136_s26 + $0x18] sm:$0xff] %v160_v3 }
  0x18   : > { %163 = vst [vmem:[%s136_s26 + $0x20] sm:$0xff] %v162_v4 }
  0x19   : > { %165 = vst [vmem:[%s136_s26 + $0x28] sm:$0xff] %v164_v5 }
  0x1a   : > { %167 = vst [vmem:[%s136_s26 + $0x30] sm:$0xff] %v166_v6 }
  0x1b   : > { %169 = vst [vmem:[%s136_s26 + $0x38] sm:$0xff] %v168_v7 }
  0x1c PF: > { %p1104_p8 = scmp.ge.s32.totalorder %s1324_s13, 1  ;;  %p174_p9 = scmp.lt.s32.totalorder %s1324_s13, 3 }
  0x1e   : > { %p175_p10 = pnand %p1104_p8, %p174_p9 }
  0x1f   : > { %s181_s27 = sand.u32 (!%p175_p10), 1, %s1308_s9  }
  0x20   : > { %178 = sbr.rel (%p175_p10) target bundleno = 198 (0xc6), region = 47  ;;  %s1392_s28 = sshll.u32 (!%p175_p10), %s181_s27, 6 }
  0x21   : > { %s1413_s20 = scalar_lea.vmem (!%p175_p10), [#allocation2], %s1392_s28  ;;  %s205_s4 = scalar_lea.vmem (!%p175_p10), [#allocation3], %s1392_s28 }
  0x25   : > { %v223_v8 = vld [vmem:[%s1892_s1] sm:$0xff]  ;;  %v224_v9 = vld [vmem:[%s1892_s1 + $0x8] sm:$0xff]  ;;  %v225_v10 = vld [vmem:[%s1892_s1 + $0x10] sm:$0xff]  ;;  %s1245_s5 = sshll.u32 (%p1376_p6), %s1316_s11, 5 }
  0x26   : > { %v226_v11 = vld [vmem:[%s1892_s1 + $0x18] sm:$0xff]  ;;  %v1111_v12 = vld [vmem:[%s1892_s1 + $0x200] sm:$0xff]  ;;  %v1112_v13 = vld [vmem:[%s1892_s1 + $0x208] sm:$0xff]  ;;  %s978_s7 = scalar_lea.vmem (%p1376_p6), %s1893_s2, %s1245_s5 }
  0x27   : > { %v1416_v14 = vld [vmem:[%s1413_s20] sm:$0xff]  ;;  %v1419_v15 = vld [vmem:[%s1413_s20 + $0x8] sm:$0xff]  ;;  %v1113_v16 = vld [vmem:[%s1892_s1 + $0x210] sm:$0xff] }
  0x28   : > { %v1425_v17 = vld [vmem:[%s1413_s20 + $0x20] sm:$0xff]  ;;  %v1428_v18 = vld [vmem:[%s1413_s20 + $0x28] sm:$0xff]  ;;  %v1114_v19 = vld [vmem:[%s1892_s1 + $0x218] sm:$0xff]  ;;  %v232_v20 = vperm.slane %v1416_v14, 0  ;;  %v233_v21 = vperm.slane %v1419_v15, 0  ;;  %v278_v24 = vperm.slane %v1416_v14, 1 }
  0x29   : > { %v242_v22 = vperm.slane %v1425_v17, 0  ;;  %v243_v23 = vperm.slane %v1428_v18, 0  ;;  %v279_v25 = vperm.slane %v1419_v15, 1  ;;  %v1115_v34 = vld [vmem:[%s1892_s1 + $0x20] sm:$0xff]  ;;  %v1116_v39 = vld [vmem:[%s1892_s1 + $0x28] sm:$0xff]  ;;  %v1117_v40 = vld [vmem:[%s1892_s1 + $0x30] sm:$0xff] }
  0x2a   : > { %v234_v26 = vmul.f32 %v232_v20, %v223_v8  ;;  %v235_v27 = vmul.f32 %v233_v21, %v224_v9  ;;  %v236_v28 = vmul.f32 %v232_v20, %v225_v10  ;;  %v237_v29 = vmul.f32 %v233_v21, %v226_v11  ;;  %v1118_v41 = vld [vmem:[%s1892_s1 + $0x38] sm:$0xff]  ;;  %v1119_v50 = vld [vmem:[%s1892_s1 + $0x220] sm:$0xff]  ;;  %v1120_v51 = vld [vmem:[%s1892_s1 + $0x228] sm:$0xff] }
  0x2b   : > { %v244_v30 = vmul.f32 %v1111_v12, %v242_v22  ;;  %v245_v31 = vmul.f32 %v1112_v13, %v243_v23  ;;  %v246_v32 = vmul.f32 %v1113_v16, %v242_v22  ;;  %v247_v33 = vmul.f32 %v1114_v19, %v243_v23  ;;  %v1121_v60 = vld [vmem:[%s1892_s1 + $0x230] sm:$0xff]  ;;  %v1122_v61 = vld [vmem:[%s1892_s1 + $0x238] sm:$0xff] }
  0x2c   : > { %v252_v35 = vmul.f32 %v1111_v12, %v232_v20  ;;  %v253_v36 = vmul.f32 %v1112_v13, %v233_v21  ;;  %v254_v37 = vmul.f32 %v1113_v16, %v232_v20  ;;  %v255_v38 = vmul.f32 %v1114_v19, %v233_v21  ;;  %v1123_v16 = vld [vmem:[%s1892_s1 + $0x40] sm:$0xff] }
  0x2d   : > { %v248_v42 = vsub.f32 %v234_v26, %v244_v30  ;;  %v249_v43 = vsub.f32 %v235_v27, %v245_v31  ;;  %v250_v44 = vsub.f32 %v236_v28, %v246_v32  ;;  %v251_v45 = vsub.f32 %v237_v29, %v247_v33 }
  0x2e   : > { %v260_v46 = vmul.f32 %v242_v22, %v223_v8  ;;  %v261_v47 = vmul.f32 %v243_v23, %v224_v9  ;;  %v262_v48 = vmul.f32 %v242_v22, %v225_v10  ;;  %v263_v49 = vmul.f32 %v243_v23, %v226_v11  ;;  %v1124_v23 = vld [vmem:[%s1892_s1 + $0x48] sm:$0xff] }
  0x2f   : > { %v280_v52 = vmul.f32 %v1115_v34, %v278_v24  ;;  %v281_v53 = vmul.f32 %v1116_v39, %v279_v25  ;;  %v282_v54 = vmul.f32 %v1117_v40, %v278_v24  ;;  %v283_v55 = vmul.f32 %v1118_v41, %v279_v25 }
  0x30   : > { %v264_v56 = vadd.f32 %v260_v46, %v252_v35  ;;  %v265_v57 = vadd.f32 %v261_v47, %v253_v36  ;;  %v266_v58 = vadd.f32 %v262_v48, %v254_v37  ;;  %v267_v59 = vadd.f32 %v263_v49, %v255_v38  ;;  %v1127_v35 = vld [vmem:[%s1892_s1 + $0x240] sm:$0xff]  ;;  %v1128_v36 = vld [vmem:[%s1892_s1 + $0x248] sm:$0xff] }
  0x31   : > { %v284_v62 = vadd.f32 %v280_v52, %v248_v42  ;;  %v285_v63 = vadd.f32 %v281_v53, %v249_v43  ;;  %v286_v0 = vadd.f32 %v282_v54, %v250_v44  ;;  %v287_v1 = vadd.f32 %v283_v55, %v251_v45 }
  0x32   : > { %v288_v2 = vperm.slane %v1425_v17, 1  ;;  %v289_v3 = vperm.slane %v1428_v18, 1  ;;  %v298_v4 = vmul.f32 %v1119_v50, %v278_v24  ;;  %v299_v5 = vmul.f32 %v1120_v51, %v279_v25 }
  0x33   : > { %v300_v6 = vmul.f32 %v1121_v60, %v278_v24  ;;  %v301_v7 = vmul.f32 %v1122_v61, %v279_v25  ;;  %v324_v8 = vperm.slane %v1416_v14, 2  ;;  %v325_v9 = vperm.slane %v1419_v15, 2  ;;  %v1125_v24 = vld [vmem:[%s1892_s1 + $0x50] sm:$0xff]  ;;  %v1126_v25 = vld [vmem:[%s1892_s1 + $0x58] sm:$0xff] }
  0x34   : > { %v290_v10 = vmul.f32 %v1119_v50, %v288_v2  ;;  %v291_v11 = vmul.f32 %v1120_v51, %v289_v3  ;;  %v292_v12 = vmul.f32 %v1121_v60, %v288_v2  ;;  %v293_v13 = vmul.f32 %v1122_v61, %v289_v3 }
  0x35   : > { %v302_v19 = vadd.f32 %v298_v4, %v264_v56  ;;  %v303_v20 = vadd.f32 %v299_v5, %v265_v57  ;;  %v304_v21 = vadd.f32 %v300_v6, %v266_v58  ;;  %v305_v22 = vadd.f32 %v301_v7, %v267_v59  ;;  %v1133_v4 = vld [vmem:[%s1892_s1 + $0x70] sm:$0xff]  ;;  %v1134_v5 = vld [vmem:[%s1892_s1 + $0x78] sm:$0xff] }
  0x36   : > { %v294_v26 = vsub.f32 %v284_v62, %v290_v10  ;;  %v295_v27 = vsub.f32 %v285_v63, %v291_v11  ;;  %v296_v28 = vsub.f32 %v286_v0, %v292_v12  ;;  %v297_v29 = vsub.f32 %v287_v1, %v293_v13  ;;  %v1131_v62 = vld [vmem:[%s1892_s1 + $0x60] sm:$0xff] }
  0x37   : > { %v306_v30 = vmul.f32 %v1115_v34, %v288_v2  ;;  %v307_v31 = vmul.f32 %v1116_v39, %v289_v3  ;;  %v308_v32 = vmul.f32 %v1117_v40, %v288_v2  ;;  %v309_v33 = vmul.f32 %v1118_v41, %v289_v3  ;;  %v1129_v34 = vld [vmem:[%s1892_s1 + $0x250] sm:$0xff]  ;;  %v1130_v39 = vld [vmem:[%s1892_s1 + $0x258] sm:$0xff]  ;;  %v1132_v3 = vld [vmem:[%s1892_s1 + $0x68] sm:$0xff] }
  0x38   : > { %v326_v37 = vmul.f32 %v1123_v16, %v324_v8  ;;  %v327_v38 = vmul.f32 %v1124_v23, %v325_v9  ;;  %v328_v42 = vmul.f32 %v1125_v24, %v324_v8  ;;  %v329_v43 = vmul.f32 %v1126_v25, %v325_v9 }
  0x39   : > { %v310_v44 = vadd.f32 %v306_v30, %v302_v19  ;;  %v311_v45 = vadd.f32 %v307_v31, %v303_v20  ;;  %v312_v46 = vadd.f32 %v308_v32, %v304_v21  ;;  %v313_v47 = vadd.f32 %v309_v33, %v305_v22  ;;  %v1135_v19 = vld [vmem:[%s1892_s1 + $0x260] sm:$0xff]  ;;  %v1136_v20 = vld [vmem:[%s1892_s1 + $0x268] sm:$0xff] }
  0x3a   : > { %v330_v40 = vadd.f32 %v326_v37, %v294_v26  ;;  %v331_v41 = vadd.f32 %v327_v38, %v295_v27  ;;  %v332_v48 = vadd.f32 %v328_v42, %v296_v28  ;;  %v333_v49 = vadd.f32 %v329_v43, %v297_v29 }
  0x3b   : > { %v334_v50 = vperm.slane %v1425_v17, 2  ;;  %v335_v51 = vperm.slane %v1428_v18, 2  ;;  %v344_v52 = vmul.f32 %v1127_v35, %v324_v8  ;;  %v345_v53 = vmul.f32 %v1128_v36, %v325_v9 }
  0x3c   : > { %v346_v54 = vmul.f32 %v1129_v34, %v324_v8  ;;  %v347_v55 = vmul.f32 %v1130_v39, %v325_v9  ;;  %v370_v56 = vperm.slane %v1416_v14, 3  ;;  %v371_v57 = vperm.slane %v1419_v15, 3 }
  0x3d   : > { %v336_v58 = vmul.f32 %v1127_v35, %v334_v50  ;;  %v337_v59 = vmul.f32 %v1128_v36, %v335_v51  ;;  %v338_v60 = vmul.f32 %v1129_v34, %v334_v50  ;;  %v339_v61 = vmul.f32 %v1130_v39, %v335_v51 }
  0x3e   : > { %v348_v63 = vadd.f32 %v344_v52, %v310_v44  ;;  %v349_v0 = vadd.f32 %v345_v53, %v311_v45  ;;  %v350_v1 = vadd.f32 %v346_v54, %v312_v46  ;;  %v351_v2 = vadd.f32 %v347_v55, %v313_v47  ;;  %v1141_v52 = vld [vmem:[%s1892_s1 + $0x90] sm:$0xff]  ;;  %v1142_v53 = vld [vmem:[%s1892_s1 + $0x98] sm:$0xff] }
  0x3f   : > { %v340_v6 = vsub.f32 %v330_v40, %v336_v58  ;;  %v341_v7 = vsub.f32 %v331_v41, %v337_v59  ;;  %v342_v8 = vsub.f32 %v332_v48, %v338_v60  ;;  %v343_v9 = vsub.f32 %v333_v49, %v339_v61  ;;  %v1139_v40 = vld [vmem:[%s1892_s1 + $0x80] sm:$0xff] }
  0x40   : > { %v352_v10 = vmul.f32 %v1123_v16, %v334_v50  ;;  %v353_v11 = vmul.f32 %v1124_v23, %v335_v51  ;;  %v354_v12 = vmul.f32 %v1125_v24, %v334_v50  ;;  %v355_v13 = vmul.f32 %v1126_v25, %v335_v51  ;;  %v1137_v16 = vld [vmem:[%s1892_s1 + $0x270] sm:$0xff]  ;;  %v1138_v23 = vld [vmem:[%s1892_s1 + $0x278] sm:$0xff]  ;;  %v1140_v51 = vld [vmem:[%s1892_s1 + $0x88] sm:$0xff] }
  0x41   : > { %v372_v21 = vmul.f32 %v1131_v62, %v370_v56  ;;  %v373_v22 = vmul.f32 %v1132_v3, %v371_v57  ;;  %v374_v26 = vmul.f32 %v1133_v4, %v370_v56  ;;  %v375_v27 = vmul.f32 %v1134_v5, %v371_v57 }
  0x42   : > { %v356_v28 = vadd.f32 %v352_v10, %v348_v63  ;;  %v357_v29 = vadd.f32 %v353_v11, %v349_v0  ;;  %v358_v30 = vadd.f32 %v354_v12, %v350_v1  ;;  %v359_v31 = vadd.f32 %v355_v13, %v351_v2  ;;  %v1143_v63 = vld [vmem:[%s1892_s1 + $0x280] sm:$0xff]  ;;  %v1144_v0 = vld [vmem:[%s1892_s1 + $0x288] sm:$0xff] }
  0x43   : > { %v376_v24 = vadd.f32 %v372_v21, %v340_v6  ;;  %v377_v25 = vadd.f32 %v373_v22, %v341_v7  ;;  %v378_v32 = vadd.f32 %v374_v26, %v342_v8  ;;  %v379_v33 = vadd.f32 %v375_v27, %v343_v9 }
  0x44   : > { %v380_v35 = vperm.slane %v1425_v17, 3  ;;  %v381_v36 = vperm.slane %v1428_v18, 3  ;;  %v390_v37 = vmul.f32 %v1135_v19, %v370_v56  ;;  %v391_v38 = vmul.f32 %v1136_v20, %v371_v57 }
  0x45   : > { %v392_v42 = vmul.f32 %v1137_v16, %v370_v56  ;;  %v393_v43 = vmul.f32 %v1138_v23, %v371_v57  ;;  %v416_v44 = vperm.slane %v1416_v14, 4  ;;  %v417_v45 = vperm.slane %v1419_v15, 4 }
  0x46   : > { %v382_v46 = vmul.f32 %v1135_v19, %v380_v35  ;;  %v383_v47 = vmul.f32 %v1136_v20, %v381_v36  ;;  %v384_v34 = vmul.f32 %v1137_v16, %v380_v35  ;;  %v385_v39 = vmul.f32 %v1138_v23, %v381_v36 }
  0x47   : > { %v394_v41 = vadd.f32 %v390_v37, %v356_v28  ;;  %v395_v48 = vadd.f32 %v391_v38, %v357_v29  ;;  %v396_v49 = vadd.f32 %v392_v42, %v358_v30  ;;  %v397_v50 = vadd.f32 %v393_v43, %v359_v31  ;;  %v1149_v37 = vld [vmem:[%s1892_s1 + $0xb0] sm:$0xff]  ;;  %v1150_v38 = vld [vmem:[%s1892_s1 + $0xb8] sm:$0xff] }
  0x48   : > { %v386_v54 = vsub.f32 %v376_v24, %v382_v46  ;;  %v387_v55 = vsub.f32 %v377_v25, %v383_v47  ;;  %v388_v56 = vsub.f32 %v378_v32, %v384_v34  ;;  %v389_v57 = vsub.f32 %v379_v33, %v385_v39  ;;  %v1147_v24 = vld [vmem:[%s1892_s1 + $0xa0] sm:$0xff] }
  0x49   : > { %v398_v58 = vmul.f32 %v1131_v62, %v380_v35  ;;  %v399_v59 = vmul.f32 %v1132_v3, %v381_v36  ;;  %v400_v60 = vmul.f32 %v1133_v4, %v380_v35  ;;  %v401_v61 = vmul.f32 %v1134_v5, %v381_v36  ;;  %v1145_v62 = vld [vmem:[%s1892_s1 + $0x290] sm:$0xff]  ;;  %v1146_v3 = vld [vmem:[%s1892_s1 + $0x298] sm:$0xff]  ;;  %v1148_v36 = vld [vmem:[%s1892_s1 + $0xa8] sm:$0xff] }
  0x4a   : > { %v418_v1 = vmul.f32 %v1139_v40, %v416_v44  ;;  %v419_v2 = vmul.f32 %v1140_v51, %v417_v45  ;;  %v420_v6 = vmul.f32 %v1141_v52, %v416_v44  ;;  %v421_v7 = vmul.f32 %v1142_v53, %v417_v45 }
  0x4b   : > { %v402_v8 = vadd.f32 %v398_v58, %v394_v41  ;;  %v403_v9 = vadd.f32 %v399_v59, %v395_v48  ;;  %v404_v10 = vadd.f32 %v400_v60, %v396_v49  ;;  %v405_v11 = vadd.f32 %v401_v61, %v397_v50  ;;  %v1151_v41 = vld [vmem:[%s1892_s1 + $0x2a0] sm:$0xff]  ;;  %v1152_v48 = vld [vmem:[%s1892_s1 + $0x2a8] sm:$0xff] }
  0x4c   : > { %v422_v4 = vadd.f32 %v418_v1, %v386_v54  ;;  %v423_v5 = vadd.f32 %v419_v2, %v387_v55  ;;  %v424_v12 = vadd.f32 %v420_v6, %v388_v56  ;;  %v425_v13 = vadd.f32 %v421_v7, %v389_v57 }
  0x4d   : > { %v426_v19 = vperm.slane %v1425_v17, 4  ;;  %v427_v20 = vperm.slane %v1428_v18, 4  ;;  %v436_v21 = vmul.f32 %v1143_v63, %v416_v44  ;;  %v437_v22 = vmul.f32 %v1144_v0, %v417_v45 }
  0x4e   : > { %v438_v26 = vmul.f32 %v1145_v62, %v416_v44  ;;  %v439_v27 = vmul.f32 %v1146_v3, %v417_v45  ;;  %v462_v28 = vperm.slane %v1416_v14, 5  ;;  %v463_v29 = vperm.slane %v1419_v15, 5 }
  0x4f   : > { %v428_v30 = vmul.f32 %v1143_v63, %v426_v19  ;;  %v429_v31 = vmul.f32 %v1144_v0, %v427_v20  ;;  %v430_v16 = vmul.f32 %v1145_v62, %v426_v19  ;;  %v431_v23 = vmul.f32 %v1146_v3, %v427_v20 }
  0x50   : > { %v440_v25 = vadd.f32 %v436_v21, %v402_v8  ;;  %v441_v32 = vadd.f32 %v437_v22, %v403_v9  ;;  %v442_v33 = vadd.f32 %v438_v26, %v404_v10  ;;  %v443_v35 = vadd.f32 %v439_v27, %v405_v11  ;;  %v1157_v21 = vld [vmem:[%s1892_s1 + $0xd0] sm:$0xff]  ;;  %v1158_v22 = vld [vmem:[%s1892_s1 + $0xd8] sm:$0xff] }
  0x51   : > { %v432_v42 = vsub.f32 %v422_v4, %v428_v30  ;;  %v433_v43 = vsub.f32 %v423_v5, %v429_v31  ;;  %v434_v44 = vsub.f32 %v424_v12, %v430_v16  ;;  %v435_v45 = vsub.f32 %v425_v13, %v431_v23  ;;  %v1155_v4 = vld [vmem:[%s1892_s1 + $0xc0] sm:$0xff] }
  0x52   : > { %v444_v46 = vmul.f32 %v1139_v40, %v426_v19  ;;  %v445_v47 = vmul.f32 %v1140_v51, %v427_v20  ;;  %v446_v34 = vmul.f32 %v1141_v52, %v426_v19  ;;  %v447_v39 = vmul.f32 %v1142_v53, %v427_v20  ;;  %v1153_v40 = vld [vmem:[%s1892_s1 + $0x2b0] sm:$0xff]  ;;  %v1154_v51 = vld [vmem:[%s1892_s1 + $0x2b8] sm:$0xff]  ;;  %v1156_v20 = vld [vmem:[%s1892_s1 + $0xc8] sm:$0xff] }
  0x53   : > { %v464_v49 = vmul.f32 %v1147_v24, %v462_v28  ;;  %v465_v50 = vmul.f32 %v1148_v36, %v463_v29  ;;  %v466_v54 = vmul.f32 %v1149_v37, %v462_v28  ;;  %v467_v55 = vmul.f32 %v1150_v38, %v463_v29 }
  0x54   : > { %v448_v56 = vadd.f32 %v444_v46, %v440_v25  ;;  %v449_v57 = vadd.f32 %v445_v47, %v441_v32  ;;  %v450_v58 = vadd.f32 %v446_v34, %v442_v33  ;;  %v451_v59 = vadd.f32 %v447_v39, %v443_v35  ;;  %v1159_v25 = vld [vmem:[%s1892_s1 + $0x2c0] sm:$0xff]  ;;  %v1160_v32 = vld [vmem:[%s1892_s1 + $0x2c8] sm:$0xff] }
  0x55   : > { %v468_v52 = vadd.f32 %v464_v49, %v432_v42  ;;  %v469_v53 = vadd.f32 %v465_v50, %v433_v43  ;;  %v470_v60 = vadd.f32 %v466_v54, %v434_v44  ;;  %v471_v61 = vadd.f32 %v467_v55, %v435_v45 }
  0x56   : > { %v472_v63 = vperm.slane %v1425_v17, 5  ;;  %v473_v0 = vperm.slane %v1428_v18, 5  ;;  %v482_v1 = vmul.f32 %v1151_v41, %v462_v28  ;;  %v483_v2 = vmul.f32 %v1152_v48, %v463_v29 }
  0x57   : > { %v484_v6 = vmul.f32 %v1153_v40, %v462_v28  ;;  %v485_v7 = vmul.f32 %v1154_v51, %v463_v29  ;;  %v508_v8 = vperm.slane %v1416_v14, 6  ;;  %v509_v9 = vperm.slane %v1419_v15, 6 }
  0x58   : > { %v474_v10 = vmul.f32 %v1151_v41, %v472_v63  ;;  %v475_v11 = vmul.f32 %v1152_v48, %v473_v0  ;;  %v476_v62 = vmul.f32 %v1153_v40, %v472_v63  ;;  %v477_v3 = vmul.f32 %v1154_v51, %v473_v0 }
  0x59   : > { %v486_v5 = vadd.f32 %v482_v1, %v448_v56  ;;  %v487_v12 = vadd.f32 %v483_v2, %v449_v57  ;;  %v488_v13 = vadd.f32 %v484_v6, %v450_v58  ;;  %v489_v19 = vadd.f32 %v485_v7, %v451_v59 }
  0x5a   : > { %v478_v26 = vsub.f32 %v468_v52, %v474_v10  ;;  %v479_v27 = vsub.f32 %v469_v53, %v475_v11  ;;  %v480_v28 = vsub.f32 %v470_v60, %v476_v62  ;;  %v481_v29 = vsub.f32 %v471_v61, %v477_v3  ;;  %v1163_v52 = vld [vmem:[%s1892_s1 + $0xe0] sm:$0xff]  ;;  %v1620_v62 = vld [vmem:[%s1413_s20 + $0x10] sm:$0xff] }
  0x5b   : > { %v490_v30 = vmul.f32 %v1147_v24, %v472_v63  ;;  %v491_v31 = vmul.f32 %v1148_v36, %v473_v0  ;;  %v492_v16 = vmul.f32 %v1149_v37, %v472_v63  ;;  %v493_v23 = vmul.f32 %v1150_v38, %v473_v0  ;;  %v1161_v24 = vld [vmem:[%s1892_s1 + $0x2d0] sm:$0xff]  ;;  %v1162_v36 = vld [vmem:[%s1892_s1 + $0x2d8] sm:$0xff]  ;;  %v1164_v0 = vld [vmem:[%s1892_s1 + $0xe8] sm:$0xff] }
  0x5c   : > { %v510_v33 = vmul.f32 %v1155_v4, %v508_v8  ;;  %v511_v35 = vmul.f32 %v1156_v20, %v509_v9  ;;  %v512_v42 = vmul.f32 %v1157_v21, %v508_v8  ;;  %v513_v43 = vmul.f32 %v1158_v22, %v509_v9  ;;  %v1167_v3 = vld [vmem:[%s1892_s1 + $0x2e0] sm:$0xff] }
  0x5d   : > { %v494_v44 = vadd.f32 %v490_v30, %v486_v5  ;;  %v495_v45 = vadd.f32 %v491_v31, %v487_v12  ;;  %v496_v46 = vadd.f32 %v492_v16, %v488_v13  ;;  %v497_v47 = vadd.f32 %v493_v23, %v489_v19  ;;  %v1168_v5 = vld [vmem:[%s1892_s1 + $0x2e8] sm:$0xff] }
  0x5e   : > { %v514_v37 = vadd.f32 %v510_v33, %v478_v26  ;;  %v515_v38 = vadd.f32 %v511_v35, %v479_v27  ;;  %v516_v34 = vadd.f32 %v512_v42, %v480_v28  ;;  %v517_v39 = vadd.f32 %v513_v43, %v481_v29  ;;  %v1629_v27 = vld [vmem:[%s1413_s20 + $0x18] sm:$0xff]  ;;  %v1169_v28 = vld [vmem:[%s1892_s1 + $0x2f0] sm:$0xff] }
  0x5f   : > { %v518_v41 = vperm.slane %v1425_v17, 6  ;;  %v519_v48 = vperm.slane %v1428_v18, 6  ;;  %v528_v49 = vmul.f32 %v1159_v25, %v508_v8  ;;  %v529_v50 = vmul.f32 %v1160_v32, %v509_v9  ;;  %v1170_v29 = vld [vmem:[%s1892_s1 + $0x2f8] sm:$0xff] }
  0x60   : > { %v530_v54 = vmul.f32 %v1161_v24, %v508_v8  ;;  %v531_v55 = vmul.f32 %v1162_v36, %v509_v9  ;;  %v554_v56 = vperm.slane %v1416_v14, 7  ;;  %v555_v57 = vperm.slane %v1419_v15, 7  ;;  %v1165_v14 = vld [vmem:[%s1892_s1 + $0xf0] sm:$0xff]  ;;  %v1166_v15 = vld [vmem:[%s1892_s1 + $0xf8] sm:$0xff] }
  0x61   : > { %v520_v58 = vmul.f32 %v1159_v25, %v518_v41  ;;  %v521_v59 = vmul.f32 %v1160_v32, %v519_v48  ;;  %v522_v40 = vmul.f32 %v1161_v24, %v518_v41  ;;  %v523_v51 = vmul.f32 %v1162_v36, %v519_v48 }
  0x62   : > { %v532_v53 = vadd.f32 %v528_v49, %v494_v44  ;;  %v533_v60 = vadd.f32 %v529_v50, %v495_v45  ;;  %v534_v61 = vadd.f32 %v530_v54, %v496_v46  ;;  %v535_v63 = vadd.f32 %v531_v55, %v497_v47 }
  0x63   : > { %v524_v1 = vsub.f32 %v514_v37, %v520_v58  ;;  %v525_v2 = vsub.f32 %v515_v38, %v521_v59  ;;  %v526_v6 = vsub.f32 %v516_v34, %v522_v40  ;;  %v527_v7 = vsub.f32 %v517_v39, %v523_v51  ;;  %v1171_v37 = vld [vmem:[%s1892_s1 + $0x100] sm:$0xff]  ;;  %v1172_v39 = vld [vmem:[%s1892_s1 + $0x108] sm:$0xff]  ;;  %v1657_v51 = vld [vmem:[%s1413_s20 + $0x38] sm:$0xff] }
  0x64   : > { %v536_v8 = vmul.f32 %v1155_v4, %v518_v41  ;;  %v537_v9 = vmul.f32 %v1156_v20, %v519_v48  ;;  %v538_v10 = vmul.f32 %v1157_v21, %v518_v41  ;;  %v539_v11 = vmul.f32 %v1158_v22, %v519_v48  ;;  %v1173_v41 = vld [vmem:[%s1892_s1 + $0x110] sm:$0xff]  ;;  %v1174_v48 = vld [vmem:[%s1892_s1 + $0x118] sm:$0xff] }
  0x65   : > { %v556_v12 = vmul.f32 %v1163_v52, %v554_v56  ;;  %v557_v13 = vmul.f32 %v1164_v0, %v555_v57  ;;  %v558_v19 = vmul.f32 %v1165_v14, %v554_v56  ;;  %v559_v26 = vmul.f32 %v1166_v15, %v555_v57 }
  0x66   : > { %v540_v4 = vadd.f32 %v536_v8, %v532_v53  ;;  %v541_v20 = vadd.f32 %v537_v9, %v533_v60  ;;  %v542_v21 = vadd.f32 %v538_v10, %v534_v61  ;;  %v543_v22 = vadd.f32 %v539_v11, %v535_v63  ;;  %v1175_v53 = vld [vmem:[%s1892_s1 + $0x300] sm:$0xff]  ;;  %v1176_v60 = vld [vmem:[%s1892_s1 + $0x308] sm:$0xff] }
  0x67   : > { %v560_v30 = vadd.f32 %v556_v12, %v524_v1  ;;  %v561_v31 = vadd.f32 %v557_v13, %v525_v2  ;;  %v562_v16 = vadd.f32 %v558_v19, %v526_v6  ;;  %v563_v23 = vadd.f32 %v559_v26, %v527_v7 }
  0x68   : > { %v564_v25 = vperm.slane %v1425_v17, 7  ;;  %v565_v32 = vperm.slane %v1428_v18, 7  ;;  %v574_v33 = vmul.f32 %v1167_v3, %v554_v56  ;;  %v575_v35 = vmul.f32 %v1168_v5, %v555_v57 }
  0x69   : > { %v576_v42 = vmul.f32 %v1169_v28, %v554_v56  ;;  %v577_v43 = vmul.f32 %v1170_v29, %v555_v57  ;;  %v600_v44 = vperm.slane %v1620_v62, 0  ;;  %v601_v45 = vperm.slane %v1629_v27, 0  ;;  %v1654_v56 = vld [vmem:[%s1413_s20 + $0x30] sm:$0xff] }
  0x6a   : > { %v566_v46 = vmul.f32 %v1167_v3, %v564_v25  ;;  %v567_v47 = vmul.f32 %v1168_v5, %v565_v32  ;;  %v568_v24 = vmul.f32 %v1169_v28, %v564_v25  ;;  %v569_v36 = vmul.f32 %v1170_v29, %v565_v32 }
  0x6b   : > { %v578_v17 = vadd.f32 %v574_v33, %v540_v4  ;;  %v579_v18 = vadd.f32 %v575_v35, %v541_v20  ;;  %v580_v38 = vadd.f32 %v576_v42, %v542_v21  ;;  %v581_v34 = vadd.f32 %v577_v43, %v543_v22  ;;  %v1181_v33 = vld [vmem:[%s1892_s1 + $0x130] sm:$0xff]  ;;  %v1182_v35 = vld [vmem:[%s1892_s1 + $0x138] sm:$0xff] }
  0x6c   : > { %v570_v49 = vsub.f32 %v560_v30, %v566_v46  ;;  %v571_v50 = vsub.f32 %v561_v31, %v567_v47  ;;  %v572_v54 = vsub.f32 %v562_v16, %v568_v24  ;;  %v573_v55 = vsub.f32 %v563_v23, %v569_v36  ;;  %v1179_v30 = vld [vmem:[%s1892_s1 + $0x120] sm:$0xff] }
  0x6d   : > { %v582_v57 = vmul.f32 %v1163_v52, %v564_v25  ;;  %v583_v58 = vmul.f32 %v1164_v0, %v565_v32  ;;  %v584_v59 = vmul.f32 %v1165_v14, %v564_v25  ;;  %v585_v40 = vmul.f32 %v1166_v15, %v565_v32  ;;  %v1177_v14 = vld [vmem:[%s1892_s1 + $0x310] sm:$0xff]  ;;  %v1178_v15 = vld [vmem:[%s1892_s1 + $0x318] sm:$0xff]  ;;  %v1180_v32 = vld [vmem:[%s1892_s1 + $0x128] sm:$0xff] }
  0x6e   : > { %v602_v61 = vmul.f32 %v1171_v37, %v600_v44  ;;  %v603_v63 = vmul.f32 %v1172_v39, %v601_v45  ;;  %v604_v1 = vmul.f32 %v1173_v41, %v600_v44  ;;  %v605_v2 = vmul.f32 %v1174_v48, %v601_v45 }
  0x6f   : > { %v586_v6 = vadd.f32 %v582_v57, %v578_v17  ;;  %v587_v7 = vadd.f32 %v583_v58, %v579_v18  ;;  %v588_v52 = vadd.f32 %v584_v59, %v580_v38  ;;  %v589_v0 = vadd.f32 %v585_v40, %v581_v34  ;;  %v1183_v17 = vld [vmem:[%s1892_s1 + $0x320] sm:$0xff]  ;;  %v1184_v18 = vld [vmem:[%s1892_s1 + $0x328] sm:$0xff] }
  0x70   : > { %v606_v8 = vadd.f32 %v602_v61, %v570_v49  ;;  %v607_v9 = vadd.f32 %v603_v63, %v571_v50  ;;  %v608_v10 = vadd.f32 %v604_v1, %v572_v54  ;;  %v609_v11 = vadd.f32 %v605_v2, %v573_v55 }
  0x71   : > { %v610_v3 = vperm.slane %v1654_v56, 0  ;;  %v611_v5 = vperm.slane %v1657_v51, 0  ;;  %v620_v12 = vmul.f32 %v1175_v53, %v600_v44  ;;  %v621_v13 = vmul.f32 %v1176_v60, %v601_v45 }
  0x72   : > { %v622_v19 = vmul.f32 %v1177_v14, %v600_v44  ;;  %v623_v26 = vmul.f32 %v1178_v15, %v601_v45  ;;  %v646_v4 = vperm.slane %v1620_v62, 1  ;;  %v647_v20 = vperm.slane %v1629_v27, 1 }
  0x73   : > { %v612_v21 = vmul.f32 %v1175_v53, %v610_v3  ;;  %v613_v22 = vmul.f32 %v1176_v60, %v611_v5  ;;  %v614_v28 = vmul.f32 %v1177_v14, %v610_v3  ;;  %v615_v29 = vmul.f32 %v1178_v15, %v611_v5 }
  0x74   : > { %v624_v31 = vadd.f32 %v620_v12, %v586_v6  ;;  %v625_v16 = vadd.f32 %v621_v13, %v587_v7  ;;  %v626_v23 = vadd.f32 %v622_v19, %v588_v52  ;;  %v627_v25 = vadd.f32 %v623_v26, %v589_v0  ;;  %v1189_v12 = vld [vmem:[%s1892_s1 + $0x150] sm:$0xff]  ;;  %v1190_v13 = vld [vmem:[%s1892_s1 + $0x158] sm:$0xff] }
  0x75   : > { %v616_v42 = vsub.f32 %v606_v8, %v612_v21  ;;  %v617_v43 = vsub.f32 %v607_v9, %v613_v22  ;;  %v618_v44 = vsub.f32 %v608_v10, %v614_v28  ;;  %v619_v45 = vsub.f32 %v609_v11, %v615_v29  ;;  %v1187_v8 = vld [vmem:[%s1892_s1 + $0x140] sm:$0xff] }
  0x76   : > { %v628_v46 = vmul.f32 %v1171_v37, %v610_v3  ;;  %v629_v47 = vmul.f32 %v1172_v39, %v611_v5  ;;  %v630_v24 = vmul.f32 %v1173_v41, %v610_v3  ;;  %v631_v36 = vmul.f32 %v1174_v48, %v611_v5  ;;  %v1185_v37 = vld [vmem:[%s1892_s1 + $0x330] sm:$0xff]  ;;  %v1186_v39 = vld [vmem:[%s1892_s1 + $0x338] sm:$0xff]  ;;  %v1188_v5 = vld [vmem:[%s1892_s1 + $0x148] sm:$0xff] }
  0x77   : > { %v648_v38 = vmul.f32 %v1179_v30, %v646_v4  ;;  %v649_v34 = vmul.f32 %v1180_v32, %v647_v20  ;;  %v650_v49 = vmul.f32 %v1181_v33, %v646_v4  ;;  %v651_v50 = vmul.f32 %v1182_v35, %v647_v20 }
  0x78   : > { %v632_v54 = vadd.f32 %v628_v46, %v624_v31  ;;  %v633_v55 = vadd.f32 %v629_v47, %v625_v16  ;;  %v634_v57 = vadd.f32 %v630_v24, %v626_v23  ;;  %v635_v58 = vadd.f32 %v631_v36, %v627_v25  ;;  %v1191_v31 = vld [vmem:[%s1892_s1 + $0x340] sm:$0xff]  ;;  %v1192_v16 = vld [vmem:[%s1892_s1 + $0x348] sm:$0xff] }
  0x79   : > { %v652_v41 = vadd.f32 %v648_v38, %v616_v42  ;;  %v653_v48 = vadd.f32 %v649_v34, %v617_v43  ;;  %v654_v59 = vadd.f32 %v650_v49, %v618_v44  ;;  %v655_v40 = vadd.f32 %v651_v50, %v619_v45 }
  0x7a   : > { %v656_v53 = vperm.slane %v1654_v56, 1  ;;  %v657_v60 = vperm.slane %v1657_v51, 1  ;;  %v666_v61 = vmul.f32 %v1183_v17, %v646_v4  ;;  %v667_v63 = vmul.f32 %v1184_v18, %v647_v20 }
  0x7b   : > { %v668_v1 = vmul.f32 %v1185_v37, %v646_v4  ;;  %v669_v2 = vmul.f32 %v1186_v39, %v647_v20  ;;  %v692_v6 = vperm.slane %v1620_v62, 2  ;;  %v693_v7 = vperm.slane %v1629_v27, 2 }
  0x7c   : > { %v658_v52 = vmul.f32 %v1183_v17, %v656_v53  ;;  %v659_v0 = vmul.f32 %v1184_v18, %v657_v60  ;;  %v660_v14 = vmul.f32 %v1185_v37, %v656_v53  ;;  %v661_v15 = vmul.f32 %v1186_v39, %v657_v60 }
  0x7d   : > { %v670_v9 = vadd.f32 %v666_v61, %v632_v54  ;;  %v671_v10 = vadd.f32 %v667_v63, %v633_v55  ;;  %v672_v11 = vadd.f32 %v668_v1, %v634_v57  ;;  %v673_v3 = vadd.f32 %v669_v2, %v635_v58  ;;  %v1197_v61 = vld [vmem:[%s1892_s1 + $0x170] sm:$0xff]  ;;  %v1198_v63 = vld [vmem:[%s1892_s1 + $0x178] sm:$0xff] }
  0x7e   : > { %v662_v19 = vsub.f32 %v652_v41, %v658_v52  ;;  %v663_v26 = vsub.f32 %v653_v48, %v659_v0  ;;  %v664_v4 = vsub.f32 %v654_v59, %v660_v14  ;;  %v665_v20 = vsub.f32 %v655_v40, %v661_v15  ;;  %v1195_v41 = vld [vmem:[%s1892_s1 + $0x160] sm:$0xff] }
  0x7f   : > { %v674_v21 = vmul.f32 %v1179_v30, %v656_v53  ;;  %v675_v22 = vmul.f32 %v1180_v32, %v657_v60  ;;  %v676_v28 = vmul.f32 %v1181_v33, %v656_v53  ;;  %v677_v29 = vmul.f32 %v1182_v35, %v657_v60  ;;  %v1193_v30 = vld [vmem:[%s1892_s1 + $0x350] sm:$0xff]  ;;  %v1194_v32 = vld [vmem:[%s1892_s1 + $0x358] sm:$0xff]  ;;  %v1196_v60 = vld [vmem:[%s1892_s1 + $0x168] sm:$0xff] }
  0x80   : > { %v694_v23 = vmul.f32 %v1187_v8, %v692_v6  ;;  %v695_v25 = vmul.f32 %v1188_v5, %v693_v7  ;;  %v696_v42 = vmul.f32 %v1189_v12, %v692_v6  ;;  %v697_v43 = vmul.f32 %v1190_v13, %v693_v7 }
  0x81   : > { %v678_v44 = vadd.f32 %v674_v21, %v670_v9  ;;  %v679_v45 = vadd.f32 %v675_v22, %v671_v10  ;;  %v680_v46 = vadd.f32 %v676_v28, %v672_v11  ;;  %v681_v47 = vadd.f32 %v677_v29, %v673_v3  ;;  %v1199_v9 = vld [vmem:[%s1892_s1 + $0x360] sm:$0xff]  ;;  %v1200_v10 = vld [vmem:[%s1892_s1 + $0x368] sm:$0xff] }
  0x82   : > { %v698_v33 = vadd.f32 %v694_v23, %v662_v19  ;;  %v699_v35 = vadd.f32 %v695_v25, %v663_v26  ;;  %v700_v24 = vadd.f32 %v696_v42, %v664_v4  ;;  %v701_v36 = vadd.f32 %v697_v43, %v665_v20 }
  0x83   : > { %v702_v17 = vperm.slane %v1654_v56, 2  ;;  %v703_v18 = vperm.slane %v1657_v51, 2  ;;  %v712_v38 = vmul.f32 %v1191_v31, %v692_v6  ;;  %v713_v34 = vmul.f32 %v1192_v16, %v693_v7 }
  0x84   : > { %v714_v49 = vmul.f32 %v1193_v30, %v692_v6  ;;  %v715_v50 = vmul.f32 %v1194_v32, %v693_v7  ;;  %v738_v54 = vperm.slane %v1620_v62, 3  ;;  %v739_v55 = vperm.slane %v1629_v27, 3 }
  0x85   : > { %v704_v57 = vmul.f32 %v1191_v31, %v702_v17  ;;  %v705_v58 = vmul.f32 %v1192_v16, %v703_v18  ;;  %v706_v37 = vmul.f32 %v1193_v30, %v702_v17  ;;  %v707_v39 = vmul.f32 %v1194_v32, %v703_v18 }
  0x86   : > { %v716_v48 = vadd.f32 %v712_v38, %v678_v44  ;;  %v717_v59 = vadd.f32 %v713_v34, %v679_v45  ;;  %v718_v40 = vadd.f32 %v714_v49, %v680_v46  ;;  %v719_v53 = vadd.f32 %v715_v50, %v681_v47  ;;  %v1205_v38 = vld [vmem:[%s1892_s1 + $0x190] sm:$0xff]  ;;  %v1206_v34 = vld [vmem:[%s1892_s1 + $0x198] sm:$0xff] }
  0x87   : > { %v708_v1 = vsub.f32 %v698_v33, %v704_v57  ;;  %v709_v2 = vsub.f32 %v699_v35, %v705_v58  ;;  %v710_v6 = vsub.f32 %v700_v24, %v706_v37  ;;  %v711_v7 = vsub.f32 %v701_v36, %v707_v39  ;;  %v1203_v33 = vld [vmem:[%s1892_s1 + $0x180] sm:$0xff] }
  0x88   : > { %v720_v52 = vmul.f32 %v1187_v8, %v702_v17  ;;  %v721_v0 = vmul.f32 %v1188_v5, %v703_v18  ;;  %v722_v14 = vmul.f32 %v1189_v12, %v702_v17  ;;  %v723_v15 = vmul.f32 %v1190_v13, %v703_v18  ;;  %v1201_v8 = vld [vmem:[%s1892_s1 + $0x370] sm:$0xff]  ;;  %v1202_v5 = vld [vmem:[%s1892_s1 + $0x378] sm:$0xff]  ;;  %v1204_v18 = vld [vmem:[%s1892_s1 + $0x188] sm:$0xff] }
  0x89   : > { %v740_v11 = vmul.f32 %v1195_v41, %v738_v54  ;;  %v741_v3 = vmul.f32 %v1196_v60, %v739_v55  ;;  %v742_v19 = vmul.f32 %v1197_v61, %v738_v54  ;;  %v743_v26 = vmul.f32 %v1198_v63, %v739_v55 }
  0x8a   : > { %v724_v4 = vadd.f32 %v720_v52, %v716_v48  ;;  %v725_v20 = vadd.f32 %v721_v0, %v717_v59  ;;  %v726_v21 = vadd.f32 %v722_v14, %v718_v40  ;;  %v727_v22 = vadd.f32 %v723_v15, %v719_v53  ;;  %v1207_v48 = vld [vmem:[%s1892_s1 + $0x380] sm:$0xff]  ;;  %v1208_v59 = vld [vmem:[%s1892_s1 + $0x388] sm:$0xff] }
  0x8b   : > { %v744_v12 = vadd.f32 %v740_v11, %v708_v1  ;;  %v745_v13 = vadd.f32 %v741_v3, %v709_v2  ;;  %v746_v28 = vadd.f32 %v742_v19, %v710_v6  ;;  %v747_v29 = vadd.f32 %v743_v26, %v711_v7 }
  0x8c   : > { %v748_v31 = vperm.slane %v1654_v56, 3  ;;  %v749_v16 = vperm.slane %v1657_v51, 3  ;;  %v758_v23 = vmul.f32 %v1199_v9, %v738_v54  ;;  %v759_v25 = vmul.f32 %v1200_v10, %v739_v55 }
  0x8d   : > { %v760_v42 = vmul.f32 %v1201_v8, %v738_v54  ;;  %v761_v43 = vmul.f32 %v1202_v5, %v739_v55  ;;  %v784_v44 = vperm.slane %v1620_v62, 4  ;;  %v785_v45 = vperm.slane %v1629_v27, 4 }
  0x8e   : > { %v750_v46 = vmul.f32 %v1199_v9, %v748_v31  ;;  %v751_v47 = vmul.f32 %v1200_v10, %v749_v16  ;;  %v752_v30 = vmul.f32 %v1201_v8, %v748_v31  ;;  %v753_v32 = vmul.f32 %v1202_v5, %v749_v16 }
  0x8f   : > { %v762_v35 = vadd.f32 %v758_v23, %v724_v4  ;;  %v763_v24 = vadd.f32 %v759_v25, %v725_v20  ;;  %v764_v36 = vadd.f32 %v760_v42, %v726_v21  ;;  %v765_v17 = vadd.f32 %v761_v43, %v727_v22  ;;  %v1213_v23 = vld [vmem:[%s1892_s1 + $0x1b0] sm:$0xff]  ;;  %v1214_v25 = vld [vmem:[%s1892_s1 + $0x1b8] sm:$0xff] }
  0x90   : > { %v754_v49 = vsub.f32 %v744_v12, %v750_v46  ;;  %v755_v50 = vsub.f32 %v745_v13, %v751_v47  ;;  %v756_v54 = vsub.f32 %v746_v28, %v752_v30  ;;  %v757_v55 = vsub.f32 %v747_v29, %v753_v32  ;;  %v1211_v12 = vld [vmem:[%s1892_s1 + $0x1a0] sm:$0xff] }
  0x91   : > { %v766_v57 = vmul.f32 %v1195_v41, %v748_v31  ;;  %v767_v58 = vmul.f32 %v1196_v60, %v749_v16  ;;  %v768_v37 = vmul.f32 %v1197_v61, %v748_v31  ;;  %v769_v39 = vmul.f32 %v1198_v63, %v749_v16  ;;  %v1209_v41 = vld [vmem:[%s1892_s1 + $0x390] sm:$0xff]  ;;  %v1210_v60 = vld [vmem:[%s1892_s1 + $0x398] sm:$0xff]  ;;  %v1212_v16 = vld [vmem:[%s1892_s1 + $0x1a8] sm:$0xff] }
  0x92   : > { %v786_v40 = vmul.f32 %v1203_v33, %v784_v44  ;;  %v787_v53 = vmul.f32 %v1204_v18, %v785_v45  ;;  %v788_v1 = vmul.f32 %v1205_v38, %v784_v44  ;;  %v789_v2 = vmul.f32 %v1206_v34, %v785_v45 }
  0x93   : > { %v770_v6 = vadd.f32 %v766_v57, %v762_v35  ;;  %v771_v7 = vadd.f32 %v767_v58, %v763_v24  ;;  %v772_v52 = vadd.f32 %v768_v37, %v764_v36  ;;  %v773_v0 = vadd.f32 %v769_v39, %v765_v17  ;;  %v1215_v35 = vld [vmem:[%s1892_s1 + $0x3a0] sm:$0xff]  ;;  %v1216_v24 = vld [vmem:[%s1892_s1 + $0x3a8] sm:$0xff] }
  0x94   : > { %v790_v61 = vadd.f32 %v786_v40, %v754_v49  ;;  %v791_v63 = vadd.f32 %v787_v53, %v755_v50  ;;  %v792_v14 = vadd.f32 %v788_v1, %v756_v54  ;;  %v793_v15 = vadd.f32 %v789_v2, %v757_v55 }
  0x95   : > { %v794_v9 = vperm.slane %v1654_v56, 4  ;;  %v795_v10 = vperm.slane %v1657_v51, 4  ;;  %v804_v11 = vmul.f32 %v1207_v48, %v784_v44  ;;  %v805_v3 = vmul.f32 %v1208_v59, %v785_v45 }
  0x96   : > { %v806_v19 = vmul.f32 %v1209_v41, %v784_v44  ;;  %v807_v26 = vmul.f32 %v1210_v60, %v785_v45  ;;  %v830_v4 = vperm.slane %v1620_v62, 5  ;;  %v831_v20 = vperm.slane %v1629_v27, 5 }
  0x97   : > { %v796_v21 = vmul.f32 %v1207_v48, %v794_v9  ;;  %v797_v22 = vmul.f32 %v1208_v59, %v795_v10  ;;  %v798_v8 = vmul.f32 %v1209_v41, %v794_v9  ;;  %v799_v5 = vmul.f32 %v1210_v60, %v795_v10 }
  0x98   : > { %v808_v13 = vadd.f32 %v804_v11, %v770_v6  ;;  %v809_v28 = vadd.f32 %v805_v3, %v771_v7  ;;  %v810_v29 = vadd.f32 %v806_v19, %v772_v52  ;;  %v811_v31 = vadd.f32 %v807_v26, %v773_v0  ;;  %v1221_v11 = vld [vmem:[%s1892_s1 + $0x1d0] sm:$0xff]  ;;  %v1222_v3 = vld [vmem:[%s1892_s1 + $0x1d8] sm:$0xff] }
  0x99   : > { %v800_v42 = vsub.f32 %v790_v61, %v796_v21  ;;  %v801_v43 = vsub.f32 %v791_v63, %v797_v22  ;;  %v802_v44 = vsub.f32 %v792_v14, %v798_v8  ;;  %v803_v45 = vsub.f32 %v793_v15, %v799_v5  ;;  %v1219_v61 = vld [vmem:[%s1892_s1 + $0x1c0] sm:$0xff] }
  0x9a   : > { %v812_v46 = vmul.f32 %v1203_v33, %v794_v9  ;;  %v813_v47 = vmul.f32 %v1204_v18, %v795_v10  ;;  %v814_v30 = vmul.f32 %v1205_v38, %v794_v9  ;;  %v815_v32 = vmul.f32 %v1206_v34, %v795_v10  ;;  %v1217_v33 = vld [vmem:[%s1892_s1 + $0x3b0] sm:$0xff]  ;;  %v1218_v18 = vld [vmem:[%s1892_s1 + $0x3b8] sm:$0xff]  ;;  %v1220_v10 = vld [vmem:[%s1892_s1 + $0x1c8] sm:$0xff] }
  0x9b   : > { %v832_v36 = vmul.f32 %v1211_v12, %v830_v4  ;;  %v833_v17 = vmul.f32 %v1212_v16, %v831_v20  ;;  %v834_v49 = vmul.f32 %v1213_v23, %v830_v4  ;;  %v835_v50 = vmul.f32 %v1214_v25, %v831_v20 }
  0x9c   : > { %v816_v54 = vadd.f32 %v812_v46, %v808_v13  ;;  %v817_v55 = vadd.f32 %v813_v47, %v809_v28  ;;  %v818_v57 = vadd.f32 %v814_v30, %v810_v29  ;;  %v819_v58 = vadd.f32 %v815_v32, %v811_v31  ;;  %v1223_v13 = vld [vmem:[%s1892_s1 + $0x3c0] sm:$0xff]  ;;  %v1224_v28 = vld [vmem:[%s1892_s1 + $0x3c8] sm:$0xff] }
  0x9d   : > { %v836_v38 = vadd.f32 %v832_v36, %v800_v42  ;;  %v837_v34 = vadd.f32 %v833_v17, %v801_v43  ;;  %v838_v37 = vadd.f32 %v834_v49, %v802_v44  ;;  %v839_v39 = vadd.f32 %v835_v50, %v803_v45 }
  0x9e   : > { %v840_v48 = vperm.slane %v1654_v56, 5  ;;  %v841_v59 = vperm.slane %v1657_v51, 5  ;;  %v850_v40 = vmul.f32 %v1215_v35, %v830_v4  ;;  %v851_v53 = vmul.f32 %v1216_v24, %v831_v20 }
  0x9f   : > { %v852_v1 = vmul.f32 %v1217_v33, %v830_v4  ;;  %v853_v2 = vmul.f32 %v1218_v18, %v831_v20  ;;  %v876_v6 = vperm.slane %v1620_v62, 6  ;;  %v877_v7 = vperm.slane %v1629_v27, 6 }
  0xa0   : > { %v842_v52 = vmul.f32 %v1215_v35, %v840_v48  ;;  %v843_v0 = vmul.f32 %v1216_v24, %v841_v59  ;;  %v844_v41 = vmul.f32 %v1217_v33, %v840_v48  ;;  %v845_v60 = vmul.f32 %v1218_v18, %v841_v59 }
  0xa1   : > { %v854_v63 = vadd.f32 %v850_v40, %v816_v54  ;;  %v855_v14 = vadd.f32 %v851_v53, %v817_v55  ;;  %v856_v15 = vadd.f32 %v852_v1, %v818_v57  ;;  %v857_v9 = vadd.f32 %v853_v2, %v819_v58 }
  0xa2   : > { %v846_v19 = vsub.f32 %v836_v38, %v842_v52  ;;  %v847_v26 = vsub.f32 %v837_v34, %v843_v0  ;;  %v848_v4 = vsub.f32 %v838_v37, %v844_v41  ;;  %v849_v20 = vsub.f32 %v839_v39, %v845_v60  ;;  %v1227_v38 = vld [vmem:[%s1892_s1 + $0x1e0] sm:$0xff]  ;;  %v1232_v60 = vld [vmem:[%s1892_s1 + $0x3e8] sm:$0xff] }
  0xa3   : > { %v858_v21 = vmul.f32 %v1211_v12, %v840_v48  ;;  %v859_v22 = vmul.f32 %v1212_v16, %v841_v59  ;;  %v860_v8 = vmul.f32 %v1213_v23, %v840_v48  ;;  %v861_v5 = vmul.f32 %v1214_v25, %v841_v59  ;;  %v1225_v12 = vld [vmem:[%s1892_s1 + $0x3d0] sm:$0xff]  ;;  %v1226_v16 = vld [vmem:[%s1892_s1 + $0x3d8] sm:$0xff]  ;;  %v1228_v59 = vld [vmem:[%s1892_s1 + $0x1e8] sm:$0xff] }
  0xa4   : > { %v878_v29 = vmul.f32 %v1219_v61, %v876_v6  ;;  %v879_v31 = vmul.f32 %v1220_v10, %v877_v7  ;;  %v880_v42 = vmul.f32 %v1221_v11, %v876_v6  ;;  %v881_v43 = vmul.f32 %v1222_v3, %v877_v7  ;;  %v1231_v41 = vld [vmem:[%s1892_s1 + $0x3e0] sm:$0xff] }
  0xa5   : > { %v862_v44 = vadd.f32 %v858_v21, %v854_v63  ;;  %v863_v45 = vadd.f32 %v859_v22, %v855_v14  ;;  %v864_v46 = vadd.f32 %v860_v8, %v856_v15  ;;  %v865_v47 = vadd.f32 %v861_v5, %v857_v9 }
  0xa6   : > { %v882_v23 = vadd.f32 %v878_v29, %v846_v19  ;;  %v883_v25 = vadd.f32 %v879_v31, %v847_v26  ;;  %v884_v30 = vadd.f32 %v880_v42, %v848_v4  ;;  %v885_v32 = vadd.f32 %v881_v43, %v849_v20 }
  0xa7   : > { %v886_v35 = vperm.slane %v1654_v56, 6  ;;  %v887_v24 = vperm.slane %v1657_v51, 6  ;;  %v896_v36 = vmul.f32 %v1223_v13, %v876_v6  ;;  %v897_v17 = vmul.f32 %v1224_v28, %v877_v7 }
  0xa8   : > { %v898_v49 = vmul.f32 %v1225_v12, %v876_v6  ;;  %v899_v50 = vmul.f32 %v1226_v16, %v877_v7  ;;  %v922_v54 = vperm.slane %v1620_v62, 7  ;;  %v923_v55 = vperm.slane %v1629_v27, 7  ;;  %v1229_v62 = vld [vmem:[%s1892_s1 + $0x1f0] sm:$0xff]  ;;  %v1230_v27 = vld [vmem:[%s1892_s1 + $0x1f8] sm:$0xff] }
  0xa9   : > { %v888_v57 = vmul.f32 %v1223_v13, %v886_v35  ;;  %v889_v58 = vmul.f32 %v1224_v28, %v887_v24  ;;  %v890_v33 = vmul.f32 %v1225_v12, %v886_v35  ;;  %v891_v18 = vmul.f32 %v1226_v16, %v887_v24 }
  0xaa   : > { %v900_v34 = vadd.f32 %v896_v36, %v862_v44  ;;  %v901_v37 = vadd.f32 %v897_v17, %v863_v45  ;;  %v902_v39 = vadd.f32 %v898_v49, %v864_v46  ;;  %v903_v48 = vadd.f32 %v899_v50, %v865_v47 }
  0xab   : > { %v892_v40 = vsub.f32 %v882_v23, %v888_v57  ;;  %v893_v53 = vsub.f32 %v883_v25, %v889_v58  ;;  %v894_v1 = vsub.f32 %v884_v30, %v890_v33  ;;  %v895_v2 = vsub.f32 %v885_v32, %v891_v18 }
  0xac   : > { %v904_v6 = vmul.f32 %v1219_v61, %v886_v35  ;;  %v905_v7 = vmul.f32 %v1220_v10, %v887_v24  ;;  %v906_v52 = vmul.f32 %v1221_v11, %v886_v35  ;;  %v907_v0 = vmul.f32 %v1222_v3, %v887_v24  ;;  %v1233_v61 = vld [vmem:[%s1892_s1 + $0x3f0] sm:$0xff]  ;;  %v1234_v10 = vld [vmem:[%s1892_s1 + $0x3f8] sm:$0xff] }
  0xad   : > { %v924_v63 = vmul.f32 %v1227_v38, %v922_v54  ;;  %v925_v14 = vmul.f32 %v1228_v59, %v923_v55  ;;  %v926_v15 = vmul.f32 %v1229_v62, %v922_v54  ;;  %v927_v9 = vmul.f32 %v1230_v27, %v923_v55 }
  0xae   : > { %v908_v19 = vadd.f32 %v904_v6, %v900_v34  ;;  %v909_v26 = vadd.f32 %v905_v7, %v901_v37  ;;  %v910_v4 = vadd.f32 %v906_v52, %v902_v39  ;;  %v911_v20 = vadd.f32 %v907_v0, %v903_v48 }
  0xaf   : > { %v928_v11 = vadd.f32 %v924_v63, %v892_v40  ;;  %v929_v3 = vadd.f32 %v925_v14, %v893_v53  ;;  %v930_v21 = vadd.f32 %v926_v15, %v894_v1  ;;  %v931_v22 = vadd.f32 %v927_v9, %v895_v2 }
  0xb0   : > { %v932_v8 = vperm.slane %v1654_v56, 7  ;;  %v933_v5 = vperm.slane %v1657_v51, 7  ;;  %v942_v13 = vmul.f32 %v1231_v41, %v922_v54  ;;  %v943_v28 = vmul.f32 %v1232_v60, %v923_v55 }
  0xb1   : > { %v944_v29 = vmul.f32 %v1233_v61, %v922_v54  ;;  %v945_v31 = vmul.f32 %v1234_v10, %v923_v55 }
  0xb2   : > { %v934_v42 = vmul.f32 %v1231_v41, %v932_v8  ;;  %v935_v43 = vmul.f32 %v1232_v60, %v933_v5  ;;  %v936_v44 = vmul.f32 %v1233_v61, %v932_v8  ;;  %v937_v45 = vmul.f32 %v1234_v10, %v933_v5 }
  0xb3   : > { %v946_v46 = vadd.f32 %v942_v13, %v908_v19  ;;  %v947_v47 = vadd.f32 %v943_v28, %v909_v26  ;;  %v948_v12 = vadd.f32 %v944_v29, %v910_v4  ;;  %v949_v16 = vadd.f32 %v945_v31, %v911_v20 }
  0xb4   : > { %v938_v23 = vsub.f32 %v928_v11, %v934_v42  ;;  %v939_v25 = vsub.f32 %v929_v3, %v935_v43  ;;  %v940_v30 = vsub.f32 %v930_v21, %v936_v44  ;;  %v941_v32 = vsub.f32 %v931_v22, %v937_v45 }
  0xb5   : > { %v950_v56 = vmul.f32 %v1227_v38, %v932_v8  ;;  %v951_v35 = vmul.f32 %v1228_v59, %v933_v5  ;;  %v952_v51 = vmul.f32 %v1229_v62, %v932_v8  ;;  %v953_v24 = vmul.f32 %v1230_v27, %v933_v5 }
  0xb6   : > { %958 = vst [vmem:[%s205_s4] sm:$0xff] %v938_v23 }
  0xb7   : > { %v954_v36 = vadd.f32 %v950_v56, %v946_v46  ;;  %v955_v17 = vadd.f32 %v951_v35, %v947_v47  ;;  %959 = vst [vmem:[%s205_s4 + $0x8] sm:$0xff] %v939_v25  ;;  %v956_v49 = vadd.f32 %v952_v51, %v948_v12  ;;  %v957_v50 = vadd.f32 %v953_v24, %v949_v16 }
  0xb8   : > { %960 = vst [vmem:[%s205_s4 + $0x10] sm:$0xff] %v940_v30 }
  0xb9   : > { %961 = vst [vmem:[%s205_s4 + $0x18] sm:$0xff] %v941_v32  ;;  %973 = sbr.rel (!%p1376_p6) target bundleno = 198 (0xc6), region = 55 }
  0xba   : > { %1235 = vst [vmem:[%s205_s4 + $0x20] sm:$0xff] %v954_v36 }
  0xbb   : > { %1236 = vst [vmem:[%s205_s4 + $0x28] sm:$0xff] %v955_v17 }
  0xbc   : > { %1237 = vst [vmem:[%s205_s4 + $0x30] sm:$0xff] %v956_v49 }
  0xbd   : > { %1238 = vst [vmem:[%s205_s4 + $0x38] sm:$0xff] %v957_v50  ;;  %v991_v54 = vld [vmem:[%s205_s4] sm:$0xff] (%p1376_p6) }
  0xbe   : > { %v993_v55 = vld [vmem:[%s205_s4 + $0x8] sm:$0xff]  ;;  %992 = vst [vmem:[%s978_s7] sm:$0xff] %v991_v54 }
  0xbf   : > { %v995_v57 = vld [vmem:[%s205_s4 + $0x10] sm:$0xff]  ;;  %994 = vst [vmem:[%s978_s7 + $0x8] sm:$0xff] %v993_v55 }
  0xc0   : > { %v997_v58 = vld [vmem:[%s205_s4 + $0x18] sm:$0xff]  ;;  %996 = vst [vmem:[%s978_s7 + $0x10] sm:$0xff] %v995_v57 }
  0xc1   : > { %v999_v33 = vld [vmem:[%s205_s4 + $0x20] sm:$0xff]  ;;  %998 = vst [vmem:[%s978_s7 + $0x18] sm:$0xff] %v997_v58 }
  0xc2   : > { %v1001_v18 = vld [vmem:[%s205_s4 + $0x28] sm:$0xff]  ;;  %1000 = vst [vmem:[%s978_s7 + $0x40] sm:$0xff] %v999_v33 }
  0xc3   : > { %v1003_v38 = vld [vmem:[%s205_s4 + $0x30] sm:$0xff]  ;;  %1002 = vst [vmem:[%s978_s7 + $0x48] sm:$0xff] %v1001_v18 }
  0xc4   : > { %v1005_v34 = vld [vmem:[%s205_s4 + $0x38] sm:$0xff]  ;;  %1004 = vst [vmem:[%s978_s7 + $0x50] sm:$0xff] %v1003_v38 }
  0xc5   : > { %1006 = vst [vmem:[%s978_s7 + $0x58] sm:$0xff] %v1005_v34 }
  0xc6 PF: > { %s12_s13 = sadd.s32 1, %s1324_s13   ;;  %s1895_s9 = smov %s1312_s10 }
  0xc7   : > { %p9_p11 = scmp.ge.s32.totalorder %s12_s13, 4   ;;  %s1896_s10 = smov %s1381_s19 }
  0xc8   : > { %s1897_s11 = smov %s1320_s12  ;;  %s1898_s12 = smov %s1900_s14 }
  0xc9   :  { %11 = sbr.rel (!%p9_p11) target bundleno = 3 (0x3), region = 145 }

// kernel: reverse.4
= control target key start
LH: loop header
LB: loop body
LE: loop exit
PB: predicated region body
PF: predicated region fallthrough
CT: control target
= control target key end

     0   :  { %s2888_s0 = inlined_call_operand.vmem [shape: f32[2,16,12,12,5], index: 0, kind: input, shape index: {}]   ;;  %s2889_s1 = inlined_call_operand.vmem [shape: f32[2,16,12,12,5], index: 1, kind: output, shape index: {}]  }
   0x1   :  { %v960_v0 = vld [vmem:[%s2888_s0 + $0x300] sm:$0xff]  ;;  %v978_v10 = vld [vmem:[%s2888_s0 + $0x310] sm:$0xff] }
   0x2   :  { %v961_v1 = vld [vmem:[%s2888_s0 + $0x6c0] sm:$0xff]  ;;  %4 = vst [vmem:[%s2889_s1] sm:$0xff] %v960_v0  ;;  %v980_v11 = vld [vmem:[%s2888_s0 + $0x6d0] sm:$0xff] }
   0x3   :  { %v963_v2 = vld [vmem:[%s2888_s0 + $0x240] sm:$0xff]  ;;  %962 = vst [vmem:[%s2889_s1 + $0x3c0] sm:$0xff] %v961_v1  ;;  %v982_v12 = vld [vmem:[%s2888_s0 + $0x250] sm:$0xff] }
   0x4   :  { %v965_v3 = vld [vmem:[%s2888_s0 + $0x600] sm:$0xff]  ;;  %964 = vst [vmem:[%s2889_s1 + $0xc0] sm:$0xff] %v963_v2  ;;  %v984_v13 = vld [vmem:[%s2888_s0 + $0x610] sm:$0xff] }
   0x5   :  { %v967_v4 = vld [vmem:[%s2888_s0 + $0x180] sm:$0xff]  ;;  %966 = vst [vmem:[%s2889_s1 + $0x480] sm:$0xff] %v965_v3  ;;  %v986_v14 = vld [vmem:[%s2888_s0 + $0x190] sm:$0xff] }
   0x6   :  { %v969_v5 = vld [vmem:[%s2888_s0 + $0x540] sm:$0xff]  ;;  %968 = vst [vmem:[%s2889_s1 + $0x180] sm:$0xff] %v967_v4  ;;  %v988_v15 = vld [vmem:[%s2888_s0 + $0x550] sm:$0xff] }
   0x7   :  { %v971_v6 = vld [vmem:[%s2888_s0 + $0xc0] sm:$0xff]  ;;  %970 = vst [vmem:[%s2889_s1 + $0x540] sm:$0xff] %v969_v5  ;;  %v990_v16 = vld [vmem:[%s2888_s0 + $0xd0] sm:$0xff] }
   0x8   :  { %v973_v7 = vld [vmem:[%s2888_s0 + $0x480] sm:$0xff]  ;;  %972 = vst [vmem:[%s2889_s1 + $0x240] sm:$0xff] %v971_v6  ;;  %v992_v17 = vld [vmem:[%s2888_s0 + $0x490] sm:$0xff] }
   0x9   :  { %v33_v8 = vld [vmem:[%s2888_s0] sm:$0xff]  ;;  %974 = vst [vmem:[%s2889_s1 + $0x600] sm:$0xff] %v973_v7  ;;  %v994_v18 = vld [vmem:[%s2888_s0 + $0x10] sm:$0xff] }
   0xa   :  { %v976_v9 = vld [vmem:[%s2888_s0 + $0x3c0] sm:$0xff]  ;;  %975 = vst [vmem:[%s2889_s1 + $0x300] sm:$0xff] %v33_v8  ;;  %v996_v19 = vld [vmem:[%s2888_s0 + $0x3d0] sm:$0xff] }
   0xb   :  { %977 = vst [vmem:[%s2889_s1 + $0x6c0] sm:$0xff] %v976_v9  ;;  %v998_v20 = vld [vmem:[%s2888_s0 + $0x320] sm:$0xff]  ;;  %v1018_v30 = vld [vmem:[%s2888_s0 + $0x330] sm:$0xff] }
   0xc   :  { %979 = vst [vmem:[%s2889_s1 + $0x10] sm:$0xff] %v978_v10  ;;  %v1000_v21 = vld [vmem:[%s2888_s0 + $0x6e0] sm:$0xff]  ;;  %v1020_v31 = vld [vmem:[%s2888_s0 + $0x6f0] sm:$0xff] }
   0xd   :  { %981 = vst [vmem:[%s2889_s1 + $0x3d0] sm:$0xff] %v980_v11  ;;  %v1002_v22 = vld [vmem:[%s2888_s0 + $0x260] sm:$0xff]  ;;  %v1022_v32 = vld [vmem:[%s2888_s0 + $0x270] sm:$0xff] }
   0xe   :  { %983 = vst [vmem:[%s2889_s1 + $0xd0] sm:$0xff] %v982_v12  ;;  %v1004_v23 = vld [vmem:[%s2888_s0 + $0x620] sm:$0xff]  ;;  %v1024_v33 = vld [vmem:[%s2888_s0 + $0x630] sm:$0xff] }
   0xf   :  { %985 = vst [vmem:[%s2889_s1 + $0x490] sm:$0xff] %v984_v13  ;;  %v1006_v24 = vld [vmem:[%s2888_s0 + $0x1a0] sm:$0xff]  ;;  %v1026_v34 = vld [vmem:[%s2888_s0 + $0x1b0] sm:$0xff] }
  0x10   :  { %987 = vst [vmem:[%s2889_s1 + $0x190] sm:$0xff] %v986_v14  ;;  %v1008_v25 = vld [vmem:[%s2888_s0 + $0x560] sm:$0xff]  ;;  %v1028_v35 = vld [vmem:[%s2888_s0 + $0x570] sm:$0xff] }
  0x11   :  { %989 = vst [vmem:[%s2889_s1 + $0x550] sm:$0xff] %v988_v15  ;;  %v1010_v26 = vld [vmem:[%s2888_s0 + $0xe0] sm:$0xff]  ;;  %v1030_v36 = vld [vmem:[%s2888_s0 + $0xf0] sm:$0xff] }
  0x12   :  { %991 = vst [vmem:[%s2889_s1 + $0x250] sm:$0xff] %v990_v16  ;;  %v1012_v27 = vld [vmem:[%s2888_s0 + $0x4a0] sm:$0xff]  ;;  %v1032_v37 = vld [vmem:[%s2888_s0 + $0x4b0] sm:$0xff] }
  0x13   :  { %993 = vst [vmem:[%s2889_s1 + $0x610] sm:$0xff] %v992_v17  ;;  %v1014_v28 = vld [vmem:[%s2888_s0 + $0x20] sm:$0xff]  ;;  %v1034_v38 = vld [vmem:[%s2888_s0 + $0x30] sm:$0xff] }
  0x14   :  { %995 = vst [vmem:[%s2889_s1 + $0x310] sm:$0xff] %v994_v18  ;;  %v1016_v29 = vld [vmem:[%s2888_s0 + $0x3e0] sm:$0xff]  ;;  %v1036_v39 = vld [vmem:[%s2888_s0 + $0x3f0] sm:$0xff] }
  0x15   :  { %997 = vst [vmem:[%s2889_s1 + $0x6d0] sm:$0xff] %v996_v19  ;;  %v1038_v40 = vld [vmem:[%s2888_s0 + $0x340] sm:$0xff]  ;;  %v1058_v50 = vld [vmem:[%s2888_s0 + $0x350] sm:$0xff] }
  0x16   :  { %999 = vst [vmem:[%s2889_s1 + $0x20] sm:$0xff] %v998_v20  ;;  %v1040_v41 = vld [vmem:[%s2888_s0 + $0x700] sm:$0xff]  ;;  %v1060_v51 = vld [vmem:[%s2888_s0 + $0x710] sm:$0xff] }
  0x17   :  { %1001 = vst [vmem:[%s2889_s1 + $0x3e0] sm:$0xff] %v1000_v21  ;;  %v1042_v42 = vld [vmem:[%s2888_s0 + $0x280] sm:$0xff]  ;;  %v1062_v52 = vld [vmem:[%s2888_s0 + $0x290] sm:$0xff] }
  0x18   :  { %1003 = vst [vmem:[%s2889_s1 + $0xe0] sm:$0xff] %v1002_v22  ;;  %v1044_v43 = vld [vmem:[%s2888_s0 + $0x640] sm:$0xff]  ;;  %v1064_v53 = vld [vmem:[%s2888_s0 + $0x650] sm:$0xff] }
  0x19   :  { %1005 = vst [vmem:[%s2889_s1 + $0x4a0] sm:$0xff] %v1004_v23  ;;  %v1046_v44 = vld [vmem:[%s2888_s0 + $0x1c0] sm:$0xff]  ;;  %v1066_v54 = vld [vmem:[%s2888_s0 + $0x1d0] sm:$0xff] }
  0x1a   :  { %1007 = vst [vmem:[%s2889_s1 + $0x1a0] sm:$0xff] %v1006_v24  ;;  %v1048_v45 = vld [vmem:[%s2888_s0 + $0x580] sm:$0xff]  ;;  %v1068_v55 = vld [vmem:[%s2888_s0 + $0x590] sm:$0xff] }
  0x1b   :  { %1009 = vst [vmem:[%s2889_s1 + $0x560] sm:$0xff] %v1008_v25  ;;  %v1050_v46 = vld [vmem:[%s2888_s0 + $0x100] sm:$0xff]  ;;  %v1070_v56 = vld [vmem:[%s2888_s0 + $0x110] sm:$0xff] }
  0x1c   :  { %1011 = vst [vmem:[%s2889_s1 + $0x260] sm:$0xff] %v1010_v26  ;;  %v1052_v47 = vld [vmem:[%s2888_s0 + $0x4c0] sm:$0xff]  ;;  %v1072_v57 = vld [vmem:[%s2888_s0 + $0x4d0] sm:$0xff] }
  0x1d   :  { %1013 = vst [vmem:[%s2889_s1 + $0x620] sm:$0xff] %v1012_v27  ;;  %v1054_v48 = vld [vmem:[%s2888_s0 + $0x40] sm:$0xff]  ;;  %v1074_v58 = vld [vmem:[%s2888_s0 + $0x50] sm:$0xff] }
  0x1e   :  { %1015 = vst [vmem:[%s2889_s1 + $0x320] sm:$0xff] %v1014_v28  ;;  %v1056_v49 = vld [vmem:[%s2888_s0 + $0x400] sm:$0xff]  ;;  %v1076_v59 = vld [vmem:[%s2888_s0 + $0x410] sm:$0xff] }
  0x1f   :  { %1017 = vst [vmem:[%s2889_s1 + $0x6e0] sm:$0xff] %v1016_v29  ;;  %v1078_v60 = vld [vmem:[%s2888_s0 + $0x360] sm:$0xff]  ;;  %v1098_v6 = vld [vmem:[%s2888_s0 + $0x370] sm:$0xff] }
  0x20   :  { %1019 = vst [vmem:[%s2889_s1 + $0x30] sm:$0xff] %v1018_v30  ;;  %v1080_v61 = vld [vmem:[%s2888_s0 + $0x720] sm:$0xff]  ;;  %v1100_v7 = vld [vmem:[%s2888_s0 + $0x730] sm:$0xff] }
  0x21   :  { %1021 = vst [vmem:[%s2889_s1 + $0x3f0] sm:$0xff] %v1020_v31  ;;  %v1082_v62 = vld [vmem:[%s2888_s0 + $0x2a0] sm:$0xff]  ;;  %v1102_v8 = vld [vmem:[%s2888_s0 + $0x2b0] sm:$0xff] }
  0x22   :  { %1023 = vst [vmem:[%s2889_s1 + $0xf0] sm:$0xff] %v1022_v32  ;;  %v1084_v63 = vld [vmem:[%s2888_s0 + $0x660] sm:$0xff]  ;;  %v1104_v9 = vld [vmem:[%s2888_s0 + $0x670] sm:$0xff] }
  0x23   :  { %1025 = vst [vmem:[%s2889_s1 + $0x4b0] sm:$0xff] %v1024_v33  ;;  %v1086_v0 = vld [vmem:[%s2888_s0 + $0x1e0] sm:$0xff]  ;;  %v1106_v10 = vld [vmem:[%s2888_s0 + $0x1f0] sm:$0xff] }
  0x24   :  { %1027 = vst [vmem:[%s2889_s1 + $0x1b0] sm:$0xff] %v1026_v34  ;;  %v1088_v1 = vld [vmem:[%s2888_s0 + $0x5a0] sm:$0xff]  ;;  %v1108_v11 = vld [vmem:[%s2888_s0 + $0x5b0] sm:$0xff] }
  0x25   :  { %1029 = vst [vmem:[%s2889_s1 + $0x570] sm:$0xff] %v1028_v35  ;;  %v1090_v2 = vld [vmem:[%s2888_s0 + $0x120] sm:$0xff]  ;;  %v1110_v12 = vld [vmem:[%s2888_s0 + $0x130] sm:$0xff] }
  0x26   :  { %1031 = vst [vmem:[%s2889_s1 + $0x270] sm:$0xff] %v1030_v36  ;;  %v1092_v3 = vld [vmem:[%s2888_s0 + $0x4e0] sm:$0xff]  ;;  %v1112_v13 = vld [vmem:[%s2888_s0 + $0x4f0] sm:$0xff] }
  0x27   :  { %1033 = vst [vmem:[%s2889_s1 + $0x630] sm:$0xff] %v1032_v37  ;;  %v1094_v4 = vld [vmem:[%s2888_s0 + $0x60] sm:$0xff]  ;;  %v1114_v14 = vld [vmem:[%s2888_s0 + $0x70] sm:$0xff] }
  0x28   :  { %1035 = vst [vmem:[%s2889_s1 + $0x330] sm:$0xff] %v1034_v38  ;;  %v1096_v5 = vld [vmem:[%s2888_s0 + $0x420] sm:$0xff]  ;;  %v1116_v15 = vld [vmem:[%s2888_s0 + $0x430] sm:$0xff] }
  0x29   :  { %1037 = vst [vmem:[%s2889_s1 + $0x6f0] sm:$0xff] %v1036_v39  ;;  %v1118_v16 = vld [vmem:[%s2888_s0 + $0x380] sm:$0xff]  ;;  %v1138_v26 = vld [vmem:[%s2888_s0 + $0x390] sm:$0xff] }
  0x2a   :  { %1039 = vst [vmem:[%s2889_s1 + $0x40] sm:$0xff] %v1038_v40  ;;  %v1120_v17 = vld [vmem:[%s2888_s0 + $0x740] sm:$0xff]  ;;  %v1140_v27 = vld [vmem:[%s2888_s0 + $0x750] sm:$0xff] }
  0x2b   :  { %1041 = vst [vmem:[%s2889_s1 + $0x400] sm:$0xff] %v1040_v41  ;;  %v1122_v18 = vld [vmem:[%s2888_s0 + $0x2c0] sm:$0xff]  ;;  %v1142_v28 = vld [vmem:[%s2888_s0 + $0x2d0] sm:$0xff] }
  0x2c   :  { %1043 = vst [vmem:[%s2889_s1 + $0x100] sm:$0xff] %v1042_v42  ;;  %v1124_v19 = vld [vmem:[%s2888_s0 + $0x680] sm:$0xff]  ;;  %v1144_v29 = vld [vmem:[%s2888_s0 + $0x690] sm:$0xff] }
  0x2d   :  { %1045 = vst [vmem:[%s2889_s1 + $0x4c0] sm:$0xff] %v1044_v43  ;;  %v1126_v20 = vld [vmem:[%s2888_s0 + $0x200] sm:$0xff]  ;;  %v1146_v30 = vld [vmem:[%s2888_s0 + $0x210] sm:$0xff] }
  0x2e   :  { %1047 = vst [vmem:[%s2889_s1 + $0x1c0] sm:$0xff] %v1046_v44  ;;  %v1128_v21 = vld [vmem:[%s2888_s0 + $0x5c0] sm:$0xff]  ;;  %v1148_v31 = vld [vmem:[%s2888_s0 + $0x5d0] sm:$0xff] }
  0x2f   :  { %1049 = vst [vmem:[%s2889_s1 + $0x580] sm:$0xff] %v1048_v45  ;;  %v1130_v22 = vld [vmem:[%s2888_s0 + $0x140] sm:$0xff]  ;;  %v1150_v32 = vld [vmem:[%s2888_s0 + $0x150] sm:$0xff] }
  0x30   :  { %1051 = vst [vmem:[%s2889_s1 + $0x280] sm:$0xff] %v1050_v46  ;;  %v1132_v23 = vld [vmem:[%s2888_s0 + $0x500] sm:$0xff]  ;;  %v1152_v33 = vld [vmem:[%s2888_s0 + $0x510] sm:$0xff] }
  0x31   :  { %1053 = vst [vmem:[%s2889_s1 + $0x640] sm:$0xff] %v1052_v47  ;;  %v1134_v24 = vld [vmem:[%s2888_s0 + $0x80] sm:$0xff]  ;;  %v1154_v34 = vld [vmem:[%s2888_s0 + $0x90] sm:$0xff] }
  0x32   :  { %1055 = vst [vmem:[%s2889_s1 + $0x340] sm:$0xff] %v1054_v48  ;;  %v1136_v25 = vld [vmem:[%s2888_s0 + $0x440] sm:$0xff]  ;;  %v1156_v35 = vld [vmem:[%s2888_s0 + $0x450] sm:$0xff] }
  0x33   :  { %1057 = vst [vmem:[%s2889_s1 + $0x700] sm:$0xff] %v1056_v49  ;;  %v1158_v36 = vld [vmem:[%s2888_s0 + $0x3a0] sm:$0xff]  ;;  %v1178_v46 = vld [vmem:[%s2888_s0 + $0x3b0] sm:$0xff] }
  0x34   :  { %1059 = vst [vmem:[%s2889_s1 + $0x50] sm:$0xff] %v1058_v50  ;;  %v1160_v37 = vld [vmem:[%s2888_s0 + $0x760] sm:$0xff]  ;;  %v1180_v47 = vld [vmem:[%s2888_s0 + $0x770] sm:$0xff] }
  0x35   :  { %1061 = vst [vmem:[%s2889_s1 + $0x410] sm:$0xff] %v1060_v51  ;;  %v1162_v38 = vld [vmem:[%s2888_s0 + $0x2e0] sm:$0xff]  ;;  %v1182_v48 = vld [vmem:[%s2888_s0 + $0x2f0] sm:$0xff] }
  0x36   :  { %1063 = vst [vmem:[%s2889_s1 + $0x110] sm:$0xff] %v1062_v52  ;;  %v1164_v39 = vld [vmem:[%s2888_s0 + $0x6a0] sm:$0xff]  ;;  %v1184_v49 = vld [vmem:[%s2888_s0 + $0x6b0] sm:$0xff] }
  0x37   :  { %1065 = vst [vmem:[%s2889_s1 + $0x4d0] sm:$0xff] %v1064_v53  ;;  %v1166_v40 = vld [vmem:[%s2888_s0 + $0x220] sm:$0xff]  ;;  %v1186_v50 = vld [vmem:[%s2888_s0 + $0x230] sm:$0xff] }
  0x38   :  { %1067 = vst [vmem:[%s2889_s1 + $0x1d0] sm:$0xff] %v1066_v54  ;;  %v1168_v41 = vld [vmem:[%s2888_s0 + $0x5e0] sm:$0xff]  ;;  %v1188_v51 = vld [vmem:[%s2888_s0 + $0x5f0] sm:$0xff] }
  0x39   :  { %1069 = vst [vmem:[%s2889_s1 + $0x590] sm:$0xff] %v1068_v55  ;;  %v1170_v42 = vld [vmem:[%s2888_s0 + $0x160] sm:$0xff]  ;;  %v1190_v52 = vld [vmem:[%s2888_s0 + $0x170] sm:$0xff] }
  0x3a   :  { %1071 = vst [vmem:[%s2889_s1 + $0x290] sm:$0xff] %v1070_v56  ;;  %v1172_v43 = vld [vmem:[%s2888_s0 + $0x520] sm:$0xff]  ;;  %v1192_v53 = vld [vmem:[%s2888_s0 + $0x530] sm:$0xff]  ;;  %v1198_v56 = vld [vmem:[%s2888_s0 + $0x308] sm:$0xff] }
  0x3b   :  { %1073 = vst [vmem:[%s2889_s1 + $0x650] sm:$0xff] %v1072_v57  ;;  %v1174_v44 = vld [vmem:[%s2888_s0 + $0xa0] sm:$0xff]  ;;  %v1194_v54 = vld [vmem:[%s2888_s0 + $0xb0] sm:$0xff]  ;;  %v1200_v57 = vld [vmem:[%s2888_s0 + $0x6c8] sm:$0xff] }
  0x3c   :  { %1075 = vst [vmem:[%s2889_s1 + $0x350] sm:$0xff] %v1074_v58  ;;  %v1176_v45 = vld [vmem:[%s2888_s0 + $0x460] sm:$0xff]  ;;  %v1196_v55 = vld [vmem:[%s2888_s0 + $0x470] sm:$0xff]  ;;  %v1202_v58 = vld [vmem:[%s2888_s0 + $0x248] sm:$0xff] }
  0x3d   :  { %1077 = vst [vmem:[%s2889_s1 + $0x710] sm:$0xff] %v1076_v59  ;;  %v1204_v59 = vld [vmem:[%s2888_s0 + $0x608] sm:$0xff] }
  0x3e   :  { %1079 = vst [vmem:[%s2889_s1 + $0x60] sm:$0xff] %v1078_v60  ;;  %v1206_v60 = vld [vmem:[%s2888_s0 + $0x188] sm:$0xff] }
  0x3f   :  { %1081 = vst [vmem:[%s2889_s1 + $0x420] sm:$0xff] %v1080_v61  ;;  %v1208_v61 = vld [vmem:[%s2888_s0 + $0x548] sm:$0xff] }
  0x40   :  { %1083 = vst [vmem:[%s2889_s1 + $0x120] sm:$0xff] %v1082_v62  ;;  %v1210_v62 = vld [vmem:[%s2888_s0 + $0xc8] sm:$0xff] }
  0x41   :  { %1085 = vst [vmem:[%s2889_s1 + $0x4e0] sm:$0xff] %v1084_v63  ;;  %v1212_v63 = vld [vmem:[%s2888_s0 + $0x488] sm:$0xff] }
  0x42   :  { %1087 = vst [vmem:[%s2889_s1 + $0x1e0] sm:$0xff] %v1086_v0  ;;  %v1214_v0 = vld [vmem:[%s2888_s0 + $0x8] sm:$0xff] }
  0x43   :  { %1089 = vst [vmem:[%s2889_s1 + $0x5a0] sm:$0xff] %v1088_v1  ;;  %v1216_v1 = vld [vmem:[%s2888_s0 + $0x3c8] sm:$0xff] }
  0x44   :  { %1091 = vst [vmem:[%s2889_s1 + $0x2a0] sm:$0xff] %v1090_v2  ;;  %v1218_v2 = vld [vmem:[%s2888_s0 + $0x318] sm:$0xff] }
  0x45   :  { %1093 = vst [vmem:[%s2889_s1 + $0x660] sm:$0xff] %v1092_v3  ;;  %v1220_v3 = vld [vmem:[%s2888_s0 + $0x6d8] sm:$0xff] }
  0x46   :  { %1095 = vst [vmem:[%s2889_s1 + $0x360] sm:$0xff] %v1094_v4  ;;  %v1222_v4 = vld [vmem:[%s2888_s0 + $0x258] sm:$0xff] }
  0x47   :  { %1097 = vst [vmem:[%s2889_s1 + $0x720] sm:$0xff] %v1096_v5  ;;  %v1224_v5 = vld [vmem:[%s2888_s0 + $0x618] sm:$0xff] }
  0x48   :  { %1099 = vst [vmem:[%s2889_s1 + $0x70] sm:$0xff] %v1098_v6  ;;  %v1226_v6 = vld [vmem:[%s2888_s0 + $0x198] sm:$0xff] }
  0x49   :  { %1101 = vst [vmem:[%s2889_s1 + $0x430] sm:$0xff] %v1100_v7  ;;  %v1228_v7 = vld [vmem:[%s2888_s0 + $0x558] sm:$0xff] }
  0x4a   :  { %1103 = vst [vmem:[%s2889_s1 + $0x130] sm:$0xff] %v1102_v8  ;;  %v1230_v8 = vld [vmem:[%s2888_s0 + $0xd8] sm:$0xff] }
  0x4b   :  { %1105 = vst [vmem:[%s2889_s1 + $0x4f0] sm:$0xff] %v1104_v9  ;;  %v1232_v9 = vld [vmem:[%s2888_s0 + $0x498] sm:$0xff] }
  0x4c   :  { %1107 = vst [vmem:[%s2889_s1 + $0x1f0] sm:$0xff] %v1106_v10  ;;  %v1234_v10 = vld [vmem:[%s2888_s0 + $0x18] sm:$0xff] }
  0x4d   :  { %1109 = vst [vmem:[%s2889_s1 + $0x5b0] sm:$0xff] %v1108_v11  ;;  %v1236_v11 = vld [vmem:[%s2888_s0 + $0x3d8] sm:$0xff] }
  0x4e   :  { %1111 = vst [vmem:[%s2889_s1 + $0x2b0] sm:$0xff] %v1110_v12  ;;  %v1238_v12 = vld [vmem:[%s2888_s0 + $0x328] sm:$0xff] }
  0x4f   :  { %1113 = vst [vmem:[%s2889_s1 + $0x670] sm:$0xff] %v1112_v13  ;;  %v1240_v13 = vld [vmem:[%s2888_s0 + $0x6e8] sm:$0xff] }
  0x50   :  { %1115 = vst [vmem:[%s2889_s1 + $0x370] sm:$0xff] %v1114_v14  ;;  %v1242_v14 = vld [vmem:[%s2888_s0 + $0x268] sm:$0xff] }
  0x51   :  { %1117 = vst [vmem:[%s2889_s1 + $0x730] sm:$0xff] %v1116_v15  ;;  %v1244_v15 = vld [vmem:[%s2888_s0 + $0x628] sm:$0xff] }
  0x52   :  { %1119 = vst [vmem:[%s2889_s1 + $0x80] sm:$0xff] %v1118_v16  ;;  %v1246_v16 = vld [vmem:[%s2888_s0 + $0x1a8] sm:$0xff] }
  0x53   :  { %1121 = vst [vmem:[%s2889_s1 + $0x440] sm:$0xff] %v1120_v17  ;;  %v1248_v17 = vld [vmem:[%s2888_s0 + $0x568] sm:$0xff] }
  0x54   :  { %1123 = vst [vmem:[%s2889_s1 + $0x140] sm:$0xff] %v1122_v18  ;;  %v1250_v18 = vld [vmem:[%s2888_s0 + $0xe8] sm:$0xff] }
  0x55   :  { %1125 = vst [vmem:[%s2889_s1 + $0x500] sm:$0xff] %v1124_v19  ;;  %v1252_v19 = vld [vmem:[%s2888_s0 + $0x4a8] sm:$0xff] }
  0x56   :  { %1127 = vst [vmem:[%s2889_s1 + $0x200] sm:$0xff] %v1126_v20  ;;  %v1254_v20 = vld [vmem:[%s2888_s0 + $0x28] sm:$0xff] }
  0x57   :  { %1129 = vst [vmem:[%s2889_s1 + $0x5c0] sm:$0xff] %v1128_v21  ;;  %v1256_v21 = vld [vmem:[%s2888_s0 + $0x3e8] sm:$0xff] }
  0x58   :  { %1131 = vst [vmem:[%s2889_s1 + $0x2c0] sm:$0xff] %v1130_v22  ;;  %v1258_v22 = vld [vmem:[%s2888_s0 + $0x338] sm:$0xff] }
  0x59   :  { %1133 = vst [vmem:[%s2889_s1 + $0x680] sm:$0xff] %v1132_v23  ;;  %v1260_v23 = vld [vmem:[%s2888_s0 + $0x6f8] sm:$0xff] }
  0x5a   :  { %1135 = vst [vmem:[%s2889_s1 + $0x380] sm:$0xff] %v1134_v24  ;;  %v1262_v24 = vld [vmem:[%s2888_s0 + $0x278] sm:$0xff] }
  0x5b   :  { %1137 = vst [vmem:[%s2889_s1 + $0x740] sm:$0xff] %v1136_v25  ;;  %v1264_v25 = vld [vmem:[%s2888_s0 + $0x638] sm:$0xff] }
  0x5c   :  { %1139 = vst [vmem:[%s2889_s1 + $0x90] sm:$0xff] %v1138_v26  ;;  %v1266_v26 = vld [vmem:[%s2888_s0 + $0x1b8] sm:$0xff] }
  0x5d   :  { %1141 = vst [vmem:[%s2889_s1 + $0x450] sm:$0xff] %v1140_v27  ;;  %v1268_v27 = vld [vmem:[%s2888_s0 + $0x578] sm:$0xff] }
  0x5e   :  { %1143 = vst [vmem:[%s2889_s1 + $0x150] sm:$0xff] %v1142_v28  ;;  %v1270_v28 = vld [vmem:[%s2888_s0 + $0xf8] sm:$0xff] }
  0x5f   :  { %1145 = vst [vmem:[%s2889_s1 + $0x510] sm:$0xff] %v1144_v29  ;;  %v1272_v29 = vld [vmem:[%s2888_s0 + $0x4b8] sm:$0xff] }
  0x60   :  { %1147 = vst [vmem:[%s2889_s1 + $0x210] sm:$0xff] %v1146_v30  ;;  %v1274_v30 = vld [vmem:[%s2888_s0 + $0x38] sm:$0xff] }
  0x61   :  { %1149 = vst [vmem:[%s2889_s1 + $0x5d0] sm:$0xff] %v1148_v31  ;;  %v1276_v31 = vld [vmem:[%s2888_s0 + $0x3f8] sm:$0xff] }
  0x62   :  { %1151 = vst [vmem:[%s2889_s1 + $0x2d0] sm:$0xff] %v1150_v32  ;;  %v1278_v32 = vld [vmem:[%s2888_s0 + $0x348] sm:$0xff] }
  0x63   :  { %1153 = vst [vmem:[%s2889_s1 + $0x690] sm:$0xff] %v1152_v33  ;;  %v1280_v33 = vld [vmem:[%s2888_s0 + $0x708] sm:$0xff] }
  0x64   :  { %1155 = vst [vmem:[%s2889_s1 + $0x390] sm:$0xff] %v1154_v34  ;;  %v1282_v34 = vld [vmem:[%s2888_s0 + $0x288] sm:$0xff] }
  0x65   :  { %1157 = vst [vmem:[%s2889_s1 + $0x750] sm:$0xff] %v1156_v35  ;;  %v1284_v35 = vld [vmem:[%s2888_s0 + $0x648] sm:$0xff] }
  0x66   :  { %1159 = vst [vmem:[%s2889_s1 + $0xa0] sm:$0xff] %v1158_v36  ;;  %v1286_v36 = vld [vmem:[%s2888_s0 + $0x1c8] sm:$0xff] }
  0x67   :  { %1161 = vst [vmem:[%s2889_s1 + $0x460] sm:$0xff] %v1160_v37  ;;  %v1288_v37 = vld [vmem:[%s2888_s0 + $0x588] sm:$0xff] }
  0x68   :  { %1163 = vst [vmem:[%s2889_s1 + $0x160] sm:$0xff] %v1162_v38  ;;  %v1290_v38 = vld [vmem:[%s2888_s0 + $0x108] sm:$0xff] }
  0x69   :  { %1165 = vst [vmem:[%s2889_s1 + $0x520] sm:$0xff] %v1164_v39  ;;  %v1292_v39 = vld [vmem:[%s2888_s0 + $0x4c8] sm:$0xff] }
  0x6a   :  { %1167 = vst [vmem:[%s2889_s1 + $0x220] sm:$0xff] %v1166_v40  ;;  %v1294_v40 = vld [vmem:[%s2888_s0 + $0x48] sm:$0xff] }
  0x6b   :  { %1169 = vst [vmem:[%s2889_s1 + $0x5e0] sm:$0xff] %v1168_v41  ;;  %v1296_v41 = vld [vmem:[%s2888_s0 + $0x408] sm:$0xff] }
  0x6c   :  { %1171 = vst [vmem:[%s2889_s1 + $0x2e0] sm:$0xff] %v1170_v42  ;;  %v1298_v42 = vld [vmem:[%s2888_s0 + $0x358] sm:$0xff] }
  0x6d   :  { %1173 = vst [vmem:[%s2889_s1 + $0x6a0] sm:$0xff] %v1172_v43  ;;  %v1300_v43 = vld [vmem:[%s2888_s0 + $0x718] sm:$0xff] }
  0x6e   :  { %1175 = vst [vmem:[%s2889_s1 + $0x3a0] sm:$0xff] %v1174_v44  ;;  %v1302_v44 = vld [vmem:[%s2888_s0 + $0x298] sm:$0xff] }
  0x6f   :  { %1177 = vst [vmem:[%s2889_s1 + $0x760] sm:$0xff] %v1176_v45  ;;  %v1304_v45 = vld [vmem:[%s2888_s0 + $0x658] sm:$0xff] }
  0x70   :  { %1179 = vst [vmem:[%s2889_s1 + $0xb0] sm:$0xff] %v1178_v46  ;;  %v1306_v46 = vld [vmem:[%s2888_s0 + $0x1d8] sm:$0xff] }
  0x71   :  { %1181 = vst [vmem:[%s2889_s1 + $0x470] sm:$0xff] %v1180_v47  ;;  %v1308_v47 = vld [vmem:[%s2888_s0 + $0x598] sm:$0xff] }
  0x72   :  { %1183 = vst [vmem:[%s2889_s1 + $0x170] sm:$0xff] %v1182_v48  ;;  %v1310_v48 = vld [vmem:[%s2888_s0 + $0x118] sm:$0xff] }
  0x73   :  { %1185 = vst [vmem:[%s2889_s1 + $0x530] sm:$0xff] %v1184_v49  ;;  %v1312_v49 = vld [vmem:[%s2888_s0 + $0x4d8] sm:$0xff] }
  0x74   :  { %1187 = vst [vmem:[%s2889_s1 + $0x230] sm:$0xff] %v1186_v50  ;;  %v1314_v50 = vld [vmem:[%s2888_s0 + $0x58] sm:$0xff] }
  0x75   :  { %1189 = vst [vmem:[%s2889_s1 + $0x5f0] sm:$0xff] %v1188_v51  ;;  %v1316_v51 = vld [vmem:[%s2888_s0 + $0x418] sm:$0xff] }
  0x76   :  { %1191 = vst [vmem:[%s2889_s1 + $0x2f0] sm:$0xff] %v1190_v52  ;;  %v1318_v52 = vld [vmem:[%s2888_s0 + $0x368] sm:$0xff] }
  0x77   :  { %1193 = vst [vmem:[%s2889_s1 + $0x6b0] sm:$0xff] %v1192_v53  ;;  %v1320_v53 = vld [vmem:[%s2888_s0 + $0x728] sm:$0xff] }
  0x78   :  { %1195 = vst [vmem:[%s2889_s1 + $0x3b0] sm:$0xff] %v1194_v54  ;;  %v1322_v54 = vld [vmem:[%s2888_s0 + $0x2a8] sm:$0xff] }
  0x79   :  { %1197 = vst [vmem:[%s2889_s1 + $0x770] sm:$0xff] %v1196_v55  ;;  %v1324_v55 = vld [vmem:[%s2888_s0 + $0x668] sm:$0xff] }
  0x7a   :  { %1199 = vst [vmem:[%s2889_s1 + $0x8] sm:$0xff] %v1198_v56  ;;  %v1326_v56 = vld [vmem:[%s2888_s0 + $0x1e8] sm:$0xff] }
  0x7b   :  { %1201 = vst [vmem:[%s2889_s1 + $0x3c8] sm:$0xff] %v1200_v57  ;;  %v1328_v57 = vld [vmem:[%s2888_s0 + $0x5a8] sm:$0xff] }
  0x7c   :  { %1203 = vst [vmem:[%s2889_s1 + $0xc8] sm:$0xff] %v1202_v58  ;;  %v1330_v58 = vld [vmem:[%s2888_s0 + $0x128] sm:$0xff] }
  0x7d   :  { %1205 = vst [vmem:[%s2889_s1 + $0x488] sm:$0xff] %v1204_v59  ;;  %v1332_v59 = vld [vmem:[%s2888_s0 + $0x4e8] sm:$0xff] }
  0x7e   :  { %1207 = vst [vmem:[%s2889_s1 + $0x188] sm:$0xff] %v1206_v60  ;;  %v1334_v60 = vld [vmem:[%s2888_s0 + $0x68] sm:$0xff] }
  0x7f   :  { %1209 = vst [vmem:[%s2889_s1 + $0x548] sm:$0xff] %v1208_v61  ;;  %v1336_v61 = vld [vmem:[%s2888_s0 + $0x428] sm:$0xff] }
  0x80   :  { %1211 = vst [vmem:[%s2889_s1 + $0x248] sm:$0xff] %v1210_v62  ;;  %v1338_v62 = vld [vmem:[%s2888_s0 + $0x378] sm:$0xff] }
  0x81   :  { %1213 = vst [vmem:[%s2889_s1 + $0x608] sm:$0xff] %v1212_v63  ;;  %v1340_v63 = vld [vmem:[%s2888_s0 + $0x738] sm:$0xff] }
  0x82   :  { %1215 = vst [vmem:[%s2889_s1 + $0x308] sm:$0xff] %v1214_v0  ;;  %v1342_v0 = vld [vmem:[%s2888_s0 + $0x2b8] sm:$0xff] }
  0x83   :  { %1217 = vst [vmem:[%s2889_s1 + $0x6c8] sm:$0xff] %v1216_v1  ;;  %v1344_v1 = vld [vmem:[%s2888_s0 + $0x678] sm:$0xff] }
  0x84   :  { %1219 = vst [vmem:[%s2889_s1 + $0x18] sm:$0xff] %v1218_v2  ;;  %v1346_v2 = vld [vmem:[%s2888_s0 + $0x1f8] sm:$0xff] }
  0x85   :  { %1221 = vst [vmem:[%s2889_s1 + $0x3d8] sm:$0xff] %v1220_v3  ;;  %v1348_v3 = vld [vmem:[%s2888_s0 + $0x5b8] sm:$0xff] }
  0x86   :  { %1223 = vst [vmem:[%s2889_s1 + $0xd8] sm:$0xff] %v1222_v4  ;;  %v1350_v4 = vld [vmem:[%s2888_s0 + $0x138] sm:$0xff] }
  0x87   :  { %1225 = vst [vmem:[%s2889_s1 + $0x498] sm:$0xff] %v1224_v5  ;;  %v1352_v5 = vld [vmem:[%s2888_s0 + $0x4f8] sm:$0xff] }
  0x88   :  { %1227 = vst [vmem:[%s2889_s1 + $0x198] sm:$0xff] %v1226_v6  ;;  %v1354_v6 = vld [vmem:[%s2888_s0 + $0x78] sm:$0xff] }
  0x89   :  { %1229 = vst [vmem:[%s2889_s1 + $0x558] sm:$0xff] %v1228_v7  ;;  %v1356_v7 = vld [vmem:[%s2888_s0 + $0x438] sm:$0xff] }
  0x8a   :  { %1231 = vst [vmem:[%s2889_s1 + $0x258] sm:$0xff] %v1230_v8  ;;  %v1358_v8 = vld [vmem:[%s2888_s0 + $0x388] sm:$0xff] }
  0x8b   :  { %1233 = vst [vmem:[%s2889_s1 + $0x618] sm:$0xff] %v1232_v9  ;;  %v1360_v9 = vld [vmem:[%s2888_s0 + $0x748] sm:$0xff] }
  0x8c   :  { %1235 = vst [vmem:[%s2889_s1 + $0x318] sm:$0xff] %v1234_v10  ;;  %v1362_v10 = vld [vmem:[%s2888_s0 + $0x2c8] sm:$0xff] }
  0x8d   :  { %1237 = vst [vmem:[%s2889_s1 + $0x6d8] sm:$0xff] %v1236_v11  ;;  %v1364_v11 = vld [vmem:[%s2888_s0 + $0x688] sm:$0xff] }
  0x8e   :  { %1239 = vst [vmem:[%s2889_s1 + $0x28] sm:$0xff] %v1238_v12  ;;  %v1366_v12 = vld [vmem:[%s2888_s0 + $0x208] sm:$0xff] }
  0x8f   :  { %1241 = vst [vmem:[%s2889_s1 + $0x3e8] sm:$0xff] %v1240_v13  ;;  %v1368_v13 = vld [vmem:[%s2888_s0 + $0x5c8] sm:$0xff] }
  0x90   :  { %1243 = vst [vmem:[%s2889_s1 + $0xe8] sm:$0xff] %v1242_v14  ;;  %v1370_v14 = vld [vmem:[%s2888_s0 + $0x148] sm:$0xff] }
  0x91   :  { %1245 = vst [vmem:[%s2889_s1 + $0x4a8] sm:$0xff] %v1244_v15  ;;  %v1372_v15 = vld [vmem:[%s2888_s0 + $0x508] sm:$0xff] }
  0x92   :  { %1247 = vst [vmem:[%s2889_s1 + $0x1a8] sm:$0xff] %v1246_v16  ;;  %v1374_v16 = vld [vmem:[%s2888_s0 + $0x88] sm:$0xff] }
  0x93   :  { %1249 = vst [vmem:[%s2889_s1 + $0x568] sm:$0xff] %v1248_v17  ;;  %v1376_v17 = vld [vmem:[%s2888_s0 + $0x448] sm:$0xff] }
  0x94   :  { %1251 = vst [vmem:[%s2889_s1 + $0x268] sm:$0xff] %v1250_v18  ;;  %v1378_v18 = vld [vmem:[%s2888_s0 + $0x398] sm:$0xff] }
  0x95   :  { %1253 = vst [vmem:[%s2889_s1 + $0x628] sm:$0xff] %v1252_v19  ;;  %v1380_v19 = vld [vmem:[%s2888_s0 + $0x758] sm:$0xff] }
  0x96   :  { %1255 = vst [vmem:[%s2889_s1 + $0x328] sm:$0xff] %v1254_v20  ;;  %v1382_v20 = vld [vmem:[%s2888_s0 + $0x2d8] sm:$0xff] }
  0x97   :  { %1257 = vst [vmem:[%s2889_s1 + $0x6e8] sm:$0xff] %v1256_v21  ;;  %v1384_v21 = vld [vmem:[%s2888_s0 + $0x698] sm:$0xff] }
  0x98   :  { %1259 = vst [vmem:[%s2889_s1 + $0x38] sm:$0xff] %v1258_v22  ;;  %v1386_v22 = vld [vmem:[%s2888_s0 + $0x218] sm:$0xff] }
  0x99   :  { %1261 = vst [vmem:[%s2889_s1 + $0x3f8] sm:$0xff] %v1260_v23  ;;  %v1388_v23 = vld [vmem:[%s2888_s0 + $0x5d8] sm:$0xff] }
  0x9a   :  { %1263 = vst [vmem:[%s2889_s1 + $0xf8] sm:$0xff] %v1262_v24  ;;  %v1390_v24 = vld [vmem:[%s2888_s0 + $0x158] sm:$0xff] }
  0x9b   :  { %1265 = vst [vmem:[%s2889_s1 + $0x4b8] sm:$0xff] %v1264_v25  ;;  %v1392_v25 = vld [vmem:[%s2888_s0 + $0x518] sm:$0xff] }
  0x9c   :  { %1267 = vst [vmem:[%s2889_s1 + $0x1b8] sm:$0xff] %v1266_v26  ;;  %v1394_v26 = vld [vmem:[%s2888_s0 + $0x98] sm:$0xff] }
  0x9d   :  { %1269 = vst [vmem:[%s2889_s1 + $0x578] sm:$0xff] %v1268_v27  ;;  %v1396_v27 = vld [vmem:[%s2888_s0 + $0x458] sm:$0xff] }
  0x9e   :  { %1271 = vst [vmem:[%s2889_s1 + $0x278] sm:$0xff] %v1270_v28  ;;  %v1398_v28 = vld [vmem:[%s2888_s0 + $0x3a8] sm:$0xff] }
  0x9f   :  { %1273 = vst [vmem:[%s2889_s1 + $0x638] sm:$0xff] %v1272_v29  ;;  %v1400_v29 = vld [vmem:[%s2888_s0 + $0x768] sm:$0xff] }
  0xa0   :  { %1275 = vst [vmem:[%s2889_s1 + $0x338] sm:$0xff] %v1274_v30  ;;  %v1402_v30 = vld [vmem:[%s2888_s0 + $0x2e8] sm:$0xff] }
  0xa1   :  { %1277 = vst [vmem:[%s2889_s1 + $0x6f8] sm:$0xff] %v1276_v31  ;;  %v1404_v31 = vld [vmem:[%s2888_s0 + $0x6a8] sm:$0xff] }
  0xa2   :  { %1279 = vst [vmem:[%s2889_s1 + $0x48] sm:$0xff] %v1278_v32  ;;  %v1406_v32 = vld [vmem:[%s2888_s0 + $0x228] sm:$0xff] }
  0xa3   :  { %1281 = vst [vmem:[%s2889_s1 + $0x408] sm:$0xff] %v1280_v33  ;;  %v1408_v33 = vld [vmem:[%s2888_s0 + $0x5e8] sm:$0xff] }
  0xa4   :  { %1283 = vst [vmem:[%s2889_s1 + $0x108] sm:$0xff] %v1282_v34  ;;  %v1410_v34 = vld [vmem:[%s2888_s0 + $0x168] sm:$0xff] }
  0xa5   :  { %1285 = vst [vmem:[%s2889_s1 + $0x4c8] sm:$0xff] %v1284_v35  ;;  %v1412_v35 = vld [vmem:[%s2888_s0 + $0x528] sm:$0xff] }
  0xa6   :  { %1287 = vst [vmem:[%s2889_s1 + $0x1c8] sm:$0xff] %v1286_v36  ;;  %v1414_v36 = vld [vmem:[%s2888_s0 + $0xa8] sm:$0xff] }
  0xa7   :  { %1289 = vst [vmem:[%s2889_s1 + $0x588] sm:$0xff] %v1288_v37  ;;  %v1416_v37 = vld [vmem:[%s2888_s0 + $0x468] sm:$0xff] }
  0xa8   :  { %1291 = vst [vmem:[%s2889_s1 + $0x288] sm:$0xff] %v1290_v38  ;;  %v1418_v38 = vld [vmem:[%s2888_s0 + $0x3b8] sm:$0xff] }
  0xa9   :  { %1293 = vst [vmem:[%s2889_s1 + $0x648] sm:$0xff] %v1292_v39  ;;  %v1420_v39 = vld [vmem:[%s2888_s0 + $0x778] sm:$0xff] }
  0xaa   :  { %1295 = vst [vmem:[%s2889_s1 + $0x348] sm:$0xff] %v1294_v40  ;;  %v1422_v40 = vld [vmem:[%s2888_s0 + $0x2f8] sm:$0xff] }
  0xab   :  { %1297 = vst [vmem:[%s2889_s1 + $0x708] sm:$0xff] %v1296_v41  ;;  %v1424_v41 = vld [vmem:[%s2888_s0 + $0x6b8] sm:$0xff] }
  0xac   :  { %1299 = vst [vmem:[%s2889_s1 + $0x58] sm:$0xff] %v1298_v42  ;;  %v1426_v42 = vld [vmem:[%s2888_s0 + $0x238] sm:$0xff] }
  0xad   :  { %1301 = vst [vmem:[%s2889_s1 + $0x418] sm:$0xff] %v1300_v43  ;;  %v1428_v43 = vld [vmem:[%s2888_s0 + $0x5f8] sm:$0xff] }
  0xae   :  { %1303 = vst [vmem:[%s2889_s1 + $0x118] sm:$0xff] %v1302_v44  ;;  %v1430_v44 = vld [vmem:[%s2888_s0 + $0x178] sm:$0xff] }
  0xaf   :  { %1305 = vst [vmem:[%s2889_s1 + $0x4d8] sm:$0xff] %v1304_v45  ;;  %v1432_v45 = vld [vmem:[%s2888_s0 + $0x538] sm:$0xff] }
  0xb0   :  { %1307 = vst [vmem:[%s2889_s1 + $0x1d8] sm:$0xff] %v1306_v46  ;;  %v1434_v46 = vld [vmem:[%s2888_s0 + $0xb8] sm:$0xff] }
  0xb1   :  { %1309 = vst [vmem:[%s2889_s1 + $0x598] sm:$0xff] %v1308_v47  ;;  %v1436_v47 = vld [vmem:[%s2888_s0 + $0x478] sm:$0xff] }
  0xb2   :  { %1311 = vst [vmem:[%s2889_s1 + $0x298] sm:$0xff] %v1310_v48 }
  0xb3   :  { %1313 = vst [vmem:[%s2889_s1 + $0x658] sm:$0xff] %v1312_v49 }
  0xb4   :  { %1315 = vst [vmem:[%s2889_s1 + $0x358] sm:$0xff] %v1314_v50 }
  0xb5   :  { %1317 = vst [vmem:[%s2889_s1 + $0x718] sm:$0xff] %v1316_v51 }
  0xb6   :  { %1319 = vst [vmem:[%s2889_s1 + $0x68] sm:$0xff] %v1318_v52 }
  0xb7   :  { %1321 = vst [vmem:[%s2889_s1 + $0x428] sm:$0xff] %v1320_v53 }
  0xb8   :  { %1323 = vst [vmem:[%s2889_s1 + $0x128] sm:$0xff] %v1322_v54 }
  0xb9   :  { %1325 = vst [vmem:[%s2889_s1 + $0x4e8] sm:$0xff] %v1324_v55 }
  0xba   :  { %1327 = vst [vmem:[%s2889_s1 + $0x1e8] sm:$0xff] %v1326_v56 }
  0xbb   :  { %1329 = vst [vmem:[%s2889_s1 + $0x5a8] sm:$0xff] %v1328_v57 }
  0xbc   :  { %1331 = vst [vmem:[%s2889_s1 + $0x2a8] sm:$0xff] %v1330_v58 }
  0xbd   :  { %1333 = vst [vmem:[%s2889_s1 + $0x668] sm:$0xff] %v1332_v59 }
  0xbe   :  { %1335 = vst [vmem:[%s2889_s1 + $0x368] sm:$0xff] %v1334_v60 }
  0xbf   :  { %1337 = vst [vmem:[%s2889_s1 + $0x728] sm:$0xff] %v1336_v61 }
  0xc0   :  { %1339 = vst [vmem:[%s2889_s1 + $0x78] sm:$0xff] %v1338_v62 }
  0xc1   :  { %1341 = vst [vmem:[%s2889_s1 + $0x438] sm:$0xff] %v1340_v63 }
  0xc2   :  { %1343 = vst [vmem:[%s2889_s1 + $0x138] sm:$0xff] %v1342_v0 }
  0xc3   :  { %1345 = vst [vmem:[%s2889_s1 + $0x4f8] sm:$0xff] %v1344_v1 }
  0xc4   :  { %1347 = vst [vmem:[%s2889_s1 + $0x1f8] sm:$0xff] %v1346_v2 }
  0xc5   :  { %1349 = vst [vmem:[%s2889_s1 + $0x5b8] sm:$0xff] %v1348_v3 }
  0xc6   :  { %1351 = vst [vmem:[%s2889_s1 + $0x2b8] sm:$0xff] %v1350_v4 }
  0xc7   :  { %1353 = vst [vmem:[%s2889_s1 + $0x678] sm:$0xff] %v1352_v5 }
  0xc8   :  { %1355 = vst [vmem:[%s2889_s1 + $0x378] sm:$0xff] %v1354_v6 }
  0xc9   :  { %1357 = vst [vmem:[%s2889_s1 + $0x738] sm:$0xff] %v1356_v7 }
  0xca   :  { %1359 = vst [vmem:[%s2889_s1 + $0x88] sm:$0xff] %v1358_v8 }
  0xcb   :  { %1361 = vst [vmem:[%s2889_s1 + $0x448] sm:$0xff] %v1360_v9 }
  0xcc   :  { %1363 = vst [vmem:[%s2889_s1 + $0x148] sm:$0xff] %v1362_v10 }
  0xcd   :  { %1365 = vst [vmem:[%s2889_s1 + $0x508] sm:$0xff] %v1364_v11 }
  0xce   :  { %1367 = vst [vmem:[%s2889_s1 + $0x208] sm:$0xff] %v1366_v12 }
  0xcf   :  { %1369 = vst [vmem:[%s2889_s1 + $0x5c8] sm:$0xff] %v1368_v13 }
  0xd0   :  { %1371 = vst [vmem:[%s2889_s1 + $0x2c8] sm:$0xff] %v1370_v14 }
  0xd1   :  { %1373 = vst [vmem:[%s2889_s1 + $0x688] sm:$0xff] %v1372_v15 }
  0xd2   :  { %1375 = vst [vmem:[%s2889_s1 + $0x388] sm:$0xff] %v1374_v16 }
  0xd3   :  { %1377 = vst [vmem:[%s2889_s1 + $0x748] sm:$0xff] %v1376_v17 }
  0xd4   :  { %1379 = vst [vmem:[%s2889_s1 + $0x98] sm:$0xff] %v1378_v18 }
  0xd5   :  { %1381 = vst [vmem:[%s2889_s1 + $0x458] sm:$0xff] %v1380_v19 }
  0xd6   :  { %1383 = vst [vmem:[%s2889_s1 + $0x158] sm:$0xff] %v1382_v20 }
  0xd7   :  { %1385 = vst [vmem:[%s2889_s1 + $0x518] sm:$0xff] %v1384_v21 }
  0xd8   :  { %1387 = vst [vmem:[%s2889_s1 + $0x218] sm:$0xff] %v1386_v22 }
  0xd9   :  { %1389 = vst [vmem:[%s2889_s1 + $0x5d8] sm:$0xff] %v1388_v23 }
  0xda   :  { %1391 = vst [vmem:[%s2889_s1 + $0x2d8] sm:$0xff] %v1390_v24 }
  0xdb   :  { %1393 = vst [vmem:[%s2889_s1 + $0x698] sm:$0xff] %v1392_v25 }
  0xdc   :  { %1395 = vst [vmem:[%s2889_s1 + $0x398] sm:$0xff] %v1394_v26 }
  0xdd   :  { %1397 = vst [vmem:[%s2889_s1 + $0x758] sm:$0xff] %v1396_v27 }
  0xde   :  { %1399 = vst [vmem:[%s2889_s1 + $0xa8] sm:$0xff] %v1398_v28 }
  0xdf   :  { %1401 = vst [vmem:[%s2889_s1 + $0x468] sm:$0xff] %v1400_v29 }
  0xe0   :  { %1403 = vst [vmem:[%s2889_s1 + $0x168] sm:$0xff] %v1402_v30 }
  0xe1   :  { %1405 = vst [vmem:[%s2889_s1 + $0x528] sm:$0xff] %v1404_v31 }
  0xe2   :  { %1407 = vst [vmem:[%s2889_s1 + $0x228] sm:$0xff] %v1406_v32 }
  0xe3   :  { %1409 = vst [vmem:[%s2889_s1 + $0x5e8] sm:$0xff] %v1408_v33 }
  0xe4   :  { %1411 = vst [vmem:[%s2889_s1 + $0x2e8] sm:$0xff] %v1410_v34 }
  0xe5   :  { %1413 = vst [vmem:[%s2889_s1 + $0x6a8] sm:$0xff] %v1412_v35 }
  0xe6   :  { %1415 = vst [vmem:[%s2889_s1 + $0x3a8] sm:$0xff] %v1414_v36 }
  0xe7   :  { %1417 = vst [vmem:[%s2889_s1 + $0x768] sm:$0xff] %v1416_v37 }
  0xe8   :  { %1419 = vst [vmem:[%s2889_s1 + $0xb8] sm:$0xff] %v1418_v38 }
  0xe9   :  { %1421 = vst [vmem:[%s2889_s1 + $0x478] sm:$0xff] %v1420_v39 }
  0xea   :  { %1423 = vst [vmem:[%s2889_s1 + $0x178] sm:$0xff] %v1422_v40 }
  0xeb   :  { %1425 = vst [vmem:[%s2889_s1 + $0x538] sm:$0xff] %v1424_v41 }
  0xec   :  { %1427 = vst [vmem:[%s2889_s1 + $0x238] sm:$0xff] %v1426_v42 }
  0xed   :  { %1429 = vst [vmem:[%s2889_s1 + $0x5f8] sm:$0xff] %v1428_v43 }
  0xee   :  { %1431 = vst [vmem:[%s2889_s1 + $0x2f8] sm:$0xff] %v1430_v44 }
  0xef   :  { %1433 = vst [vmem:[%s2889_s1 + $0x6b8] sm:$0xff] %v1432_v45 }
  0xf0   :  { %1435 = vst [vmem:[%s2889_s1 + $0x3b8] sm:$0xff] %v1434_v46 }
  0xf1   :  { %1437 = vst [vmem:[%s2889_s1 + $0x778] sm:$0xff] %v1436_v47 }

// kernel: fno3d_encoder_forward.7
= control target key start
LH: loop header
LB: loop body
LE: loop exit
PB: predicated region body
PF: predicated region fallthrough
CT: control target
= control target key end

     0   :  { %s2269_s15 = smov 0   ;;  %s2271_s16 = smov 0   ;;  %s3457_s0 = inlined_call_operand.vmem [shape: f32[2,16,1728], index: 0, kind: input, shape index: {}]   ;;  %s3458_s1 = inlined_call_operand.vmem [shape: f32[16,16], index: 1, kind: input, shape index: {}]   ;;  %s3459_s2 = inlined_call_operand.vmem [shape: f32[16,1], index: 2, kind: input, shape index: {}]   ;;  %s3460_s3 = inlined_call_operand.vmem [shape: f32[2,16,1728], index: 3, kind: input, shape index: {}]   ;;  %s3461_s4 = inlined_call_operand.vmem [shape: f32[2,16,1728], index: 4, kind: output, shape index: {}]  }
   0x1   :  { %s2273_s17 = smov 0  }
   0x2 LB: > { %s26_s18 = sadd.s32 1, %s2237_s16  ;;  %p2070_p0 = scmp.ge.s32.totalorder %s2241_s17, 1  ;;  %s2241_s17 = sphi %s2273_s17, %s14_s17   ;;  %s2237_s16 = sphi %s2271_s16, %s3497_s16   ;;  %s2233_s15 = sphi %s2269_s15, %s3496_s15  }
   0x3   : > { %p28_p1 = scmp.ge.s32.totalorder %s26_s18, 2  ;;  %p200_p2 = scmp.lt.s32.totalorder %s2241_s17, 3 }
   0x5   : > { %s3499_s18 = smov (%p28_p1, %s26_s18), 0  ;;  %p201_p3 = pnand %p2070_p0, %p200_p2 }
   0x6   : > { %p244_p4 = scmp.lt.s32.totalorder (!%p201_p3), %s2233_s15, 1 }
   0x7   : > { %204 = sbr.rel (%p201_p3) target bundleno = 479 (0x1df), region = 36 }
   0xc   : > { %v303_v0 = vld [vmem:[%s3459_s2] sm:$0xff]  ;;  %v2243_v1 = vmov 0   ;;  %s3501_s15 = smov (!%p244_p4, %s2233_s15), 1  ;;  %vm315_vm0 = vcmask 130048   ;;  %v2310_v7 = vld [vmem:[%s3458_s1 + $0x8] sm:$0xff] }
   0xd   : > { %2162 = vset.pattern.permute.xlu0 %v2243_v1  ;;  %s2290_s21 = smul.u32 224, %s3501_s15  ;;  %v2305_v6 = vld [vmem:[%s3458_s1] sm:$0xff]  ;;  %v304_v22 = vld [vmem:[%s3459_s2 + $0x8] sm:$0xff] }
   0xe   : > { %307 = vperm.xlu0 %2162, %v303_v0  }
   0xf   : > { %s2296_s24 = scalar_lea.vmem %s3457_s0, %s2290_s21  ;;  %s2401_s7 = scalar_lea.vmem %s3460_s3, %s2290_s21 }
  0x10   : > { %v289_v2 = vld [vmem:[%s2296_s24 + $0x70] sm:$0xff]  ;;  %v290_v3 = vld [vmem:[%s2296_s24 + $0x78] sm:$0xff]  ;;  %v275_v4 = vld [vmem:[%s2296_s24] sm:$0xff]  ;;  %s2588_s10 = scalar_lea.vmem %s3461_s4, %s2290_s21 }
  0x11   : > { %336 = vmatpush.msra.mxu0 %v289_v2  ;;  %2132 = vmatpush.msra.mxu2 %v289_v2  ;;  %v276_v5 = vld [vmem:[%s2296_s24 + $0x8] sm:$0xff]  ;;  %v291_v8 = vld [vmem:[%s2296_s24 + $0x80] sm:$0xff]  ;;  %v293_v10 = vld [vmem:[%s2296_s24 + $0x90] sm:$0xff] }
  0x12   : > { %359 = vmatpush.msra.mxu1 %v290_v3  ;;  %2134 = vmatpush.msra.mxu3 %v290_v3  ;;  %v292_v9 = vld [vmem:[%s2296_s24 + $0x88] sm:$0xff]  ;;  %v294_v11 = vld [vmem:[%s2296_s24 + $0x98] sm:$0xff]  ;;  %v277_v12 = vld [vmem:[%s2296_s24 + $0x10] sm:$0xff] }
  0x13   : > { %337 = vmatpush.msra.mxu0 %v275_v4  ;;  %2133 = vmatpush.msra.mxu2 %v275_v4  ;;  %v278_v13 = vld [vmem:[%s2296_s24 + $0x18] sm:$0xff]  ;;  %v279_v14 = vld [vmem:[%s2296_s24 + $0x20] sm:$0xff]  ;;  %v280_v15 = vld [vmem:[%s2296_s24 + $0x28] sm:$0xff] }
  0x14   : > { %360 = vmatpush.msra.mxu1 %v276_v5  ;;  %2135 = vmatpush.msra.mxu3 %v276_v5  ;;  %v295_v16 = vld [vmem:[%s2296_s24 + $0xa0] sm:$0xff]  ;;  %v296_v17 = vld [vmem:[%s2296_s24 + $0xa8] sm:$0xff]  ;;  %v297_v18 = vld [vmem:[%s2296_s24 + $0xb0] sm:$0xff] }
  0x15   : > { %2074 = vmatmul.msk.f32.vlgmr.msra.gmra.mxu0 %vm315_vm0, %v2305_v6  ;;  %2075 = vmatmul.msk.f32.vlgmr.msra.gmra.mxu2 %vm315_vm0, %v2310_v7  ;;  %v298_v19 = vld [vmem:[%s2296_s24 + $0xb8] sm:$0xff]  ;;  %v281_v20 = vld [vmem:[%s2296_s24 + $0x30] sm:$0xff]  ;;  %v283_v23 = vld [vmem:[%s2296_s24 + $0x40] sm:$0xff] }
  0x16   : > { %2076 = vmatmul.msk.f32.vlgmr.msra.gmra.mxu1 %vm315_vm0, %v2305_v6  ;;  %2077 = vmatmul.msk.f32.vlgmr.msra.gmra.mxu3 %vm315_vm0, %v2310_v7  ;;  %v282_v21 = vld [vmem:[%s2296_s24 + $0x38] sm:$0xff]  ;;  %v284_v24 = vld [vmem:[%s2296_s24 + $0x48] sm:$0xff]  ;;  %v299_v25 = vld [vmem:[%s2296_s24 + $0xc0] sm:$0xff] }
  0x17   : > { %382 = vmatpush.msrb.mxu2 %v291_v8  ;;  %405 = vmatpush.msrb.mxu3 %v292_v9  ;;  %v300_v26 = vld [vmem:[%s2296_s24 + $0xc8] sm:$0xff]  ;;  %v301_v27 = vld [vmem:[%s2296_s24 + $0xd0] sm:$0xff]  ;;  %v302_v28 = vld [vmem:[%s2296_s24 + $0xd8] sm:$0xff] }
  0x18   : > { %428 = vmatpush.msrb.mxu0 %v293_v10  ;;  %451 = vmatpush.msrb.mxu1 %v294_v11  ;;  %v285_v29 = vld [vmem:[%s2296_s24 + $0x50] sm:$0xff]  ;;  %v286_v30 = vld [vmem:[%s2296_s24 + $0x58] sm:$0xff]  ;;  %v287_v31 = vld [vmem:[%s2296_s24 + $0x60] sm:$0xff] }
  0x19   : > { %383 = vmatpush.msrb.mxu2 %v277_v12  ;;  %406 = vmatpush.msrb.mxu3 %v278_v13  ;;  %v288_v32 = vld [vmem:[%s2296_s24 + $0x68] sm:$0xff]  ;;  %v644_v35 = vld [vmem:[%s2401_s7] sm:$0xff]  ;;  %v658_v46 = vld [vmem:[%s2401_s7 + $0x70] sm:$0xff] }
  0x1a   : > { %429 = vmatpush.msrb.mxu0 %v279_v14  ;;  %452 = vmatpush.msrb.mxu1 %v280_v15  ;;  %v645_v38 = vld [vmem:[%s2401_s7 + $0x8] sm:$0xff]  ;;  %v659_v50 = vld [vmem:[%s2401_s7 + $0x78] sm:$0xff]  ;;  %v648_v61 = vld [vmem:[%s2401_s7 + $0x20] sm:$0xff] }
  0x1b   : > { %474 = vmatpush.msra.mxu2 %v295_v16  ;;  %497 = vmatpush.msra.mxu3 %v296_v17 }
  0x1c   : > { %520 = vmatpush.msra.mxu0 %v297_v18  ;;  %543 = vmatpush.msra.mxu1 %v298_v19  ;;  %v649_v19 = vld [vmem:[%s2401_s7 + $0x28] sm:$0xff] }
  0x1d   : > { %2078 = vmatmul.msk.f32.vlgmr.msrb.gmra.mxu2 %vm315_vm0, %v2305_v6  ;;  %2082 = vmatmul.msk.f32.vlgmr.msrb.gmra.mxu0 %vm315_vm0, %v2305_v6 }
  0x1e   : > { %2080 = vmatmul.msk.f32.vlgmr.msrb.gmra.mxu3 %vm315_vm0, %v2305_v6  ;;  %2084 = vmatmul.msk.f32.vlgmr.msrb.gmra.mxu1 %vm315_vm0, %v2305_v6 }
  0x1f   : > { %475 = vmatpush.msra.mxu2 %v281_v20  ;;  %498 = vmatpush.msra.mxu3 %v282_v21 }
  0x20   : > { %312 = vperm.xlu0 %2162, %v304_v22   ;;  %521 = vmatpush.msra.mxu0 %v283_v23 }
  0x21   : > { %544 = vmatpush.msra.mxu1 %v284_v24  ;;  %566 = vmatpush.msrb.mxu2 %v299_v25 }
  0x22   : > { %589 = vmatpush.msrb.mxu3 %v300_v26  ;;  %612 = vmatpush.msrb.mxu0 %v301_v27 }
  0x23   : > { %635 = vmatpush.msrb.mxu1 %v302_v28  ;;  %567 = vmatpush.msrb.mxu2 %v285_v29 }
  0x24   : > { %590 = vmatpush.msrb.mxu3 %v286_v30  ;;  %613 = vmatpush.msrb.mxu0 %v287_v31 }
  0x25   : > { %2079 = vmatmul.msk.f32.gmra.mxu2 %vm315_vm0, %v2310_v7  ;;  %2083 = vmatmul.msk.f32.gmra.mxu0 %vm315_vm0, %v2310_v7 }
  0x26   : > { %2081 = vmatmul.msk.f32.gmra.mxu3 %vm315_vm0, %v2310_v7  ;;  %2085 = vmatmul.msk.f32.gmra.mxu1 %vm315_vm0, %v2310_v7 }
  0x27   : > { %636 = vmatpush.msrb.mxu1 %v288_v32 }
  0x2d   : > { %2086 = vmatmul.msk.f32.vlgmr.msra.gmra.mxu2 %vm315_vm0, %v2305_v6  ;;  %2090 = vmatmul.msk.f32.vlgmr.msra.gmra.mxu0 %vm315_vm0, %v2305_v6 }
  0x2e   : > { %2088 = vmatmul.msk.f32.vlgmr.msra.gmra.mxu3 %vm315_vm0, %v2305_v6  ;;  %2092 = vmatmul.msk.f32.vlgmr.msra.gmra.mxu1 %vm315_vm0, %v2305_v6 }
  0x35   : > { %2087 = vmatmul.msk.f32.gmra.mxu2 %vm315_vm0, %v2310_v7  ;;  %2091 = vmatmul.msk.f32.gmra.mxu0 %vm315_vm0, %v2310_v7 }
  0x36   : > { %2089 = vmatmul.msk.f32.gmra.mxu3 %vm315_vm0, %v2310_v7  ;;  %2093 = vmatmul.msk.f32.gmra.mxu1 %vm315_vm0, %v2310_v7 }
  0x3d   : > { %2094 = vmatmul.msk.f32.vlgmr.msrb.gmra.mxu2 %vm315_vm0, %v2305_v6  ;;  %2098 = vmatmul.msk.f32.vlgmr.msrb.gmra.mxu0 %vm315_vm0, %v2305_v6 }
  0x3e   : > { %2096 = vmatmul.msk.f32.vlgmr.msrb.gmra.mxu3 %vm315_vm0, %v2305_v6  ;;  %2100 = vmatmul.msk.f32.vlgmr.msrb.gmra.mxu1 %vm315_vm0, %v2305_v6 }
  0x45   : > { %2095 = vmatmul.msk.f32.gmra.mxu2 %vm315_vm0, %v2310_v7  ;;  %2099 = vmatmul.msk.f32.gmra.mxu0 %vm315_vm0, %v2310_v7 }
  0x46   : > { %2097 = vmatmul.msk.f32.gmra.mxu3 %vm315_vm0, %v2310_v7  ;;  %2101 = vmatmul.msk.f32.gmra.mxu1 %vm315_vm0, %v2310_v7 }
  0x80   : > { %v2395_v33 = vpop.permute.xlu0 %307 }
  0x92   : > { %v339_v34 = vpop.f32.mrf.mxu0  ;;  %v2409_v42 = vpop.permute.xlu0 %312 }
  0x93   : > { %v340_v36 = vadd.f32 %v339_v34, %v2395_v33  ;;  %v362_v37 = vpop.f32.mrf.mxu1 }
  0x94   : > { %v363_v39 = vadd.f32 %v362_v37, %v2395_v33 }
  0x95   : > { %v672_v40 = vadd.f32 %v644_v35, %v340_v36 }
  0x96   : > { %v2407_v41 = vadd.f32 %v645_v38, %v363_v39 }
  0x97   : > { %v2411_v43 = vmul.f32 0.70710677, %v672_v40  ;;  %v2456_v15 = vmul.f32 0.5, %v672_v40 }
  0x98   : > { %v2414_v44 = vmul.f32 0.70710677, %v2407_v41  ;;  %v342_v45 = vpop.f32.mrf.mxu2 }
  0x99   : > { %v756_v47 = vmul.f32 %v2411_v43, %v2411_v43  ;;  %v343_v48 = vadd.f32 %v342_v45, %v2409_v42  ;;  %v365_v49 = vpop.f32.mrf.mxu3 }
  0x9a   : > { %v796_v51 = vmul.f32 %v2414_v44, %v2414_v44  ;;  %v366_v52 = vadd.f32 %v365_v49, %v2409_v42  ;;  %v431_v53 = vpop.f32.mrf.mxu0 }
  0x9b   : > { %v2424_v54 = vmin.f32 %v756_v47, 16.0  ;;  %v2426_v55 = vadd.f32 %v658_v46, %v343_v48  ;;  %v432_v60 = vadd.f32 %v431_v53, %v2395_v33  ;;  %v454_v7 = vpop.f32.mrf.mxu1 }
  0x9c   : > { %v2428_v56 = vmin.f32 %v796_v51, 16.0  ;;  %v2430_v57 = vadd.f32 %v659_v50, %v366_v52  ;;  %v455_v18 = vadd.f32 %v454_v7, %v2395_v33  ;;  %v2487_v7 = vmul.f32 0.5, %v2407_v41 }
  0x9d   : > { %v758_v58 = vmul.f32 2.1237322e-06, %v2424_v54  ;;  %v769_v59 = vmul.f32 3.8918573e-05, %v2424_v54  ;;  %v2439_v0 = vmul.f32 0.70710677, %v2426_v55  ;;  %v2448_v10 = vadd.f32 %v648_v61, %v432_v60 }
  0x9e   : > { %v798_v62 = vmul.f32 2.1237322e-06, %v2428_v56  ;;  %v809_v63 = vmul.f32 3.8918573e-05, %v2428_v56  ;;  %v2444_v6 = vmul.f32 0.70710677, %v2430_v57  ;;  %v677_v35 = vadd.f32 %v649_v19, %v455_v18 }
  0x9f   : > { %v759_v1 = vadd.f32 0.00028619796, %v758_v58  ;;  %v770_v2 = vadd.f32 0.001143296, %v769_v59  ;;  %v1316_v5 = vmul.f32 %v2439_v0, %v2439_v0  ;;  %v2469_v30 = vmul.f32 0.70710677, %v2448_v10 }
  0xa0   : > { %v799_v3 = vadd.f32 0.00028619796, %v798_v62  ;;  %v810_v4 = vadd.f32 0.001143296, %v809_v63  ;;  %v1356_v14 = vmul.f32 %v2444_v6, %v2444_v6 }
  0xa1   : > { %v760_v8 = vmul.f32 %v759_v1, %v2424_v54  ;;  %v771_v9 = vmul.f32 %v770_v2, %v2424_v54  ;;  %v2452_v13 = vmin.f32 %v1316_v5, 16.0  ;;  %v916_v59 = vmul.f32 %v2469_v30, %v2469_v30  ;;  %v385_v1 = vpop.f32.mrf.mxu2 }
  0xa2   : > { %v800_v11 = vmul.f32 %v799_v3, %v2428_v56  ;;  %v811_v12 = vmul.f32 %v810_v4, %v2428_v56  ;;  %v2464_v26 = vmin.f32 %v1356_v14, 16.0 }
  0xa3   : > { %v761_v16 = vadd.f32 0.0036580483, %v760_v8  ;;  %v772_v17 = vadd.f32 0.014752088, %v771_v9  ;;  %v1318_v22 = vmul.f32 2.1237322e-06, %v2452_v13 }
  0xa4   : > { %v801_v20 = vadd.f32 0.0036580483, %v800_v11  ;;  %v812_v21 = vadd.f32 0.014752088, %v811_v12  ;;  %v1329_v25 = vmul.f32 3.8918573e-05, %v2452_v13 }
  0xa5   : > { %v762_v23 = vmul.f32 %v761_v16, %v2424_v54  ;;  %v773_v24 = vmul.f32 %v772_v17, %v2424_v54  ;;  %v1319_v29 = vadd.f32 0.00028619796, %v1318_v22  ;;  %v1358_v39 = vmul.f32 2.1237322e-06, %v2464_v26 }
  0xa6   : > { %v802_v27 = vmul.f32 %v801_v20, %v2428_v56  ;;  %v813_v28 = vmul.f32 %v812_v21, %v2428_v56  ;;  %v1330_v34 = vadd.f32 0.001143296, %v1329_v25  ;;  %v1369_v47 = vmul.f32 3.8918573e-05, %v2464_v26  ;;  %v646_v20 = vld [vmem:[%s2401_s7 + $0x10] sm:$0xff] }
  0xa7   : > { %v763_v31 = vadd.f32 0.05243302, %v762_v23  ;;  %v774_v32 = vadd.f32 0.112945676, %v773_v24  ;;  %v1320_v38 = vmul.f32 %v1319_v29, %v2452_v13  ;;  %v1359_v51 = vadd.f32 0.00028619796, %v1358_v39 }
  0xa8   : > { %v803_v36 = vadd.f32 0.05243302, %v802_v27  ;;  %v814_v37 = vadd.f32 0.112945676, %v813_v28  ;;  %v1331_v46 = vmul.f32 %v1330_v34, %v2452_v13  ;;  %v1370_v5 = vadd.f32 0.001143296, %v1369_v47 }
  0xa9   : > { %v764_v40 = vmul.f32 %v763_v31, %v2424_v54  ;;  %v775_v45 = vmul.f32 %v774_v32, %v2424_v54  ;;  %v1321_v50 = vadd.f32 0.0036580483, %v1320_v38  ;;  %v1360_v63 = vmul.f32 %v1359_v51, %v2464_v26 }
  0xaa   : > { %v804_v48 = vmul.f32 %v803_v36, %v2428_v56  ;;  %v815_v49 = vmul.f32 %v814_v37, %v2428_v56  ;;  %v1332_v58 = vadd.f32 0.014752088, %v1331_v46  ;;  %v2493_v16 = vmul.f32 0.70710677, %v677_v35 }
  0xab   : > { %v765_v52 = vadd.f32 0.18741608, %v764_v40  ;;  %v776_v53 = vadd.f32 0.4994258, %v775_v45  ;;  %v1322_v62 = vmul.f32 %v1321_v50, %v2452_v13  ;;  %v1361_v11 = vadd.f32 0.0036580483, %v1360_v63 }
  0xac   : > { %v805_v60 = vadd.f32 0.18741608, %v804_v48  ;;  %v816_v61 = vadd.f32 0.4994258, %v815_v49  ;;  %v1333_v4 = vmul.f32 %v1332_v58, %v2452_v13  ;;  %v386_v17 = vadd.f32 %v385_v1, %v2395_v33 }
  0xad   : > { %v766_v2 = vmul.f32 %v765_v52, %v2424_v54  ;;  %v777_v3 = vmul.f32 %v776_v53, %v2424_v54  ;;  %v1323_v14 = vadd.f32 0.05243302, %v1322_v62  ;;  %v1362_v19 = vmul.f32 %v1361_v11, %v2464_v26 }
  0xae   : > { %v806_v8 = vmul.f32 %v805_v60, %v2428_v56  ;;  %v817_v9 = vmul.f32 %v816_v61, %v2428_v56  ;;  %v1334_v54 = vadd.f32 0.112945676, %v1333_v4  ;;  %v1371_v41 = vmul.f32 %v1370_v5, %v2464_v26 }
  0xaf   : > { %v2491_v12 = vadd.f32 1.0, %v777_v3  ;;  %v767_v21 = vadd.f32 1.1283791, %v766_v2  ;;  %v2503_v56 = vmul.f32 0.5, %v2426_v55  ;;  %v2505_v22 = vmin.f32 %v916_v59, 16.0 }
  0xb0   : > { %v2496_v18 = vadd.f32 1.0, %v817_v9  ;;  %v807_v23 = vadd.f32 1.1283791, %v806_v8  ;;  %v2509_v24 = vmul.f32 0.5, %v2430_v57  ;;  %v2512_v25 = vmul.f32 0.5, %v2448_v10 }
  0xb1   : > { %2163 = vrcp.f32 %v2491_v12  ;;  %v1324_v27 = vmul.f32 %v1323_v14, %v2452_v13  ;;  %v2515_v28 = vmul.f32 0.5, %v677_v35  ;;  %v956_v29 = vmul.f32 %v2493_v16, %v2493_v16 }
  0xb2   : > { %2165 = vrcp.f32 %v2496_v18  ;;  %v2519_v55 = vadd.f32 %v646_v20, %v386_v17  ;;  %v788_v31 = vand.u32 2147483647, %v2491_v12  ;;  %v1335_v32 = vmul.f32 %v1334_v54, %v2452_v13 }
  0xb3   : > { %v1363_v34 = vadd.f32 0.05243302, %v1362_v19  ;;  %v1372_v36 = vadd.f32 0.014752088, %v1371_v41  ;;  %v768_v57 = vmul.f32 %v767_v21, %v2411_v43  ;;  %v790_v10 = vand.u32 2147483648, %v2491_v12 }
  0xb4   : > { %v828_v37 = vand.u32 2147483647, %v2496_v18  ;;  %v918_v35 = vmul.f32 2.1237322e-06, %v2505_v22  ;;  %vm784_vm1 = vweird.f32 %v2491_v12  ;;  %v808_v38 = vmul.f32 %v807_v23, %v2414_v44 }
  0xb5   : > { %v1336_v39 = vadd.f32 0.4994258, %v1335_v32  ;;  %v1373_v40 = vmul.f32 %v1372_v36, %v2464_v26  ;;  %vm824_vm2 = vweird.f32 %v2496_v18  ;;  %v1325_v46 = vadd.f32 0.18741608, %v1324_v27 }
  0xb6   : > { %v919_v47 = vadd.f32 0.00028619796, %v918_v35  ;;  %v929_v43 = vmul.f32 3.8918573e-05, %v2505_v22  ;;  %vm2533_vm3 = vcmp.eq.f32.partialorder %v788_v31, 8.507059e+37  ;;  %v830_v51 = vand.u32 2147483648, %v2496_v18 }
  0xb7   : > { %v2164_v45 = vpop.eup %2163  ;;  %v1337_v44 = vmul.f32 %v1336_v39, %v2452_v13  ;;  %v1364_v52 = vmul.f32 %v1363_v34, %v2464_v26  ;;  %v791_v53 = vor.u32 1.1754944e-38, %v790_v10  ;;  %vm2541_vm4 = vcmp.eq.f32.partialorder %v828_v37, 8.507059e+37 }
  0xb8   : > { %v2166_v48 = vpop.eup %2165  ;;  %v780_v49 = vmul.f32 %v2164_v45, %v2491_v12  ;;  %v1374_v60 = vadd.f32 0.112945676, %v1373_v40  ;;  %v920_v63 = vmul.f32 %v919_v47, %v2505_v22  ;;  %v2548_v1 = vmin.f32 %v956_v29, 16.0 }
  0xb9   : > { %v820_v58 = vmul.f32 %v2166_v48, %v2496_v18  ;;  %v2545_v62 = vadd.f32 1.0, %v1337_v44  ;;  %v1326_v3 = vmul.f32 %v1325_v46, %v2452_v13  ;;  %v930_v5 = vadd.f32 0.001143296, %v929_v43 }
  0xba   : > { %v781_v61 = vsub.f32 1.0, %v780_v49  ;;  %v1375_v4 = vmul.f32 %v1374_v60, %v2464_v26  ;;  %vm785_vm5 = vweird.f32 %v2164_v45  ;;  %v1365_v9 = vadd.f32 0.18741608, %v1364_v52 }
  0xbb   : > { %v821_v2 = vsub.f32 1.0, %v820_v58  ;;  %2167 = vrcp.f32 %v2545_v62  ;;  %vm825_vm6 = vweird.f32 %v2166_v48  ;;  %v831_v14 = vor.u32 1.1754944e-38, %v830_v51  ;;  %vm786_vm7 = vmor %vm784_vm1, %vm785_vm5 }
  0xbc   : > { %v782_v8 = vmul.f32 %v2164_v45, %v781_v61  ;;  %v1376_v17 = vadd.f32 0.4994258, %v1375_v4  ;;  %v921_v19 = vadd.f32 0.0036580483, %v920_v63  ;;  %v931_v41 = vmul.f32 %v930_v5, %v2505_v22  ;;  %vm826_vm8 = vmor %vm824_vm2, %vm825_vm6 }
  0xbd   : > { %v822_v11 = vmul.f32 %v2166_v48, %v821_v2  ;;  %v958_v20 = vmul.f32 2.1237322e-06, %v2548_v1  ;;  %v1327_v21 = vadd.f32 1.1283791, %v1326_v3  ;;  %v2559_v27 = vmul.f32 0.5, %v2519_v55 }
  0xbe   : > { %v783_v54 = vadd.f32 %v2164_v45, %v782_v8  ;;  %v1377_v23 = vmul.f32 %v1376_v17, %v2464_v26  ;;  %v1348_v31 = vand.u32 2147483647, %v2545_v62  ;;  %v1366_v32 = vmul.f32 %v1365_v9, %v2464_v26 }
  0xbf   : > { %v823_v13 = vadd.f32 %v2166_v48, %v822_v11  ;;  %v932_v34 = vadd.f32 0.014752088, %v931_v41  ;;  %v922_v37 = vmul.f32 %v921_v19, %v2505_v22  ;;  %v1328_v26 = vmul.f32 %v1327_v21, %v2439_v0 }
  0xc0   : > { %v787_v29 = vsel %vm786_vm7, %v2164_v45, %v783_v54  ;;  %v2567_v10 = vadd.f32 1.0, %v1377_v23  ;;  %v959_v45 = vadd.f32 0.00028619796, %v958_v20  ;;  %vm1344_vm9 = vweird.f32 %v2545_v62 }
  0xc1   : > { %v792_v12 = vsel %vm2533_vm3, %v791_v53, %v787_v29  ;;  %v827_v36 = vsel %vm826_vm8, %v2166_v48, %v823_v13  ;;  %v2168_v35 = vpop.eup %2167  ;;  %v933_v18 = vmul.f32 %v932_v34, %v2505_v22  ;;  %v1350_v48 = vand.u32 2147483648, %v2545_v62  ;;  %v408_v34 = vpop.f32.mrf.mxu3 }
  0xc2   : > { %v793_v39 = vmul.f32 %v792_v12, %v768_v57  ;;  %v832_v40 = vsel %vm2541_vm4, %v831_v14, %v827_v36  ;;  %v1340_v47 = vmul.f32 %v2168_v35, %v2545_v62  ;;  %2169 = vrcp.f32 %v2567_v10 }
  0xc3   : > { %v833_v46 = vmul.f32 %v832_v40, %v808_v38  ;;  %v969_v57 = vmul.f32 3.8918573e-05, %v2548_v1  ;;  %v923_v51 = vadd.f32 0.05243302, %v922_v37  ;;  %v934_v44 = vadd.f32 0.112945676, %v933_v18 }
  0xc4   : > { %v2102_v43 = vclamps-f32 %v793_v39, 1.0  ;;  %v1341_v50 = vsub.f32 1.0, %v1340_v47  ;;  %vm2579_vm10 = vcmp.eq.f32.partialorder %v1348_v31, 8.507059e+37  ;;  %v1367_v0 = vadd.f32 1.1283791, %v1366_v32 }
  0xc5   : > { %v2103_v49 = vclamps-f32 %v833_v46, 1.0  ;;  %v960_v53 = vmul.f32 %v959_v45, %v2548_v1  ;;  %vm1345_vm11 = vweird.f32 %v2168_v35  ;;  %v935_v60 = vmul.f32 %v934_v44, %v2505_v22 }
  0xc6   : > { %v1876_v52 = vadd.f32 1.0, %v2102_v43  ;;  %v1342_v59 = vmul.f32 %v2168_v35, %v1341_v50  ;;  %v970_v2 = vadd.f32 0.001143296, %v969_v57  ;;  %v2593_v3 = vmul.f32 0.70710677, %v2519_v55  ;;  %vm1346_vm12 = vmor %vm1344_vm9, %vm1345_vm11  ;;  %v647_v57 = vld [vmem:[%s2401_s7 + $0x18] sm:$0xff] }
  0xc7   : > { %v1877_v58 = vadd.f32 1.0, %v2103_v49  ;;  %v961_v63 = vadd.f32 0.0036580483, %v960_v53  ;;  %v924_v9 = vmul.f32 %v923_v51, %v2505_v22  ;;  %v936_v11 = vadd.f32 0.4994258, %v935_v60  ;;  %v434_v51 = vpop.f32.mrf.mxu0 }
  0xc8   : > { %v1904_v61 = vmul.f32 %v1876_v52, %v2456_v15  ;;  %v2170_v4 = vpop.eup %2169  ;;  %v1343_v8 = vadd.f32 %v2168_v35, %v1342_v59  ;;  %v1351_v14 = vor.u32 1.1754944e-38, %v1350_v48  ;;  %v971_v54 = vmul.f32 %v970_v2, %v2548_v1 }
  0xc9   : > { %v1905_v5 = vmul.f32 %v1877_v58, %v2487_v7  ;;  %v1380_v17 = vmul.f32 %v2170_v4, %v2567_v10  ;;  %v962_v15 = vmul.f32 %v961_v63, %v2548_v1  ;;  %v1390_v19 = vand.u32 2147483648, %v2567_v10 }
  0xca   : > { %1932 = vst [vmem:[%s2588_s10] sm:$0xff] %v1904_v61  ;;  %v1347_v55 = vsel %vm1346_vm12, %v2168_v35, %v1343_v8  ;;  %v937_v7 = vmul.f32 %v936_v11, %v2505_v22  ;;  %v836_v41 = vmul.f32 %v2593_v3, %v2593_v3  ;;  %v972_v21 = vadd.f32 0.014752088, %v971_v54  ;;  %v457_v61 = vpop.f32.mrf.mxu1  ;;  %v662_v11 = vld [vmem:[%s2401_s7 + $0x90] sm:$0xff] }
  0xcb   : > { %1933 = vst [vmem:[%s2588_s10 + $0x8] sm:$0xff] %v1905_v5  ;;  %v1352_v62 = vsel %vm2579_vm10, %v1351_v14, %v1347_v55  ;;  %v1381_v20 = vsub.f32 1.0, %v1380_v17  ;;  %v963_v13 = vadd.f32 0.05243302, %v962_v15  ;;  %v925_v29 = vadd.f32 0.18741608, %v924_v9 }
  0xcc   : > { %v1353_v23 = vmul.f32 %v1352_v62, %v1328_v26  ;;  %v2610_v31 = vadd.f32 1.0, %v937_v7  ;;  %v2612_v32 = vmin.f32 %v836_v41, 16.0  ;;  %vm1385_vm13 = vweird.f32 %v2170_v4  ;;  %v663_v62 = vld [vmem:[%s2401_s7 + $0x98] sm:$0xff] }
  0xcd   : > { %v1382_v12 = vmul.f32 %v2170_v4, %v1381_v20  ;;  %v1388_v36 = vand.u32 2147483647, %v2567_v10  ;;  %v973_v37 = vmul.f32 %v972_v21, %v2548_v1  ;;  %vm1384_vm14 = vweird.f32 %v2567_v10 }
  0xce   : > { %v2116_v35 = vclamps-f32 %v1353_v23, 1.0  ;;  %v1391_v39 = vor.u32 1.1754944e-38, %v1390_v19  ;;  %2171 = vrcp.f32 %v2610_v31  ;;  %v964_v18 = vmul.f32 %v963_v13, %v2548_v1  ;;  %vm1386_vm15 = vmor %vm1384_vm14, %vm1385_vm13 }
  0xcf   : > { %v1383_v40 = vadd.f32 %v2170_v4, %v1382_v12  ;;  %v974_v45 = vadd.f32 0.112945676, %v973_v37  ;;  %v409_v46 = vadd.f32 %v408_v34, %v2395_v33  ;;  %v926_v47 = vmul.f32 %v925_v29, %v2505_v22 }
  0xd0   : > { %v1890_v26 = vadd.f32 1.0, %v2116_v35  ;;  %v838_v43 = vmul.f32 2.1237322e-06, %v2612_v32  ;;  %v849_v48 = vmul.f32 3.8918573e-05, %v2612_v32  ;;  %v1368_v10 = vmul.f32 %v1367_v0, %v2444_v6 }
  0xd1   : > { %v1387_v49 = vsel %vm1386_vm15, %v2170_v4, %v1383_v40  ;;  %vm1389_vm0 = vcmp.eq.f32.partialorder %v1388_v36, 8.507059e+37  ;;  %v975_v50 = vmul.f32 %v974_v45, %v2548_v1  ;;  %v965_v58 = vadd.f32 0.18741608, %v964_v18 }
  0xd2   : > { %v1918_v44 = vmul.f32 %v1890_v26, %v2503_v56  ;;  %v1392_v52 = vsel %vm1389_vm0, %v1391_v39, %v1387_v49  ;;  %v839_v38 = vadd.f32 0.00028619796, %v838_v43  ;;  %v850_v53 = vadd.f32 0.001143296, %v849_v48 }
  0xd3   : > { %v1393_v22 = vmul.f32 %v1392_v52, %v1368_v10  ;;  %v976_v59 = vadd.f32 0.4994258, %v975_v50  ;;  %v2627_v60 = vadd.f32 %v647_v57, %v409_v46  ;;  %v927_v6 = vadd.f32 1.1283791, %v926_v47 }
  0xd4   : > { %v2172_v63 = vpop.eup %2171  ;;  %1947 = vst [vmem:[%s2588_s10 + $0x70] sm:$0xff] %v1918_v44  ;;  %v840_v0 = vmul.f32 %v839_v38, %v2612_v32  ;;  %v851_v2 = vmul.f32 %v850_v53, %v2612_v32  ;;  %v435_v56 = vadd.f32 %v434_v51, %v2409_v42  ;;  %v948_v8 = vand.u32 2147483647, %v2610_v31 }
  0xd5   : > { %v2117_v4 = vclamps-f32 %v1393_v22, 1.0  ;;  %v940_v5 = vmul.f32 %v2172_v63, %v2610_v31  ;;  %v950_v9 = vand.u32 2147483648, %v2610_v31  ;;  %v977_v14 = vmul.f32 %v976_v59, %v2548_v1 }
  0xd6   : > { %v841_v17 = vadd.f32 0.0036580483, %v840_v0  ;;  %v852_v15 = vadd.f32 0.014752088, %v851_v2  ;;  %v458_v54 = vadd.f32 %v457_v61, %v2409_v42  ;;  %v966_v7 = vmul.f32 %v965_v58, %v2548_v1 }
  0xd7   : > { %v1891_v55 = vadd.f32 1.0, %v2117_v4  ;;  %v941_v19 = vsub.f32 1.0, %v940_v5  ;;  %v2641_v41 = vmul.f32 0.70710677, %v2627_v60  ;;  %v2644_v20 = vadd.f32 1.0, %v977_v14 }
  0xd8   : > { %v842_v13 = vmul.f32 %v841_v17, %v2612_v32  ;;  %v853_v21 = vmul.f32 %v852_v15, %v2612_v32  ;;  %v2648_v23 = vadd.f32 %v662_v11, %v435_v56  ;;  %vm945_vm1 = vweird.f32 %v2172_v63 }
  0xd9   : > { %v1919_v29 = vmul.f32 %v1891_v55, %v2509_v24  ;;  %v942_v34 = vmul.f32 %v2172_v63, %v941_v19  ;;  %v876_v12 = vmul.f32 %v2641_v41, %v2641_v41  ;;  %v928_v1 = vmul.f32 %v927_v6, %v2469_v30  ;;  %v388_v19 = vpop.f32.mrf.mxu2 }
  0xda   : > { %vm944_vm2 = vweird.f32 %v2610_v31  ;;  %2173 = vrcp.f32 %v2644_v20  ;;  %v2656_v36 = vadd.f32 %v663_v62, %v458_v54  ;;  %v843_v35 = vadd.f32 0.05243302, %v842_v13 }
  0xdb   : > { %1948 = vst [vmem:[%s2588_s10 + $0x78] sm:$0xff] %v1919_v29  ;;  %v943_v37 = vadd.f32 %v2172_v63, %v942_v34  ;;  %v854_v39 = vadd.f32 0.112945676, %v853_v21  ;;  %v2659_v40 = vmin.f32 %v876_v12, 16.0  ;;  %vm946_vm3 = vmor %vm944_vm2, %vm945_vm1  ;;  %vm949_vm4 = vcmp.eq.f32.partialorder %v948_v8, 8.507059e+37 }
  0xdc   : > { %v951_v24 = vor.u32 1.1754944e-38, %v950_v9  ;;  %v967_v18 = vadd.f32 1.1283791, %v966_v7  ;;  %v2662_v45 = vmul.f32 0.70710677, %v2648_v23  ;;  %v844_v31 = vmul.f32 %v843_v35, %v2612_v32 }
  0xdd   : > { %v947_v30 = vsel %vm946_vm3, %v2172_v63, %v943_v37  ;;  %v855_v46 = vmul.f32 %v854_v39, %v2612_v32  ;;  %v878_v26 = vmul.f32 2.1237322e-06, %v2659_v40  ;;  %v889_v43 = vmul.f32 3.8918573e-05, %v2659_v40 }
  0xde   : > { %v952_v47 = vsel %vm949_vm4, %v951_v24, %v947_v30  ;;  %v1476_v48 = vmul.f32 %v2662_v45, %v2662_v45  ;;  %v2671_v57 = vmul.f32 0.70710677, %v2656_v36  ;;  %v845_v49 = vadd.f32 0.18741608, %v844_v31 }
  0xdf   : > { %v953_v10 = vmul.f32 %v952_v47, %v928_v1  ;;  %v856_v50 = vadd.f32 0.4994258, %v855_v46  ;;  %v879_v51 = vadd.f32 0.00028619796, %v878_v26  ;;  %v968_v52 = vmul.f32 %v967_v18, %v2493_v16 }
  0xe0   : > { %v2174_v44 = vpop.eup %2173  ;;  %v890_v38 = vadd.f32 0.001143296, %v889_v43  ;;  %v2674_v53 = vmin.f32 %v1476_v48, 16.0  ;;  %v1516_v22 = vmul.f32 %v2671_v57, %v2671_v57  ;;  %v988_v61 = vand.u32 2147483647, %v2644_v20 }
  0xe1   : > { %v2106_v58 = vclamps-f32 %v953_v10, 1.0  ;;  %v980_v59 = vmul.f32 %v2174_v44, %v2644_v20  ;;  %v990_v63 = vand.u32 2147483648, %v2644_v20  ;;  %v857_v6 = vmul.f32 %v856_v50, %v2612_v32 }
  0xe2   : > { %v880_v0 = vmul.f32 %v879_v51, %v2659_v40  ;;  %v891_v2 = vmul.f32 %v890_v38, %v2659_v40  ;;  %v1478_v16 = vmul.f32 2.1237322e-06, %v2674_v53  ;;  %v846_v5 = vmul.f32 %v845_v49, %v2612_v32 }
  0xe3   : > { %v1880_v56 = vadd.f32 1.0, %v2106_v58  ;;  %v981_v4 = vsub.f32 1.0, %v980_v59  ;;  %v1489_v8 = vmul.f32 3.8918573e-05, %v2674_v53  ;;  %v2687_v9 = vadd.f32 1.0, %v857_v6 }
  0xe4   : > { %v881_v11 = vadd.f32 0.0036580483, %v880_v0  ;;  %v892_v14 = vadd.f32 0.014752088, %v891_v2  ;;  %v2689_v17 = vmin.f32 %v1516_v22, 16.0  ;;  %vm985_vm5 = vweird.f32 %v2174_v44 }
  0xe5   : > { %v1908_v15 = vmul.f32 %v1880_v56, %v2512_v25  ;;  %v982_v54 = vmul.f32 %v2174_v44, %v981_v4  ;;  %v1479_v55 = vadd.f32 0.00028619796, %v1478_v16  ;;  %vm984_vm6 = vweird.f32 %v2644_v20 }
  0xe6   : > { %vm2693_vm7 = vcmp.eq.f32.partialorder %v988_v61, 8.507059e+37  ;;  %v991_v32 = vor.u32 1.1754944e-38, %v990_v63  ;;  %2175 = vrcp.f32 %v2687_v9  ;;  %v882_v13 = vmul.f32 %v881_v11, %v2659_v40  ;;  %vm986_vm8 = vmor %vm984_vm6, %vm985_vm5 }
  0xe7   : > { %1936 = vst [vmem:[%s2588_s10 + $0x20] sm:$0xff] %v1908_v15  ;;  %v983_v62 = vadd.f32 %v2174_v44, %v982_v54  ;;  %v893_v21 = vmul.f32 %v892_v14, %v2659_v40  ;;  %v1480_v25 = vmul.f32 %v1479_v55, %v2674_v53  ;;  %v847_v29 = vadd.f32 1.1283791, %v846_v5  ;;  %v660_v54 = vld [vmem:[%s2401_s7 + $0x80] sm:$0xff] }
  0xe8   : > { %v1490_v34 = vadd.f32 0.001143296, %v1489_v8  ;;  %v1518_v20 = vmul.f32 2.1237322e-06, %v2689_v17  ;;  %v389_v12 = vadd.f32 %v388_v19, %v2409_v42  ;;  %v883_v37 = vadd.f32 0.05243302, %v882_v13 }
  0xe9   : > { %v987_v1 = vsel %vm986_vm8, %v2174_v44, %v983_v62  ;;  %v894_v35 = vadd.f32 0.112945676, %v893_v21  ;;  %v1481_v39 = vadd.f32 0.0036580483, %v1480_v25  ;;  %v1529_v31 = vmul.f32 3.8918573e-05, %v2689_v17 }
  0xea   : > { %v992_v24 = vsel %vm2693_vm7, %v991_v32, %v987_v1  ;;  %v1491_v18 = vmul.f32 %v1490_v34, %v2674_v53  ;;  %v1519_v30 = vadd.f32 0.00028619796, %v1518_v20  ;;  %v884_v26 = vmul.f32 %v883_v37, %v2659_v40  ;;  %v411_v20 = vpop.f32.mrf.mxu3  ;;  %v523_v1 = vpop.f32.mrf.mxu0 }
  0xeb   : > { %v993_v46 = vmul.f32 %v992_v24, %v968_v52  ;;  %v895_v47 = vmul.f32 %v894_v35, %v2659_v40  ;;  %v1482_v43 = vmul.f32 %v1481_v39, %v2674_v53  ;;  %v868_v10 = vand.u32 2147483647, %v2687_v9 }
  0xec   : > { %v2176_v48 = vpop.eup %2175  ;;  %v1492_v49 = vadd.f32 0.014752088, %v1491_v18  ;;  %v1520_v50 = vmul.f32 %v1519_v30, %v2689_v17  ;;  %v1530_v51 = vadd.f32 0.001143296, %v1529_v31  ;;  %v870_v22 = vand.u32 2147483648, %v2687_v9 }
  0xed   : > { %v2107_v44 = vclamps-f32 %v993_v46, 1.0  ;;  %v860_v38 = vmul.f32 %v2176_v48, %v2687_v9  ;;  %v885_v58 = vadd.f32 0.18741608, %v884_v26  ;;  %v896_v52 = vadd.f32 0.4994258, %v895_v47 }
  0xee   : > { %v1483_v59 = vadd.f32 0.05243302, %v1482_v43  ;;  %v1493_v61 = vmul.f32 %v1492_v49, %v2674_v53  ;;  %v1521_v63 = vadd.f32 0.0036580483, %v1520_v50  ;;  %vm865_vm9 = vweird.f32 %v2176_v48 }
  0xef   : > { %v1881_v6 = vadd.f32 1.0, %v2107_v44  ;;  %v861_v0 = vsub.f32 1.0, %v860_v38  ;;  %v1531_v2 = vmul.f32 %v1530_v51, %v2689_v17  ;;  %v897_v16 = vmul.f32 %v896_v52, %v2659_v40 }
  0xf0   : > { %v1484_v56 = vmul.f32 %v1483_v59, %v2674_v53  ;;  %v1494_v4 = vadd.f32 0.112945676, %v1493_v61  ;;  %v1522_v5 = vmul.f32 %v1521_v63, %v2689_v17  ;;  %v886_v14 = vmul.f32 %v885_v58, %v2659_v40 }
  0xf1   : > { %v1909_v8 = vmul.f32 %v1881_v6, %v2515_v28  ;;  %v862_v11 = vmul.f32 %v2176_v48, %v861_v0  ;;  %v1532_v15 = vadd.f32 0.014752088, %v1531_v2  ;;  %v848_v55 = vmul.f32 %v847_v29, %v2593_v3 }
  0xf2   : > { %v2724_v19 = vadd.f32 1.0, %v897_v16  ;;  %v1495_v7 = vmul.f32 %v1494_v4, %v2674_v53  ;;  %v1523_v32 = vadd.f32 0.05243302, %v1522_v5  ;;  %vm864_vm10 = vweird.f32 %v2687_v9 }
  0xf3   : > { %1937 = vst [vmem:[%s2588_s10 + $0x28] sm:$0xff] %v1909_v8  ;;  %v863_v62 = vadd.f32 %v2176_v48, %v862_v11  ;;  %v1485_v13 = vadd.f32 0.18741608, %v1484_v56  ;;  %v1533_v21 = vmul.f32 %v1532_v15, %v2689_v17  ;;  %vm866_vm11 = vmor %vm864_vm10, %vm865_vm9  ;;  %vm869_vm12 = vcmp.eq.f32.partialorder %v868_v10, 8.507059e+37  ;;  %v652_v10 = vld [vmem:[%s2401_s7 + $0x40] sm:$0xff] }
  0xf4   : > { %v871_v28 = vor.u32 1.1754944e-38, %v870_v22  ;;  %2177 = vrcp.f32 %v2724_v19  ;;  %v2732_v40 = vadd.f32 %v660_v54, %v389_v12  ;;  %v887_v25 = vadd.f32 1.1283791, %v886_v14  ;;  %v546_v54 = vpop.f32.mrf.mxu1 }
  0xf5   : > { %v867_v3 = vsel %vm866_vm11, %v2176_v48, %v863_v62  ;;  %v1496_v29 = vadd.f32 0.4994258, %v1495_v7  ;;  %v1524_v34 = vmul.f32 %v1523_v32, %v2689_v17  ;;  %v2736_v9 = vmul.f32 0.5, %v2627_v60  ;;  %v661_v48 = vld [vmem:[%s2401_s7 + $0x88] sm:$0xff] }
  0xf6   : > { %v872_v37 = vsel %vm869_vm12, %v871_v28, %v867_v3  ;;  %v2739_v35 = vmul.f32 0.5, %v2648_v23  ;;  %v1534_v39 = vadd.f32 0.112945676, %v1533_v21  ;;  %v1486_v12 = vmul.f32 %v1485_v13, %v2674_v53 }
  0xf7   : > { %v873_v24 = vmul.f32 %v872_v37, %v848_v55  ;;  %v1497_v18 = vmul.f32 %v1496_v29, %v2674_v53  ;;  %v1525_v30 = vadd.f32 0.18741608, %v1524_v34  ;;  %v2745_v46 = vmul.f32 0.70710677, %v2732_v40 }
  0xf8   : > { %v1535_v31 = vmul.f32 %v1534_v39, %v2689_v17  ;;  %v412_v26 = vadd.f32 %v411_v20, %v2409_v42  ;;  %v524_v60 = vadd.f32 %v523_v1, %v2395_v33  ;;  %v888_v23 = vmul.f32 %v887_v25, %v2641_v41 }
  0xf9   : > { %v2104_v47 = vclamps-f32 %v873_v24, 1.0  ;;  %vm904_vm13 = vweird.f32 %v2724_v19  ;;  %v2751_v43 = vadd.f32 1.0, %v1497_v18  ;;  %v908_v49 = vand.u32 2147483647, %v2724_v19 }
  0xfa   : > { %v2178_v53 = vpop.eup %2177  ;;  %v1526_v50 = vmul.f32 %v1525_v30, %v2689_v17  ;;  %v1536_v51 = vadd.f32 0.4994258, %v1535_v31  ;;  %v1396_v44 = vmul.f32 %v2745_v46, %v2745_v46  ;;  %v910_v41 = vand.u32 2147483648, %v2724_v19 }
  0xfb   : > { %v1878_v38 = vadd.f32 1.0, %v2104_v47  ;;  %v900_v22 = vmul.f32 %v2178_v53, %v2724_v19  ;;  %2179 = vrcp.f32 %v2751_v43  ;;  %v1487_v58 = vadd.f32 1.1283791, %v1486_v12 }
  0xfc   : > { %v1510_v52 = vand.u32 2147483648, %v2751_v43  ;;  %v2763_v59 = vadd.f32 %v661_v48, %v412_v26  ;;  %v2765_v61 = vadd.f32 %v652_v10, %v524_v60  ;;  %v1537_v0 = vmul.f32 %v1536_v51, %v2689_v17 }
  0xfd   : > { %v1906_v63 = vmul.f32 %v1878_v38, %v2559_v27  ;;  %v901_v6 = vsub.f32 1.0, %v900_v22  ;;  %v2769_v2 = vmin.f32 %v1396_v44, 16.0  ;;  %vm905_vm14 = vweird.f32 %v2178_v53 }
  0xfe   : > { %vm2771_vm15 = vcmp.eq.f32.partialorder %v908_v49, 8.507059e+37  ;;  %v1508_v56 = vand.u32 2147483647, %v2751_v43  ;;  %v1527_v4 = vadd.f32 1.1283791, %v1526_v50  ;;  %v2777_v8 = vadd.f32 1.0, %v1537_v0  ;;  %vm906_vm1 = vmor %vm904_vm13, %vm905_vm14 }
  0xff   : > { %1934 = vst [vmem:[%s2588_s10 + $0x10] sm:$0xff] %v1906_v63  ;;  %v902_v5 = vmul.f32 %v2178_v53, %v901_v6  ;;  %v1398_v11 = vmul.f32 2.1237322e-06, %v2769_v2  ;;  %v1409_v27 = vmul.f32 3.8918573e-05, %v2769_v2  ;;  %v911_v14 = vor.u32 1.1754944e-38, %v910_v41 }
 0x100   : > { %v1488_v17 = vmul.f32 %v1487_v58, %v2662_v45  ;;  %vm1504_vm0 = vweird.f32 %v2751_v43  ;;  %v2784_v15 = vmul.f32 0.70710677, %v2763_v59  ;;  %v1511_v32 = vor.u32 1.1754944e-38, %v1510_v52  ;;  %v653_v0 = vld [vmem:[%s2401_s7 + $0x48] sm:$0xff] }
 0x101   : > { %v2180_v55 = vpop.eup %2179  ;;  %v903_v7 = vadd.f32 %v2178_v53, %v902_v5  ;;  %2181 = vrcp.f32 %v2777_v8  ;;  %v2788_v62 = vmul.f32 0.70710677, %v2765_v61  ;;  %vm2794_vm2 = vcmp.eq.f32.partialorder %v1508_v56, 8.507059e+37 }
 0x102   : > { %v1500_v45 = vmul.f32 %v2180_v55, %v2751_v43  ;;  %v2799_v21 = vmul.f32 %v1527_v4, %v2671_v57  ;;  %v1550_v28 = vand.u32 2147483648, %v2777_v8  ;;  %v1399_v3 = vadd.f32 0.00028619796, %v1398_v11 }
 0x103   : > { %v907_v25 = vsel %vm906_vm1, %v2178_v53, %v903_v7  ;;  %v1410_v29 = vadd.f32 0.001143296, %v1409_v27  ;;  %v1436_v34 = vmul.f32 %v2784_v15, %v2784_v15  ;;  %v547_v19 = vadd.f32 %v546_v54, %v2395_v33 }
 0x104   : > { %v912_v20 = vsel %vm2771_vm15, %v911_v14, %v907_v25  ;;  %v1501_v1 = vsub.f32 1.0, %v1500_v45  ;;  %v1548_v37 = vand.u32 2147483647, %v2777_v8  ;;  %v1400_v39 = vmul.f32 %v1399_v3, %v2769_v2 }
 0x105   : > { %v913_v57 = vmul.f32 %v912_v20, %v888_v23  ;;  %v1411_v24 = vmul.f32 %v1410_v29, %v2769_v2  ;;  %v2810_v12 = vmin.f32 %v1436_v34, 16.0  ;;  %v1076_v18 = vmul.f32 %v2788_v62, %v2788_v62 }
 0x106   : > { %v1502_v30 = vmul.f32 %v2180_v55, %v1501_v1  ;;  %vm1505_vm3 = vweird.f32 %v2180_v55  ;;  %vm1544_vm4 = vweird.f32 %v2777_v8  ;;  %v1551_v31 = vor.u32 1.1754944e-38, %v1550_v28 }
 0x107   : > { %v1401_v26 = vadd.f32 0.0036580483, %v1400_v39  ;;  %v2182_v60 = vpop.eup %2181  ;;  %v2105_v47 = vclamps-f32 %v913_v57, 1.0  ;;  %v1412_v48 = vadd.f32 0.014752088, %v1411_v24  ;;  %v2816_v23 = vmin.f32 %v1076_v18, 16.0  ;;  %vm1506_vm7 = vmor %vm1504_vm0, %vm1505_vm3 }
 0x108   : > { %v1438_v10 = vmul.f32 2.1237322e-06, %v2810_v12  ;;  %v1503_v53 = vadd.f32 %v2180_v55, %v1502_v30  ;;  %v1540_v49 = vmul.f32 %v2182_v60, %v2777_v8  ;;  %vm1545_vm5 = vweird.f32 %v2182_v60 }
 0x109   : > { %vm2819_vm6 = vcmp.eq.f32.partialorder %v1548_v37, 8.507059e+37  ;;  %v1402_v51 = vmul.f32 %v1401_v26, %v2769_v2  ;;  %v1879_v44 = vadd.f32 1.0, %v2105_v47  ;;  %v1413_v38 = vmul.f32 %v1412_v48, %v2769_v2  ;;  %vm1546_vm8 = vmor %vm1544_vm4, %vm1545_vm5 }
 0x10a   : > { %v1439_v22 = vadd.f32 0.00028619796, %v1438_v10  ;;  %v1449_v41 = vmul.f32 3.8918573e-05, %v2810_v12  ;;  %v1507_v58 = vsel %vm1506_vm7, %v2180_v55, %v1503_v53  ;;  %v1541_v52 = vsub.f32 1.0, %v1540_v49 }
 0x10b   : > { %v1403_v63 = vadd.f32 0.05243302, %v1402_v51  ;;  %v1078_v6 = vmul.f32 2.1237322e-06, %v2816_v23  ;;  %v1907_v16 = vmul.f32 %v1879_v44, %v2736_v9  ;;  %v1512_v56 = vsel %vm2794_vm2, %v1511_v32, %v1507_v58 }
 0x10c   : > { %v1414_v4 = vadd.f32 0.112945676, %v1413_v38  ;;  %v1440_v43 = vmul.f32 %v1439_v22, %v2810_v12  ;;  %v1513_v5 = vmul.f32 %v1512_v56, %v1488_v17  ;;  %v1542_v11 = vmul.f32 %v2182_v60, %v1541_v52  ;;  %v650_v56 = vld [vmem:[%s2401_s7 + $0x30] sm:$0xff] }
 0x10d   : > { %v1404_v27 = vmul.f32 %v1403_v63, %v2769_v2  ;;  %v1450_v14 = vadd.f32 0.001143296, %v1449_v41  ;;  %1935 = vst [vmem:[%s2588_s10 + $0x18] sm:$0xff] %v1907_v16  ;;  %v1079_v7 = vadd.f32 0.00028619796, %v1078_v6  ;;  %v2838_v45 = vadd.f32 %v653_v0, %v547_v19 }
 0x10e   : > { %v1415_v54 = vmul.f32 %v1414_v4, %v2769_v2  ;;  %v1441_v55 = vadd.f32 0.0036580483, %v1440_v43  ;;  %v2120_v28 = vclamps-f32 %v1513_v5, 1.0  ;;  %v1543_v9 = vadd.f32 %v2182_v60, %v1542_v11 }
 0x10f   : > { %v1405_v3 = vadd.f32 0.18741608, %v1404_v27  ;;  %v1451_v32 = vmul.f32 %v1450_v14, %v2810_v12  ;;  %v1080_v25 = vmul.f32 %v1079_v7, %v2816_v23  ;;  %v1089_v29 = vmul.f32 3.8918573e-05, %v2816_v23 }
 0x110   : > { %v1416_v17 = vadd.f32 0.4994258, %v1415_v54  ;;  %v1442_v13 = vmul.f32 %v1441_v55, %v2810_v12  ;;  %v1894_v34 = vadd.f32 1.0, %v2120_v28  ;;  %v1547_v19 = vsel %vm1546_vm8, %v2182_v60, %v1543_v9  ;;  %v500_v9 = vpop.f32.mrf.mxu3 }
 0x111   : > { %v1406_v20 = vmul.f32 %v1405_v3, %v2769_v2  ;;  %v1452_v1 = vadd.f32 0.014752088, %v1451_v32  ;;  %v1552_v37 = vsel %vm2819_vm6, %v1551_v31, %v1547_v19  ;;  %v1081_v57 = vadd.f32 0.0036580483, %v1080_v25 }
 0x112   : > { %v1417_v39 = vmul.f32 %v1416_v17, %v2769_v2  ;;  %v1443_v8 = vadd.f32 0.05243302, %v1442_v13  ;;  %v1922_v24 = vmul.f32 %v1894_v34, %v2739_v35  ;;  %v1553_v18 = vmul.f32 %v1552_v37, %v2799_v21  ;;  %v477_v21 = vpop.f32.mrf.mxu2 }
 0x113   : > { %v1453_v30 = vmul.f32 %v1452_v1, %v2810_v12  ;;  %v1082_v47 = vmul.f32 %v1081_v57, %v2816_v23  ;;  %v1090_v48 = vadd.f32 0.001143296, %v1089_v29  ;;  %v2860_v2 = vmul.f32 0.70710677, %v2838_v45  ;;  %v526_v29 = vpop.f32.mrf.mxu0 }
 0x114   : > { %v2854_v26 = vadd.f32 1.0, %v1417_v39  ;;  %v1444_v60 = vmul.f32 %v1443_v8, %v2810_v12  ;;  %1951 = vst [vmem:[%s2588_s10 + $0x90] sm:$0xff] %v1922_v24  ;;  %v2121_v10 = vclamps-f32 %v1553_v18, 1.0  ;;  %v719_v53 = vmul.f32 0.5, %v2656_v36 }
 0x115   : > { %v1454_v31 = vadd.f32 0.112945676, %v1453_v30  ;;  %v1407_v35 = vadd.f32 1.1283791, %v1406_v20  ;;  %v1083_v44 = vadd.f32 0.05243302, %v1082_v47  ;;  %v1091_v22 = vmul.f32 %v1090_v48, %v2816_v23 }
 0x116   : > { %2183 = vrcp.f32 %v2854_v26  ;;  %v1895_v49 = vadd.f32 1.0, %v2121_v10  ;;  %v1445_v50 = vadd.f32 0.18741608, %v1444_v60  ;;  %v2866_v38 = vmul.f32 0.5, %v2732_v40 }
 0x117   : > { %v1455_v51 = vmul.f32 %v1454_v31, %v2810_v12  ;;  %v1116_v41 = vmul.f32 %v2860_v2, %v2860_v2  ;;  %v1084_v52 = vmul.f32 %v1083_v44, %v2816_v23  ;;  %v478_v63 = vadd.f32 %v477_v21, %v2395_v33  ;;  %v651_v44 = vld [vmem:[%s2401_s7 + $0x38] sm:$0xff] }
 0x118   : > { %v1923_v36 = vmul.f32 %v1895_v49, %v719_v53  ;;  %v2874_v6 = vmul.f32 0.5, %v2763_v59  ;;  %v2877_v0 = vmul.f32 0.5, %v2765_v61  ;;  %v1092_v16 = vadd.f32 0.014752088, %v1091_v22 }
 0x119   : > { %v1456_v58 = vadd.f32 0.4994258, %v1455_v51  ;;  %v2879_v40 = vmin.f32 %v1116_v41, 16.0  ;;  %v1408_v4 = vmul.f32 %v1407_v35, %v2745_v46  ;;  %v1428_v43 = vand.u32 2147483647, %v2854_v26 }
 0x11a   : > { %1952 = vst [vmem:[%s2588_s10 + $0x98] sm:$0xff] %v1923_v36  ;;  %v1446_v5 = vmul.f32 %v1445_v50, %v2810_v12  ;;  %v1430_v59 = vand.u32 2147483648, %v2854_v26  ;;  %v1093_v14 = vmul.f32 %v1092_v16, %v2816_v23  ;;  %v1085_v46 = vadd.f32 0.18741608, %v1084_v52 }
 0x11b   : > { %v1457_v11 = vmul.f32 %v1456_v58, %v2810_v12  ;;  %v1118_v61 = vmul.f32 2.1237322e-06, %v2879_v40  ;;  %v1129_v54 = vmul.f32 3.8918573e-05, %v2879_v40  ;;  %v2894_v28 = vadd.f32 %v650_v56, %v478_v63 }
 0x11c   : > { %v2184_v27 = vpop.eup %2183  ;;  %vm1424_vm9 = vweird.f32 %v2854_v26  ;;  %v1094_v12 = vadd.f32 0.112945676, %v1093_v14  ;;  %vm2897_vm10 = vcmp.eq.f32.partialorder %v1428_v43, 8.507059e+37  ;;  %v1447_v25 = vadd.f32 1.1283791, %v1446_v5 }
 0x11d   : > { %v1420_v55 = vmul.f32 %v2184_v27, %v2854_v26  ;;  %v2892_v7 = vadd.f32 1.0, %v1457_v11  ;;  %v1119_v3 = vadd.f32 0.00028619796, %v1118_v61  ;;  %v1130_v32 = vadd.f32 0.001143296, %v1129_v54  ;;  %v666_v54 = vld [vmem:[%s2401_s7 + $0xb0] sm:$0xff] }
 0x11e   : > { %v1431_v34 = vor.u32 1.1754944e-38, %v1430_v59  ;;  %v1095_v19 = vmul.f32 %v1094_v12, %v2816_v23  ;;  %v501_v1 = vadd.f32 %v500_v9, %v2395_v33  ;;  %vm1425_vm11 = vweird.f32 %v2184_v27 }
 0x11f   : > { %v1421_v17 = vsub.f32 1.0, %v1420_v55  ;;  %2185 = vrcp.f32 %v2892_v7  ;;  %v1120_v20 = vmul.f32 %v1119_v3, %v2879_v40  ;;  %v1131_v39 = vmul.f32 %v1130_v32, %v2879_v40  ;;  %vm1426_vm12 = vmor %vm1424_vm9, %vm1425_vm11  ;;  %v549_v55 = vpop.f32.mrf.mxu1 }
 0x120   : > { %v2907_v8 = vmul.f32 0.70710677, %v2894_v28  ;;  %v1086_v57 = vmul.f32 %v1085_v46, %v2816_v23  ;;  %v1096_v24 = vadd.f32 0.4994258, %v1095_v19  ;;  %v527_v30 = vadd.f32 %v526_v29, %v2409_v42 }
 0x121   : > { %v1422_v37 = vmul.f32 %v2184_v27, %v1421_v17  ;;  %v1121_v18 = vadd.f32 0.0036580483, %v1120_v20  ;;  %v1448_v47 = vmul.f32 %v1447_v25, %v2784_v15  ;;  %v1132_v48 = vadd.f32 0.014752088, %v1131_v39 }
 0x122   : > { %v996_v10 = vmul.f32 %v2907_v8, %v2907_v8  ;;  %vm1464_vm13 = vweird.f32 %v2892_v7  ;;  %v1468_v31 = vand.u32 2147483647, %v2892_v7  ;;  %v1097_v53 = vmul.f32 %v1096_v24, %v2816_v23 }
 0x123   : > { %v1423_v60 = vadd.f32 %v2184_v27, %v1422_v37  ;;  %v1122_v35 = vmul.f32 %v1121_v18, %v2879_v40  ;;  %v1470_v50 = vand.u32 2147483648, %v2892_v7  ;;  %v1133_v15 = vmul.f32 %v1132_v48, %v2879_v40 }
 0x124   : > { %v2922_v51 = vmin.f32 %v996_v10, 16.0  ;;  %v1087_v41 = vadd.f32 1.1283791, %v1086_v57  ;;  %v2928_v36 = vadd.f32 1.0, %v1097_v53  ;;  %vm2931_vm14 = vcmp.eq.f32.partialorder %v1468_v31, 8.507059e+37 }
 0x125   : > { %v2186_v21 = vpop.eup %2185  ;;  %v1427_v49 = vsel %vm1426_vm12, %v2184_v27, %v1423_v60  ;;  %v1123_v58 = vadd.f32 0.05243302, %v1122_v35  ;;  %v1134_v52 = vadd.f32 0.112945676, %v1133_v15  ;;  %v2936_v43 = vadd.f32 %v651_v44, %v501_v1 }
 0x126   : > { %v1432_v26 = vsel %vm2897_vm10, %v1431_v34, %v1427_v49  ;;  %v1460_v22 = vmul.f32 %v2186_v21, %v2892_v7  ;;  %v998_v63 = vmul.f32 2.1237322e-06, %v2922_v51  ;;  %2187 = vrcp.f32 %v2928_v36 }
 0x127   : > { %v1433_v23 = vmul.f32 %v1432_v26, %v1408_v4  ;;  %v1471_v11 = vor.u32 1.1754944e-38, %v1470_v50  ;;  %v1124_v27 = vmul.f32 %v1123_v58, %v2879_v40  ;;  %v1135_v4 = vmul.f32 %v1134_v52, %v2879_v40 }
 0x128   : > { %v1461_v16 = vsub.f32 1.0, %v1460_v22  ;;  %vm1465_vm15 = vweird.f32 %v2186_v21  ;;  %v999_v14 = vadd.f32 0.00028619796, %v998_v63  ;;  %v1009_v61 = vmul.f32 3.8918573e-05, %v2922_v51 }
 0x129   : > { %v2118_v5 = vclamps-f32 %v1433_v23, 1.0  ;;  %v1088_v9 = vmul.f32 %v1087_v41, %v2788_v62  ;;  %v1125_v12 = vadd.f32 0.18741608, %v1124_v27  ;;  %v1136_v3 = vadd.f32 0.4994258, %v1135_v4  ;;  %vm1466_vm0 = vmor %vm1464_vm13, %vm1465_vm15 }
 0x12a   : > { %v1462_v59 = vmul.f32 %v2186_v21, %v1461_v16  ;;  %v1000_v17 = vmul.f32 %v999_v14, %v2922_v51  ;;  %v1010_v13 = vadd.f32 0.001143296, %v1009_v61  ;;  %v2945_v25 = vmul.f32 0.70710677, %v2936_v43 }
 0x12b   : > { %v1892_v46 = vadd.f32 1.0, %v2118_v5  ;;  %v1137_v34 = vmul.f32 %v1136_v3, %v2879_v40  ;;  %v2951_v19 = vadd.f32 %v666_v54, %v527_v30  ;;  %v2954_v62 = vadd.f32 %v549_v55, %v2409_v42 }
 0x12c   : > { %v1463_v32 = vadd.f32 %v2186_v21, %v1462_v59  ;;  %v2188_v20 = vpop.eup %2187  ;;  %v1001_v37 = vadd.f32 0.0036580483, %v1000_v17  ;;  %v1011_v39 = vmul.f32 %v1010_v13, %v2922_v51  ;;  %v1036_v57 = vmul.f32 %v2945_v25, %v2945_v25 }
 0x12d   : > { %v1920_v29 = vmul.f32 %v1892_v46, %v2866_v38  ;;  %v1100_v7 = vmul.f32 %v2188_v20, %v2928_v36  ;;  %v1108_v24 = vand.u32 2147483647, %v2928_v36  ;;  %v1126_v18 = vmul.f32 %v1125_v12, %v2879_v40 }
 0x12e   : > { %v1467_v1 = vsel %vm1466_vm0, %v2186_v21, %v1463_v32  ;;  %v2965_v60 = vadd.f32 1.0, %v1137_v34  ;;  %v1002_v48 = vmul.f32 %v1001_v37, %v2922_v51  ;;  %v1012_v10 = vadd.f32 0.014752088, %v1011_v39 }
 0x12f   : > { %1949 = vst [vmem:[%s2588_s10 + $0x80] sm:$0xff] %v1920_v29  ;;  %v1472_v38 = vsel %vm2931_vm14, %v1471_v11, %v1467_v1  ;;  %v1101_v31 = vsub.f32 1.0, %v1100_v7  ;;  %vm1104_vm1 = vweird.f32 %v2928_v36  ;;  %v1110_v53 = vand.u32 2147483648, %v2928_v36 }
 0x130   : > { %v1473_v30 = vmul.f32 %v1472_v38, %v1448_v47  ;;  %v2970_v35 = vmin.f32 %v1036_v57, 16.0  ;;  %vm1105_vm2 = vweird.f32 %v2188_v20  ;;  %2189 = vrcp.f32 %v2965_v60 }
 0x131   : > { %v2974_v49 = vmul.f32 0.70710677, %v2951_v19  ;;  %v1102_v40 = vmul.f32 %v2188_v20, %v1101_v31  ;;  %v1127_v47 = vadd.f32 1.1283791, %v1126_v18  ;;  %v1003_v50 = vadd.f32 0.05243302, %v1002_v48  ;;  %vm1106_vm4 = vmor %vm1104_vm1, %vm1105_vm2 }
 0x132   : > { %v2119_v21 = vclamps-f32 %v1473_v30, 1.0  ;;  %v1013_v15 = vmul.f32 %v1012_v10, %v2922_v51  ;;  %vm2977_vm3 = vcmp.eq.f32.partialorder %v1108_v24, 8.507059e+37  ;;  %v1038_v22 = vmul.f32 2.1237322e-06, %v2970_v35  ;;  %v667_v18 = vld [vmem:[%s2401_s7 + $0xb8] sm:$0xff]  ;;  %v480_v30 = vpop.f32.mrf.mxu2 }
 0x133   : > { %v1049_v41 = vmul.f32 3.8918573e-05, %v2970_v35  ;;  %v1103_v23 = vadd.f32 %v2188_v20, %v1102_v40  ;;  %v1111_v58 = vor.u32 1.1754944e-38, %v1110_v53  ;;  %v1148_v52 = vand.u32 2147483647, %v2965_v60 }
 0x134   : > { %v1893_v44 = vadd.f32 1.0, %v2119_v21  ;;  %v1014_v63 = vadd.f32 0.112945676, %v1013_v15  ;;  %v1039_v56 = vadd.f32 0.00028619796, %v1038_v22  ;;  %v1636_v11 = vmul.f32 %v2974_v49, %v2974_v49 }
 0x135   : > { %v1050_v5 = vadd.f32 0.001143296, %v1049_v41  ;;  %v1107_v27 = vsel %vm1106_vm4, %v2188_v20, %v1103_v23  ;;  %v1128_v4 = vmul.f32 %v1127_v47, %v2860_v2  ;;  %v1004_v59 = vmul.f32 %v1003_v50, %v2922_v51 }
 0x136   : > { %v1921_v16 = vmul.f32 %v1893_v44, %v2874_v6  ;;  %v1015_v14 = vmul.f32 %v1014_v63, %v2922_v51  ;;  %v2190_v61 = vpop.eup %2189  ;;  %v1112_v6 = vsel %vm2977_vm3, %v1111_v58, %v1107_v27  ;;  %v1040_v36 = vmul.f32 %v1039_v56, %v2970_v35  ;;  %v664_v58 = vld [vmem:[%s2401_s7 + $0xa0] sm:$0xff] }
 0x137   : > { %v1051_v54 = vmul.f32 %v1050_v5, %v2970_v35  ;;  %v2998_v55 = vmin.f32 %v1636_v11, 16.0  ;;  %v1113_v46 = vmul.f32 %v1112_v6, %v1088_v9  ;;  %v1140_v12 = vmul.f32 %v2190_v61, %v2965_v60 }
 0x138   : > { %1950 = vst [vmem:[%s2588_s10 + $0x88] sm:$0xff] %v1921_v16  ;;  %vm3001_vm5 = vcmp.eq.f32.partialorder %v1148_v52, 8.507059e+37  ;;  %v1150_v3 = vand.u32 2147483648, %v2965_v60  ;;  %vm1144_vm6 = vweird.f32 %v2965_v60  ;;  %v1016_v32 = vadd.f32 0.4994258, %v1015_v14 }
 0x139   : > { %v1041_v17 = vadd.f32 0.0036580483, %v1040_v36  ;;  %v1052_v13 = vadd.f32 0.014752088, %v1051_v54  ;;  %v2110_v29 = vclamps-f32 %v1113_v46, 1.0  ;;  %v1141_v34 = vsub.f32 1.0, %v1140_v12 }
 0x13a   : > { %v1005_v20 = vadd.f32 0.18741608, %v1004_v59  ;;  %v1638_v1 = vmul.f32 2.1237322e-06, %v2998_v55  ;;  %v1017_v9 = vmul.f32 %v1016_v32, %v2922_v51  ;;  %v1649_v57 = vmul.f32 3.8918573e-05, %v2998_v55 }
 0x13b   : > { %v1042_v37 = vmul.f32 %v1041_v17, %v2970_v35  ;;  %v1053_v39 = vmul.f32 %v1052_v13, %v2970_v35  ;;  %v1884_v38 = vadd.f32 1.0, %v2110_v29  ;;  %v1142_v7 = vmul.f32 %v2190_v61, %v1141_v34 }
 0x13c   : > { %vm1145_vm7 = vweird.f32 %v2190_v61  ;;  %v1639_v24 = vadd.f32 0.00028619796, %v1638_v1  ;;  %v1151_v48 = vor.u32 1.1754944e-38, %v1150_v3  ;;  %v3013_v10 = vadd.f32 1.0, %v1017_v9 }
 0x13d   : > { %v1043_v31 = vadd.f32 0.05243302, %v1042_v37  ;;  %v1054_v53 = vadd.f32 0.112945676, %v1053_v39  ;;  %v1912_v21 = vmul.f32 %v1884_v38, %v2877_v0  ;;  %v1143_v40 = vadd.f32 %v2190_v61, %v1142_v7  ;;  %vm1146_vm8 = vmor %vm1144_vm6, %vm1145_vm7  ;;  %v503_v39 = vpop.f32.mrf.mxu3 }
 0x13e   : > { %v1640_v47 = vmul.f32 %v1639_v24, %v2998_v55  ;;  %v1650_v50 = vadd.f32 0.001143296, %v1649_v57  ;;  %v1006_v15 = vmul.f32 %v1005_v20, %v2922_v51  ;;  %2191 = vrcp.f32 %v3013_v10 }
 0x13f   : > { %v3022_v44 = vadd.f32 %v667_v18, %v2954_v62  ;;  %v481_v26 = vadd.f32 %v480_v30, %v2409_v42  ;;  %1940 = vst [vmem:[%s2588_s10 + $0x40] sm:$0xff] %v1912_v21  ;;  %v1147_v22 = vsel %vm1146_vm8, %v2190_v61, %v1143_v40  ;;  %v1044_v0 = vmul.f32 %v1043_v31, %v2970_v35 }
 0x140   : > { %v1055_v41 = vmul.f32 %v1054_v53, %v2970_v35  ;;  %v1641_v23 = vadd.f32 0.0036580483, %v1640_v47  ;;  %v709_v60 = vmul.f32 0.5, %v2838_v45  ;;  %v1152_v51 = vsel %vm3001_vm5, %v1151_v48, %v1147_v22 }
 0x141   : > { %v3033_v52 = vmul.f32 0.5, %v2894_v28  ;;  %v1651_v62 = vmul.f32 %v1650_v50, %v2998_v55  ;;  %v1153_v63 = vmul.f32 %v1152_v51, %v1128_v4  ;;  %v1045_v16 = vadd.f32 0.18741608, %v1044_v0 }
 0x142   : > { %v1056_v56 = vadd.f32 0.4994258, %v1055_v41  ;;  %v1642_v5 = vmul.f32 %v1641_v23, %v2998_v55  ;;  %v3038_v11 = vmul.f32 0.5, %v2936_v43  ;;  %v3041_v59 = vmul.f32 0.70710677, %v3022_v44 }
 0x143   : > { %v1652_v27 = vadd.f32 0.014752088, %v1651_v62  ;;  %v3043_v45 = vadd.f32 %v664_v58, %v481_v26  ;;  %v2111_v14 = vclamps-f32 %v1153_v63, 1.0  ;;  %v1007_v61 = vadd.f32 1.1283791, %v1006_v15 }
 0x144   : > { %v1057_v28 = vmul.f32 %v1056_v56, %v2970_v35  ;;  %v1643_v6 = vadd.f32 0.05243302, %v1642_v5  ;;  %v2192_v36 = vpop.eup %2191  ;;  %v1046_v4 = vmul.f32 %v1045_v16, %v2970_v35  ;;  %v1676_v43 = vmul.f32 %v3041_v59, %v3041_v59  ;;  %v665_v5 = vld [vmem:[%s2401_s7 + $0xa8] sm:$0xff] }
 0x145   : > { %v1653_v54 = vmul.f32 %v1652_v27, %v2998_v55  ;;  %v3051_v46 = vmul.f32 0.70710677, %v3043_v45  ;;  %v1885_v12 = vadd.f32 1.0, %v2111_v14  ;;  %v1020_v2 = vmul.f32 %v2192_v36, %v3013_v10 }
 0x146   : > { %v1028_v3 = vand.u32 2147483647, %v3013_v10  ;;  %v1030_v32 = vand.u32 2147483648, %v3013_v10  ;;  %v3056_v17 = vadd.f32 1.0, %v1057_v28  ;;  %v1644_v35 = vmul.f32 %v1643_v6, %v2998_v55 }
 0x147   : > { %v1654_v13 = vadd.f32 0.112945676, %v1653_v54  ;;  %v3059_v29 = vmin.f32 %v1676_v43, 16.0  ;;  %v1913_v34 = vmul.f32 %v1885_v12, %v709_v60  ;;  %v1008_v20 = vmul.f32 %v1007_v61, %v2907_v8 }
 0x148   : > { %v1021_v1 = vsub.f32 1.0, %v1020_v2  ;;  %v1556_v9 = vmul.f32 %v3051_v46, %v3051_v46  ;;  %vm1024_vm9 = vweird.f32 %v3013_v10  ;;  %vm1025_vm10 = vweird.f32 %v2192_v36 }
 0x149   : > { %v1047_v37 = vadd.f32 1.1283791, %v1046_v4  ;;  %2193 = vrcp.f32 %v3056_v17  ;;  %1941 = vst [vmem:[%s2588_s10 + $0x48] sm:$0xff] %v1913_v34  ;;  %v1645_v38 = vadd.f32 0.18741608, %v1644_v35  ;;  %v1655_v7 = vmul.f32 %v1654_v13, %v2998_v55  ;;  %vm1026_vm12 = vmor %vm1024_vm9, %vm1025_vm10 }
 0x14a   : > { %v1022_v57 = vmul.f32 %v2192_v36, %v1021_v1  ;;  %v1678_v24 = vmul.f32 2.1237322e-06, %v3059_v29  ;;  %vm3069_vm11 = vcmp.eq.f32.partialorder %v1028_v3, 8.507059e+37  ;;  %v1031_v18 = vor.u32 1.1754944e-38, %v1030_v32 }
 0x14b   : > { %v1689_v30 = vmul.f32 3.8918573e-05, %v3059_v29  ;;  %v3074_v48 = vmin.f32 %v1556_v9, 16.0  ;;  %v1656_v53 = vadd.f32 0.4994258, %v1655_v7  ;;  %v504_v40 = vadd.f32 %v503_v39, %v2409_v42 }
 0x14c   : > { %v1023_v31 = vadd.f32 %v2192_v36, %v1022_v57  ;;  %v1679_v21 = vadd.f32 0.00028619796, %v1678_v24  ;;  %v1048_v47 = vmul.f32 %v1047_v37, %v2945_v25  ;;  %v1646_v0 = vmul.f32 %v1645_v38, %v2998_v55 }
 0x14d   : > { %v1690_v50 = vadd.f32 0.001143296, %v1689_v30  ;;  %v1558_v15 = vmul.f32 2.1237322e-06, %v3074_v48  ;;  %v1569_v26 = vmul.f32 3.8918573e-05, %v3074_v48  ;;  %v1657_v41 = vmul.f32 %v1656_v53, %v2998_v55 }
 0x14e   : > { %v1027_v22 = vsel %vm1026_vm12, %v2192_v36, %v1023_v31  ;;  %v1680_v23 = vmul.f32 %v1679_v21, %v3059_v29  ;;  %v1068_v16 = vand.u32 2147483647, %v3056_v17  ;;  %v1070_v56 = vand.u32 2147483648, %v3056_v17  ;;  %v615_v21 = vpop.f32.mrf.mxu0 }
 0x14f   : > { %v2194_v58 = vpop.eup %2193  ;;  %v1032_v10 = vsel %vm3069_vm11, %v1031_v18, %v1027_v22  ;;  %v1691_v60 = vmul.f32 %v1690_v50, %v3059_v29  ;;  %v1559_v25 = vadd.f32 0.00028619796, %v1558_v15  ;;  %v1570_v51 = vadd.f32 0.001143296, %v1569_v26 }
 0x150   : > { %v1033_v62 = vmul.f32 %v1032_v10, %v1008_v20  ;;  %v1060_v63 = vmul.f32 %v2194_v58, %v3056_v17  ;;  %v3093_v27 = vadd.f32 1.0, %v1657_v41  ;;  %v1681_v55 = vadd.f32 0.0036580483, %v1680_v23 }
 0x151   : > { %v1692_v14 = vadd.f32 0.014752088, %v1691_v60  ;;  %v1560_v61 = vmul.f32 %v1559_v25, %v3074_v48  ;;  %vm1064_vm13 = vweird.f32 %v3056_v17  ;;  %v1571_v36 = vmul.f32 %v1570_v51, %v3074_v48 }
 0x152   : > { %v2108_v28 = vclamps-f32 %v1033_v62, 1.0  ;;  %v1061_v6 = vsub.f32 1.0, %v1060_v63  ;;  %vm1065_vm14 = vweird.f32 %v2194_v58  ;;  %v1647_v4 = vadd.f32 1.1283791, %v1646_v0 }
 0x153   : > { %2195 = vrcp.f32 %v3093_v27  ;;  %v3099_v54 = vadd.f32 %v665_v5, %v504_v40  ;;  %v1682_v2 = vmul.f32 %v1681_v55, %v3059_v29  ;;  %v1693_v3 = vmul.f32 %v1692_v14, %v3059_v29  ;;  %vm1066_vm0 = vmor %vm1064_vm13, %vm1065_vm14  ;;  %v638_v55 = vpop.f32.mrf.mxu1 }
 0x154   : > { %v1882_v43 = vadd.f32 1.0, %v2108_v28  ;;  %v1062_v12 = vmul.f32 %v2194_v58, %v1061_v6  ;;  %vm3103_vm15 = vcmp.eq.f32.partialorder %v1068_v16, 8.507059e+37  ;;  %v1071_v35 = vor.u32 1.1754944e-38, %v1070_v56  ;;  %v656_v6 = vld [vmem:[%s2401_s7 + $0x60] sm:$0xff] }
 0x155   : > { %v1561_v13 = vadd.f32 0.0036580483, %v1560_v61  ;;  %v1572_v34 = vadd.f32 0.014752088, %v1571_v36  ;;  %v1683_v9 = vadd.f32 0.05243302, %v1682_v2  ;;  %v1648_v39 = vmul.f32 %v1647_v4, %v2974_v49 }
 0x156   : > { %v1910_v20 = vmul.f32 %v1882_v43, %v3033_v52  ;;  %v1063_v1 = vadd.f32 %v2194_v58, %v1062_v12  ;;  %v1694_v37 = vadd.f32 0.112945676, %v1693_v3  ;;  %v3115_v7 = vmul.f32 0.70710677, %v3099_v54 }
 0x157   : > { %v1562_v57 = vmul.f32 %v1561_v13, %v3074_v48  ;;  %v1573_v38 = vmul.f32 %v1572_v34, %v3074_v48  ;;  %vm1664_vm1 = vweird.f32 %v3093_v27  ;;  %v1668_v52 = vand.u32 2147483647, %v3093_v27 }
 0x158   : > { %1938 = vst [vmem:[%s2588_s10 + $0x30] sm:$0xff] %v1910_v20  ;;  %v1067_v24 = vsel %vm1066_vm0, %v2194_v58, %v1063_v1  ;;  %v1684_v8 = vmul.f32 %v1683_v9, %v3059_v29  ;;  %v1695_v17 = vmul.f32 %v1694_v37, %v3059_v29  ;;  %v1596_v53 = vmul.f32 %v3115_v7, %v3115_v7  ;;  %v657_v1 = vld [vmem:[%s2401_s7 + $0x68] sm:$0xff] }
 0x159   : > { %v2196_v18 = vpop.eup %2195  ;;  %v1072_v49 = vsel %vm3103_vm15, %v1071_v35, %v1067_v24  ;;  %v1563_v30 = vadd.f32 0.05243302, %v1562_v57  ;;  %v1574_v31 = vadd.f32 0.112945676, %v1573_v38  ;;  %v1670_v15 = vand.u32 2147483648, %v3093_v27 }
 0x15a   : > { %v1073_v40 = vmul.f32 %v1072_v49, %v1048_v47  ;;  %v1660_v50 = vmul.f32 %v2196_v18, %v3093_v27  ;;  %v1685_v26 = vadd.f32 0.18741608, %v1684_v8  ;;  %v1696_v22 = vadd.f32 0.4994258, %v1695_v17 }
 0x15b   : > { %v1564_v0 = vmul.f32 %v1563_v30, %v3074_v48  ;;  %v1575_v41 = vmul.f32 %v1574_v31, %v3074_v48  ;;  %v3130_v23 = vmin.f32 %v1596_v53, 16.0  ;;  %v616_v25 = vadd.f32 %v615_v21, %v2395_v33 }
 0x15c   : > { %v2109_v58 = vclamps-f32 %v1073_v40, 1.0  ;;  %v1661_v10 = vsub.f32 1.0, %v1660_v50  ;;  %v1686_v60 = vmul.f32 %v1685_v26, %v3059_v29  ;;  %v1697_v47 = vmul.f32 %v1696_v22, %v3059_v29 }
 0x15d   : > { %v1565_v51 = vadd.f32 0.18741608, %v1564_v0  ;;  %v1576_v62 = vadd.f32 0.4994258, %v1575_v41  ;;  %v1598_v63 = vmul.f32 2.1237322e-06, %v3130_v23  ;;  %vm1665_vm2 = vweird.f32 %v2196_v18 }
 0x15e   : > { %v1883_v16 = vadd.f32 1.0, %v2109_v58  ;;  %v1662_v56 = vmul.f32 %v2196_v18, %v1661_v10  ;;  %v1609_v5 = vmul.f32 3.8918573e-05, %v3130_v23  ;;  %vm3137_vm3 = vcmp.eq.f32.partialorder %v1668_v52, 8.507059e+37  ;;  %vm1666_vm4 = vmor %vm1664_vm1, %vm1665_vm2 }
 0x15f   : > { %v3141_v61 = vadd.f32 1.0, %v1697_v47  ;;  %v1577_v28 = vmul.f32 %v1576_v62, %v3074_v48  ;;  %v1599_v29 = vadd.f32 0.00028619796, %v1598_v63  ;;  %v1566_v43 = vmul.f32 %v1565_v51, %v3074_v48 }
 0x160   : > { %v1911_v36 = vmul.f32 %v1883_v16, %v3038_v11  ;;  %v1663_v4 = vadd.f32 %v2196_v18, %v1662_v56  ;;  %v1610_v12 = vadd.f32 0.001143296, %v1609_v5  ;;  %v1671_v2 = vor.u32 1.1754944e-38, %v1670_v15 }
 0x161   : > { %v1687_v3 = vadd.f32 1.1283791, %v1686_v60  ;;  %2197 = vrcp.f32 %v3141_v61  ;;  %v639_v32 = vadd.f32 %v638_v55, %v2395_v33  ;;  %v3152_v13 = vadd.f32 1.0, %v1577_v28 }
 0x162   : > { %1939 = vst [vmem:[%s2588_s10 + $0x38] sm:$0xff] %v1911_v36  ;;  %v1667_v35 = vsel %vm1666_vm4, %v2196_v18, %v1663_v4  ;;  %v1600_v11 = vmul.f32 %v1599_v29, %v3130_v23  ;;  %v3155_v34 = vadd.f32 %v656_v6, %v616_v25  ;;  %v1710_v27 = vand.u32 2147483648, %v3141_v61  ;;  %v569_v25 = vpop.f32.mrf.mxu2 }
 0x163   : > { %v1672_v48 = vsel %vm3137_vm3, %v1671_v2, %v1667_v35  ;;  %v1611_v20 = vmul.f32 %v1610_v12, %v3130_v23  ;;  %v1708_v37 = vand.u32 2147483647, %v3141_v61  ;;  %v1567_v57 = vadd.f32 1.1283791, %v1566_v43  ;;  %v654_v43 = vld [vmem:[%s2401_s7 + $0x50] sm:$0xff] }
 0x164   : > { %v1673_v9 = vmul.f32 %v1672_v48, %v1648_v39  ;;  %2199 = vrcp.f32 %v3152_v13  ;;  %v722_v38 = vmul.f32 0.5, %v2951_v19  ;;  %v1688_v24 = vmul.f32 %v1687_v3, %v3041_v59 }
 0x165   : > { %v1601_v52 = vadd.f32 0.0036580483, %v1600_v11  ;;  %v1612_v17 = vadd.f32 0.014752088, %v1611_v20  ;;  %v3167_v18 = vmul.f32 0.70710677, %v3155_v34  ;;  %v3169_v49 = vadd.f32 %v657_v1, %v639_v32 }
 0x166   : > { %v2124_v8 = vclamps-f32 %v1673_v9, 1.0  ;;  %vm1704_vm5 = vweird.f32 %v3141_v61  ;;  %v1711_v39 = vor.u32 1.1754944e-38, %v1710_v27  ;;  %v1588_v31 = vand.u32 2147483647, %v3152_v13 }
 0x167   : > { %v2198_v30 = vpop.eup %2197  ;;  %v1602_v53 = vmul.f32 %v1601_v52, %v3130_v23  ;;  %vm3175_vm6 = vcmp.eq.f32.partialorder %v1708_v37, 8.507059e+37  ;;  %v1568_v40 = vmul.f32 %v1567_v57, %v3051_v46  ;;  %v1613_v50 = vmul.f32 %v1612_v17, %v3130_v23  ;;  %v592_v52 = vpop.f32.mrf.mxu3 }
 0x168   : > { %v1898_v21 = vadd.f32 1.0, %v2124_v8  ;;  %v1700_v19 = vmul.f32 %v2198_v30, %v3141_v61  ;;  %v1590_v15 = vand.u32 2147483648, %v3152_v13  ;;  %v1236_v22 = vmul.f32 %v3167_v18, %v3167_v18 }
 0x169   : > { %v1603_v26 = vadd.f32 0.05243302, %v1602_v53  ;;  %v3185_v0 = vmul.f32 0.70710677, %v3169_v49  ;;  %vm1584_vm7 = vweird.f32 %v3152_v13  ;;  %v1614_v60 = vadd.f32 0.112945676, %v1613_v50 }
 0x16a   : > { %v2200_v41 = vpop.eup %2199  ;;  %v1926_v58 = vmul.f32 %v1898_v21, %v722_v38  ;;  %v1701_v10 = vsub.f32 1.0, %v1700_v19  ;;  %vm3189_vm8 = vcmp.eq.f32.partialorder %v1588_v31, 8.507059e+37  ;;  %v3194_v62 = vmin.f32 %v1236_v22, 16.0 }
 0x16b   : > { %v1580_v46 = vmul.f32 %v2200_v41, %v3152_v13  ;;  %v1604_v51 = vmul.f32 %v1603_v26, %v3130_v23  ;;  %vm1705_vm9 = vweird.f32 %v2198_v30  ;;  %v1615_v16 = vmul.f32 %v1614_v60, %v3130_v23  ;;  %v655_v26 = vld [vmem:[%s2401_s7 + $0x58] sm:$0xff] }
 0x16c   : > { %1955 = vst [vmem:[%s2588_s10 + $0xb0] sm:$0xff] %v1926_v58  ;;  %v1702_v63 = vmul.f32 %v2198_v30, %v1701_v10  ;;  %v1276_v56 = vmul.f32 %v3185_v0, %v3185_v0  ;;  %v1591_v55 = vor.u32 1.1754944e-38, %v1590_v15  ;;  %v1238_v14 = vmul.f32 2.1237322e-06, %v3194_v62  ;;  %vm1706_vm10 = vmor %vm1704_vm5, %vm1705_vm9 }
 0x16d   : > { %v1581_v5 = vsub.f32 1.0, %v1580_v46  ;;  %v570_v28 = vadd.f32 %v569_v25, %v2395_v33  ;;  %v1616_v6 = vadd.f32 0.4994258, %v1615_v16  ;;  %v1249_v36 = vmul.f32 3.8918573e-05, %v3194_v62 }
 0x16e   : > { %v1703_v29 = vadd.f32 %v2198_v30, %v1702_v63  ;;  %v3203_v4 = vmin.f32 %v1276_v56, 16.0  ;;  %vm1585_vm11 = vweird.f32 %v2200_v41  ;;  %v1605_v2 = vadd.f32 0.18741608, %v1604_v51 }
 0x16f   : > { %v1582_v12 = vmul.f32 %v2200_v41, %v1581_v5  ;;  %v1239_v3 = vadd.f32 0.00028619796, %v1238_v14  ;;  %v1617_v35 = vmul.f32 %v1616_v6, %v3130_v23  ;;  %v1250_v11 = vadd.f32 0.001143296, %v1249_v36  ;;  %vm1586_vm12 = vmor %vm1584_vm7, %vm1585_vm11 }
 0x170   : > { %v1707_v32 = vsel %vm1706_vm10, %v2198_v30, %v1703_v29  ;;  %v1278_v48 = vmul.f32 2.1237322e-06, %v3203_v4  ;;  %v3213_v9 = vadd.f32 %v654_v43, %v570_v28  ;;  %v1606_v17 = vmul.f32 %v1605_v2, %v3130_v23 }
 0x171   : > { %v1712_v27 = vsel %vm3175_vm6, %v1711_v39, %v1707_v32  ;;  %v1583_v20 = vadd.f32 %v2200_v41, %v1582_v12  ;;  %v1240_v1 = vmul.f32 %v1239_v3, %v3194_v62  ;;  %v3217_v37 = vadd.f32 1.0, %v1617_v35 }
 0x172   : > { %v1713_v61 = vmul.f32 %v1712_v27, %v1688_v24  ;;  %v1251_v57 = vmul.f32 %v1250_v11, %v3194_v62  ;;  %v1279_v38 = vadd.f32 0.00028619796, %v1278_v48  ;;  %v1289_v39 = vmul.f32 3.8918573e-05, %v3203_v4 }
 0x173   : > { %v1587_v8 = vsel %vm1586_vm12, %v2200_v41, %v1583_v20  ;;  %v1241_v30 = vadd.f32 0.0036580483, %v1240_v1  ;;  %v723_v31 = vmul.f32 0.5, %v3022_v44  ;;  %2201 = vrcp.f32 %v3217_v37 }
 0x174   : > { %v2125_v53 = vclamps-f32 %v1713_v61, 1.0  ;;  %v1592_v13 = vsel %vm3189_vm8, %v1591_v55, %v1587_v8  ;;  %v3228_v19 = vmul.f32 0.70710677, %v3213_v9  ;;  %v593_v59 = vadd.f32 %v592_v52, %v2395_v33 }
 0x175   : > { %v1593_v24 = vmul.f32 %v1592_v13, %v1568_v40  ;;  %v1242_v21 = vmul.f32 %v1241_v30, %v3194_v62  ;;  %v1252_v50 = vadd.f32 0.014752088, %v1251_v57  ;;  %v1280_v15 = vmul.f32 %v1279_v38, %v3203_v4 }
 0x176   : > { %v1899_v23 = vadd.f32 1.0, %v2125_v53  ;;  %v1290_v44 = vadd.f32 0.001143296, %v1289_v39  ;;  %v720_v22 = vmul.f32 0.5, %v3043_v45  ;;  %v1607_v58 = vadd.f32 1.1283791, %v1606_v17 }
 0x177   : > { %v2122_v41 = vclamps-f32 %v1593_v24, 1.0  ;;  %v1243_v10 = vadd.f32 0.05243302, %v1242_v21  ;;  %v1253_v60 = vmul.f32 %v1252_v50, %v3194_v62  ;;  %v1281_v25 = vadd.f32 0.0036580483, %v1280_v15 }
 0x178   : > { %v1927_v40 = vmul.f32 %v1899_v23, %v723_v31  ;;  %v1291_v46 = vmul.f32 %v1290_v44, %v3203_v4  ;;  %v1156_v51 = vmul.f32 %v3228_v19, %v3228_v19  ;;  %v3239_v63 = vadd.f32 %v655_v26, %v593_v59 }
 0x179   : > { %v1896_v47 = vadd.f32 1.0, %v2122_v41  ;;  %v1244_v33 = vmul.f32 %v1243_v10, %v3194_v62  ;;  %v2202_v16 = vpop.eup %2201  ;;  %v1254_v45 = vadd.f32 0.112945676, %v1253_v60  ;;  %v1282_v56 = vmul.f32 %v1281_v25, %v3203_v4  ;;  %v670_v10 = vld [vmem:[%s2401_s7 + $0xd0] sm:$0xff] }
 0x17a   : > { %1956 = vst [vmem:[%s2588_s10 + $0xb8] sm:$0xff] %v1927_v40  ;;  %v1292_v5 = vadd.f32 0.014752088, %v1291_v46  ;;  %v1620_v14 = vmul.f32 %v2202_v16, %v3217_v37  ;;  %v1628_v28 = vand.u32 2147483647, %v3217_v37  ;;  %v1630_v29 = vand.u32 2147483648, %v3217_v37 }
 0x17b   : > { %v1924_v55 = vmul.f32 %v1896_v47, %v720_v22  ;;  %v1255_v6 = vmul.f32 %v1254_v45, %v3194_v62  ;;  %v1283_v36 = vadd.f32 0.05243302, %v1282_v56  ;;  %v3248_v12 = vmin.f32 %v1156_v51, 16.0 }
 0x17c   : > { %v1293_v43 = vmul.f32 %v1292_v5, %v3203_v4  ;;  %v1621_v2 = vsub.f32 1.0, %v1620_v14  ;;  %v1245_v3 = vadd.f32 0.18741608, %v1244_v33  ;;  %v3252_v32 = vmul.f32 0.70710677, %v3239_v63 }
 0x17d   : > { %1953 = vst [vmem:[%s2588_s10 + $0xa0] sm:$0xff] %v1924_v55  ;;  %v1608_v35 = vmul.f32 %v1607_v58, %v3115_v7  ;;  %v1256_v11 = vadd.f32 0.4994258, %v1255_v6  ;;  %v1158_v27 = vmul.f32 2.1237322e-06, %v3248_v12  ;;  %vm1625_vm13 = vweird.f32 %v2202_v16 }
 0x17e   : > { %v1294_v48 = vadd.f32 0.112945676, %v1293_v43  ;;  %v1622_v20 = vmul.f32 %v2202_v16, %v1621_v2  ;;  %v1284_v1 = vmul.f32 %v1283_v36, %v3203_v4  ;;  %v1169_v61 = vmul.f32 3.8918573e-05, %v3248_v12 }
 0x17f   : > { %vm1624_vm14 = vweird.f32 %v3217_v37  ;;  %v1257_v57 = vmul.f32 %v1256_v11, %v3194_v62  ;;  %v1196_v52 = vmul.f32 %v3252_v32, %v3252_v32  ;;  %vm1629_vm15 = vcmp.eq.f32.partialorder %v1628_v28, 8.507059e+37  ;;  %v618_v37 = vpop.f32.mrf.mxu0 }
 0x180   : > { %v1295_v38 = vmul.f32 %v1294_v48, %v3203_v4  ;;  %v1623_v7 = vadd.f32 %v2202_v16, %v1622_v20  ;;  %v1159_v8 = vadd.f32 0.00028619796, %v1158_v27  ;;  %v1170_v17 = vadd.f32 0.001143296, %v1169_v61  ;;  %vm1626_vm0 = vmor %vm1624_vm14, %vm1625_vm13  ;;  %v671_v48 = vld [vmem:[%s2401_s7 + $0xd8] sm:$0xff] }
 0x181   : > { %v1631_v30 = vor.u32 1.1754944e-38, %v1630_v29  ;;  %v1246_v39 = vmul.f32 %v1245_v3, %v3194_v62  ;;  %v3264_v31 = vadd.f32 1.0, %v1257_v57  ;;  %v1285_v24 = vadd.f32 0.18741608, %v1284_v1 }
 0x182   : > { %v1296_v53 = vadd.f32 0.4994258, %v1295_v38  ;;  %v1627_v13 = vsel %vm1626_vm0, %v2202_v16, %v1623_v7  ;;  %v1160_v21 = vmul.f32 %v1159_v8, %v3248_v12  ;;  %v1171_v59 = vmul.f32 %v1170_v17, %v3248_v12 }
 0x183   : > { %v1632_v23 = vsel %vm1629_vm15, %v1631_v30, %v1627_v13  ;;  %2203 = vrcp.f32 %v3264_v31  ;;  %v3269_v50 = vmin.f32 %v1196_v52, 16.0  ;;  %v721_v15 = vmul.f32 0.5, %v3099_v54 }
 0x184   : > { %v1633_v44 = vmul.f32 %v1632_v23, %v1608_v35  ;;  %v1297_v62 = vmul.f32 %v1296_v53, %v3203_v4  ;;  %v619_v26 = vadd.f32 %v618_v37, %v2409_v42  ;;  %v3275_v22 = vmul.f32 0.5, %v3155_v34 }
 0x185   : > { %v1161_v41 = vadd.f32 0.0036580483, %v1160_v21  ;;  %v1172_v58 = vadd.f32 0.014752088, %v1171_v59  ;;  %v1247_v60 = vadd.f32 1.1283791, %v1246_v39  ;;  %v1286_v25 = vmul.f32 %v1285_v24, %v3203_v4  ;;  %v641_v4 = vpop.f32.mrf.mxu1 }
 0x186   : > { %v2123_v40 = vclamps-f32 %v1633_v44, 1.0  ;;  %v3279_v46 = vadd.f32 1.0, %v1297_v62  ;;  %v1268_v47 = vand.u32 2147483647, %v3264_v31  ;;  %v1198_v51 = vmul.f32 2.1237322e-06, %v3269_v50 }
 0x187   : > { %v1162_v54 = vmul.f32 %v1161_v41, %v3248_v12  ;;  %v1173_v33 = vmul.f32 %v1172_v58, %v3248_v12  ;;  %v1209_v34 = vmul.f32 3.8918573e-05, %v3269_v50  ;;  %v3287_v45 = vadd.f32 %v670_v10, %v619_v26 }
 0x188   : > { %v1897_v16 = vadd.f32 1.0, %v2123_v40  ;;  %2205 = vrcp.f32 %v3279_v46  ;;  %v1270_v5 = vand.u32 2147483648, %v3264_v31  ;;  %v3291_v55 = vmul.f32 0.5, %v3169_v49 }
 0x189   : > { %v2204_v56 = vpop.eup %2203  ;;  %v1163_v14 = vadd.f32 0.05243302, %v1162_v54  ;;  %v1174_v28 = vadd.f32 0.112945676, %v1173_v33  ;;  %v1248_v6 = vmul.f32 %v1247_v60, %v3167_v18  ;;  %v1287_v43 = vadd.f32 1.1283791, %v1286_v25 }
 0x18a   : > { %v1925_v29 = vmul.f32 %v1897_v16, %v721_v15  ;;  %v1260_v36 = vmul.f32 %v2204_v56, %v3264_v31  ;;  %vm3295_vm1 = vcmp.eq.f32.partialorder %v1268_v47, 8.507059e+37  ;;  %v1199_v35 = vadd.f32 0.00028619796, %v1198_v51 }
 0x18b   : > { %v1175_v3 = vmul.f32 %v1174_v28, %v3248_v12  ;;  %v642_v11 = vadd.f32 %v641_v4, %v2409_v42  ;;  %vm1264_vm2 = vweird.f32 %v3264_v31  ;;  %v1210_v27 = vadd.f32 0.001143296, %v1209_v34 }
 0x18c   : > { %1954 = vst [vmem:[%s2588_s10 + $0xa8] sm:$0xff] %v1925_v29  ;;  %v1261_v49 = vsub.f32 1.0, %v1260_v36  ;;  %v3305_v18 = vmul.f32 0.70710677, %v3287_v45  ;;  %v1271_v20 = vor.u32 1.1754944e-38, %v1270_v5  ;;  %v1164_v1 = vmul.f32 %v1163_v14, %v3248_v12  ;;  %v572_v14 = vpop.f32.mrf.mxu2 }
 0x18d   : > { %v1176_v61 = vadd.f32 0.4994258, %v1175_v3  ;;  %v1200_v57 = vmul.f32 %v1199_v35, %v3269_v50  ;;  %vm1265_vm3 = vweird.f32 %v2204_v56  ;;  %v1211_v7 = vmul.f32 %v1210_v27, %v3269_v50 }
 0x18e   : > { %v2206_v38 = vpop.eup %2205  ;;  %v1262_v52 = vmul.f32 %v2204_v56, %v1261_v49  ;;  %v1796_v8 = vmul.f32 %v3305_v18, %v3305_v18  ;;  %v1308_v30 = vand.u32 2147483647, %v3279_v46  ;;  %v3315_v53 = vadd.f32 %v671_v48, %v642_v11  ;;  %vm1266_vm4 = vmor %vm1264_vm2, %vm1265_vm3 }
 0x18f   : > { %v1300_v17 = vmul.f32 %v2206_v38, %v3279_v46  ;;  %v1177_v39 = vmul.f32 %v1176_v61, %v3248_v12  ;;  %v1201_v13 = vadd.f32 0.0036580483, %v1200_v57  ;;  %v1212_v24 = vadd.f32 0.014752088, %v1211_v7 }
 0x190   : > { %v1263_v37 = vadd.f32 %v2204_v56, %v1262_v52  ;;  %v3317_v21 = vmin.f32 %v1796_v8, 16.0  ;;  %v1310_v23 = vand.u32 2147483648, %v3279_v46  ;;  %v1165_v15 = vadd.f32 0.18741608, %v1164_v1 }
 0x191   : > { %v1301_v59 = vsub.f32 1.0, %v1300_v17  ;;  %v3322_v44 = vadd.f32 1.0, %v1177_v39  ;;  %v1202_v26 = vmul.f32 %v1201_v13, %v3269_v50  ;;  %v1213_v41 = vmul.f32 %v1212_v24, %v3269_v50 }
 0x192   : > { %v1267_v62 = vsel %vm1266_vm4, %v2204_v56, %v1263_v37  ;;  %v1798_v58 = vmul.f32 2.1237322e-06, %v3317_v21  ;;  %vm1305_vm5 = vweird.f32 %v2206_v38  ;;  %v1288_v60 = vmul.f32 %v1287_v43, %v3185_v0  ;;  %v668_v37 = vld [vmem:[%s2401_s7 + $0xc0] sm:$0xff] }
 0x193   : > { %v1272_v10 = vsel %vm3295_vm1, %v1271_v20, %v1267_v62  ;;  %v1302_v40 = vmul.f32 %v2206_v38, %v1301_v59  ;;  %2207 = vrcp.f32 %v3322_v44  ;;  %vm1304_vm6 = vweird.f32 %v3279_v46  ;;  %v595_v62 = vpop.f32.mrf.mxu3 }
 0x194   : > { %v1273_v31 = vmul.f32 %v1272_v10, %v1248_v6  ;;  %v3333_v25 = vmul.f32 0.70710677, %v3315_v53  ;;  %v1203_v54 = vadd.f32 0.05243302, %v1202_v26  ;;  %v1214_v33 = vadd.f32 0.112945676, %v1213_v41  ;;  %vm1306_vm7 = vmor %vm1304_vm6, %vm1305_vm5 }
 0x195   : > { %v1303_v47 = vadd.f32 %v2206_v38, %v1302_v40  ;;  %v1799_v51 = vadd.f32 0.00028619796, %v1798_v58  ;;  %vm1309_vm8 = vcmp.eq.f32.partialorder %v1308_v30, 8.507059e+37  ;;  %v1311_v34 = vor.u32 1.1754944e-38, %v1310_v23 }
 0x196   : > { %v2114_v16 = vclamps-f32 %v1273_v31, 1.0  ;;  %vm1945_vm9 = vcmask 523264   ;;  %v1809_v4 = vmul.f32 3.8918573e-05, %v3317_v21  ;;  %v1166_v5 = vmul.f32 %v1165_v15, %v3248_v12 }
 0x197   : > { %v1307_v56 = vsel %vm1306_vm7, %v2206_v38, %v1303_v47  ;;  %v1215_v0 = vmul.f32 %v1214_v33, %v3269_v50  ;;  %v1800_v46 = vmul.f32 %v1799_v51, %v3317_v21  ;;  %v1836_v36 = vmul.f32 %v3333_v25, %v3333_v25 }
 0x198   : > { %v1888_v28 = vadd.f32 1.0, %v2114_v16  ;;  %v1312_v29 = vsel %vm1309_vm8, %v1311_v34, %v1307_v56  ;;  %v1810_v6 = vadd.f32 0.001143296, %v1809_v4  ;;  %v1204_v3 = vmul.f32 %v1203_v54, %v3269_v50  ;;  %v669_v16 = vld [vmem:[%s2401_s7 + $0xc8] sm:$0xff] }
 0x199   : > { %v2208_v43 = vpop.eup %2207  ;;  %v1313_v2 = vmul.f32 %v1312_v29, %v1288_v60  ;;  %v1216_v35 = vadd.f32 0.4994258, %v1215_v0  ;;  %v1801_v11 = vadd.f32 0.0036580483, %v1800_v46  ;;  %v573_v27 = vadd.f32 %v572_v14, %v2409_v42 }
 0x19a   : > { %v1916_v12 = vmul.f32 %v1888_v28, %v3275_v22  ;;  %v1180_v48 = vmul.f32 %v2208_v43, %v3322_v44  ;;  %v1811_v49 = vmul.f32 %v1810_v6, %v3317_v21  ;;  %v1167_v1 = vadd.f32 1.1283791, %v1166_v5 }
 0x19b   : > { %v2115_v20 = vclamps-f32 %v1313_v2, 1.0  ;;  %v1188_v61 = vand.u32 2147483647, %v3322_v44  ;;  %v1217_v57 = vmul.f32 %v1216_v35, %v3269_v50  ;;  %v1802_v52 = vmul.f32 %v1801_v11, %v3317_v21 }
 0x19c   : > { %1944 = vst [vmem:[%s2588_s10 + $0x60] sm:$0xff] %v1916_v12  ;;  %v1181_v38 = vsub.f32 1.0, %v1180_v48  ;;  %v1812_v7 = vadd.f32 0.014752088, %v1811_v49  ;;  %v3350_v8 = vmin.f32 %v1836_v36, 16.0  ;;  %v1190_v17 = vand.u32 2147483648, %v3322_v44 }
 0x19d   : > { %v1889_v22 = vadd.f32 1.0, %v2115_v20  ;;  %v1205_v30 = vadd.f32 0.18741608, %v1204_v3  ;;  %v3353_v39 = vadd.f32 1.0, %v1217_v57  ;;  %vm1185_vm10 = vweird.f32 %v2208_v43 }
 0x19e   : > { %v1182_v13 = vmul.f32 %v2208_v43, %v1181_v38  ;;  %v1813_v24 = vmul.f32 %v1812_v7, %v3317_v21  ;;  %v1838_v59 = vmul.f32 2.1237322e-06, %v3350_v8  ;;  %v1849_v15 = vmul.f32 3.8918573e-05, %v3350_v8 }
 0x19f   : > { %v1917_v23 = vmul.f32 %v1889_v22, %v3291_v55  ;;  %2209 = vrcp.f32 %v3353_v39  ;;  %vm1184_vm11 = vweird.f32 %v3322_v44  ;;  %v1803_v41 = vadd.f32 0.05243302, %v1802_v52 }
 0x1a0   : > { %v1183_v26 = vadd.f32 %v2208_v43, %v1182_v13  ;;  %v3362_v58 = vadd.f32 %v668_v37, %v573_v27  ;;  %v1168_v10 = vmul.f32 %v1167_v1, %v3228_v19  ;;  %vm1186_vm12 = vmor %vm1184_vm11, %vm1185_vm10  ;;  %v1191_v40 = vor.u32 1.1754944e-38, %v1190_v17 }
 0x1a1   : > { %1946 = vst.msk [vmem:[%s2588_s10 + $0x68] sm:$0xff] %vm1945_vm9, %v1917_v23  ;;  %v1814_v31 = vadd.f32 0.112945676, %v1813_v24  ;;  %v1839_v55 = vadd.f32 0.00028619796, %v1838_v59  ;;  %vm1189_vm13 = vcmp.eq.f32.partialorder %v1188_v61, 8.507059e+37  ;;  %v1206_v47 = vmul.f32 %v1205_v30, %v3269_v50 }
 0x1a2   : > { %v1187_v60 = vsel %vm1186_vm12, %v2208_v43, %v1183_v26  ;;  %v596_v54 = vadd.f32 %v595_v62, %v2409_v42  ;;  %v1850_v51 = vadd.f32 0.001143296, %v1849_v15  ;;  %v3373_v19 = vmul.f32 0.70710677, %v3362_v58 }
 0x1a3   : > { %v1192_v33 = vsel %vm1189_vm13, %v1191_v40, %v1187_v60  ;;  %v1815_v44 = vmul.f32 %v1814_v31, %v3317_v21  ;;  %v1840_v4 = vmul.f32 %v1839_v55, %v3350_v8  ;;  %v710_v5 = vmul.f32 0.5, %v3213_v9 }
 0x1a4   : > { %v1193_v34 = vmul.f32 %v1192_v33, %v1168_v10  ;;  %v1804_v0 = vmul.f32 %v1803_v41, %v3317_v21  ;;  %v1851_v50 = vmul.f32 %v1850_v51, %v3350_v8  ;;  %v1207_v14 = vadd.f32 1.1283791, %v1206_v47 }
 0x1a5   : > { %v2210_v56 = vpop.eup %2209  ;;  %v1816_v46 = vadd.f32 0.4994258, %v1815_v44  ;;  %v3379_v29 = vadd.f32 %v669_v16, %v596_v54  ;;  %v1228_v6 = vand.u32 2147483647, %v3353_v39  ;;  %v1716_v2 = vmul.f32 %v3373_v19, %v3373_v19 }
 0x1a6   : > { %v2112_v42 = vclamps-f32 %v1193_v34, 1.0  ;;  %v1220_v28 = vmul.f32 %v2210_v56, %v3353_v39  ;;  %v1852_v43 = vadd.f32 0.014752088, %v1851_v50  ;;  %v1230_v35 = vand.u32 2147483648, %v3353_v39 }
 0x1a7   : > { %v1817_v36 = vmul.f32 %v1816_v46, %v3317_v21  ;;  %v1841_v11 = vadd.f32 0.0036580483, %v1840_v4  ;;  %v1805_v12 = vadd.f32 0.18741608, %v1804_v0  ;;  %v3389_v27 = vmin.f32 %v1716_v2, 16.0 }
 0x1a8   : > { %v1886_v9 = vadd.f32 1.0, %v2112_v42  ;;  %v1221_v3 = vsub.f32 1.0, %v1220_v28  ;;  %v1853_v49 = vmul.f32 %v1852_v43, %v3350_v8  ;;  %vm1225_vm14 = vweird.f32 %v2210_v56 }
 0x1a9   : > { %v3386_v48 = vadd.f32 1.0, %v1817_v36  ;;  %v3392_v61 = vmul.f32 0.70710677, %v3379_v29  ;;  %v1208_v57 = vmul.f32 %v1207_v14, %v3252_v32  ;;  %vm1224_vm15 = vweird.f32 %v3353_v39 }
 0x1aa   : > { %v1914_v20 = vmul.f32 %v1886_v9, %v710_v5  ;;  %v1222_v1 = vmul.f32 %v2210_v56, %v1221_v3  ;;  %v1842_v52 = vmul.f32 %v1841_v11, %v3350_v8  ;;  %v1854_v7 = vadd.f32 0.112945676, %v1853_v49  ;;  %vm1226_vm0 = vmor %vm1224_vm15, %vm1225_vm14 }
 0x1ab   : > { %2211 = vrcp.f32 %v3386_v48  ;;  %v1718_v22 = vmul.f32 2.1237322e-06, %v3389_v27  ;;  %vm1229_vm1 = vcmp.eq.f32.partialorder %v1228_v6, 8.507059e+37  ;;  %v1231_v17 = vor.u32 1.1754944e-38, %v1230_v35 }
 0x1ac   : > { %1942 = vst [vmem:[%s2588_s10 + $0x50] sm:$0xff] %v1914_v20  ;;  %v1223_v38 = vadd.f32 %v2210_v56, %v1222_v1  ;;  %v1729_v30 = vmul.f32 3.8918573e-05, %v3389_v27  ;;  %v1756_v37 = vmul.f32 %v3392_v61, %v3392_v61  ;;  %v1806_v39 = vmul.f32 %v1805_v12, %v3317_v21 }
 0x1ad   : > { %v1855_v13 = vmul.f32 %v1854_v7, %v3350_v8  ;;  %v1719_v24 = vadd.f32 0.00028619796, %v1718_v22  ;;  %v711_v62 = vmul.f32 0.5, %v3239_v63  ;;  %v1843_v41 = vadd.f32 0.05243302, %v1842_v52 }
 0x1ae   : > { %v1227_v32 = vsel %vm1226_vm0, %v2210_v56, %v1223_v38  ;;  %v1730_v23 = vadd.f32 0.001143296, %v1729_v30  ;;  %v3405_v15 = vmin.f32 %v1756_v37, 16.0  ;;  %v1807_v54 = vadd.f32 1.1283791, %v1806_v39 }
 0x1af   : > { %v1232_v59 = vsel %vm1229_vm1, %v1231_v17, %v1227_v32  ;;  %v1856_v10 = vadd.f32 0.4994258, %v1855_v13  ;;  %v1720_v31 = vmul.f32 %v1719_v24, %v3389_v27  ;;  %v1828_v44 = vand.u32 2147483647, %v3386_v48 }
 0x1b0   : > { %v1233_v26 = vmul.f32 %v1232_v59, %v1208_v57  ;;  %v1731_v55 = vmul.f32 %v1730_v23, %v3389_v27  ;;  %v1758_v60 = vmul.f32 2.1237322e-06, %v3405_v15  ;;  %v1769_v21 = vmul.f32 3.8918573e-05, %v3405_v15 }
 0x1b1   : > { %v2212_v40 = vpop.eup %2211  ;;  %v1830_v63 = vand.u32 2147483648, %v3386_v48  ;;  %v1857_v51 = vmul.f32 %v1856_v10, %v3350_v8  ;;  %v1844_v5 = vmul.f32 %v1843_v41, %v3350_v8  ;;  %v1721_v50 = vadd.f32 0.0036580483, %v1720_v31 }
 0x1b2   : > { %v2113_v47 = vclamps-f32 %v1233_v26, 1.0  ;;  %v1820_v33 = vmul.f32 %v2212_v40, %v3386_v48  ;;  %v1732_v16 = vadd.f32 0.014752088, %v1731_v55  ;;  %v1759_v34 = vadd.f32 0.00028619796, %v1758_v60 }
 0x1b3   : > { %v1770_v0 = vadd.f32 0.001143296, %v1769_v21  ;;  %vm1825_vm2 = vweird.f32 %v2212_v40  ;;  %v1858_v46 = vadd.f32 1.0, %v1857_v51  ;;  %vm1824_vm3 = vweird.f32 %v3386_v48 }
 0x1b4   : > { %v1887_v4 = vadd.f32 1.0, %v2113_v47  ;;  %v1821_v56 = vsub.f32 1.0, %v1820_v33  ;;  %v1733_v42 = vmul.f32 %v1732_v16, %v3389_v27  ;;  %v1760_v6 = vmul.f32 %v1759_v34, %v3405_v15  ;;  %vm1826_vm4 = vmor %vm1824_vm3, %vm1825_vm2 }
 0x1b5   : > { %v1771_v36 = vmul.f32 %v1770_v0, %v3405_v15  ;;  %2213 = vrcp.f32 %v1858_v46  ;;  %v1845_v2 = vadd.f32 0.18741608, %v1844_v5  ;;  %v1808_v3 = vmul.f32 %v1807_v54, %v3305_v18 }
 0x1b6   : > { %v1915_v14 = vmul.f32 %v1887_v4, %v711_v62  ;;  %v1822_v28 = vmul.f32 %v2212_v40, %v1821_v56  ;;  %v1734_v9 = vadd.f32 0.112945676, %v1733_v42  ;;  %v1831_v35 = vor.u32 1.1754944e-38, %v1830_v63 }
 0x1b7   : > { %v1722_v11 = vmul.f32 %v1721_v50, %v3389_v27  ;;  %v1772_v12 = vadd.f32 0.014752088, %v1771_v36  ;;  %vm1829_vm5 = vcmp.eq.f32.partialorder %v1828_v44, 8.507059e+37  ;;  %v1761_v1 = vadd.f32 0.0036580483, %v1760_v6 }
 0x1b8   : > { %1943 = vst [vmem:[%s2588_s10 + $0x58] sm:$0xff] %v1915_v14  ;;  %v1823_v43 = vadd.f32 %v2212_v40, %v1822_v28  ;;  %v1735_v20 = vmul.f32 %v1734_v9, %v3389_v27  ;;  %v1846_v48 = vmul.f32 %v1845_v2, %v3350_v8  ;;  %v726_v39 = vmul.f32 0.5, %v3287_v45 }
 0x1b9   : > { %v1773_v38 = vmul.f32 %v1772_v12, %v3405_v15  ;;  %v1723_v18 = vadd.f32 0.05243302, %v1722_v11  ;;  %v1762_v32 = vmul.f32 %v1761_v1, %v3405_v15  ;;  %v1868_v26 = vand.u32 2147483647, %v1858_v46 }
 0x1ba   : > { %v1827_v49 = vsel %vm1826_vm4, %v2212_v40, %v1823_v43  ;;  %v1736_v7 = vadd.f32 0.4994258, %v1735_v20  ;;  %v1847_v23 = vadd.f32 1.1283791, %v1846_v48  ;;  %v1870_v8 = vand.u32 2147483648, %v1858_v46 }
 0x1bb   : > { %v1832_v57 = vsel %vm1829_vm5, %v1831_v35, %v1827_v49  ;;  %v2214_v22 = vpop.eup %2213  ;;  %v1774_v17 = vadd.f32 0.112945676, %v1773_v38  ;;  %v1724_v41 = vmul.f32 %v1723_v18, %v3389_v27  ;;  %v1763_v60 = vadd.f32 0.05243302, %v1762_v32 }
 0x1bc   : > { %v1833_v52 = vmul.f32 %v1832_v57, %v1808_v3  ;;  %v1860_v37 = vmul.f32 %v2214_v22, %v1858_v46  ;;  %v1737_v13 = vmul.f32 %v1736_v7, %v3389_v27  ;;  %vm1865_vm6 = vweird.f32 %v2214_v22 }
 0x1bd   : > { %v1775_v24 = vmul.f32 %v1774_v17, %v3405_v15  ;;  %vm1864_vm7 = vweird.f32 %v1858_v46  ;;  %v1848_v47 = vmul.f32 %v1847_v23, %v3333_v25  ;;  %v1871_v54 = vor.u32 1.1754944e-38, %v1870_v8 }
 0x1be   : > { %v2128_v30 = vclamps-f32 %v1833_v52, 1.0  ;;  %v1861_v62 = vsub.f32 1.0, %v1860_v37  ;;  %v1738_v10 = vadd.f32 1.0, %v1737_v13  ;;  %vm1866_vm8 = vmor %vm1864_vm7, %vm1865_vm6  ;;  %v1725_v33 = vadd.f32 0.18741608, %v1724_v41 }
 0x1bf   : > { %v1776_v40 = vadd.f32 0.4994258, %v1775_v24  ;;  %vm1869_vm10 = vcmp.eq.f32.partialorder %v1868_v26, 8.507059e+37  ;;  %v1764_v63 = vmul.f32 %v1763_v60, %v3405_v15  ;;  %v727_v25 = vmul.f32 0.5, %v3315_v53 }
 0x1c0   : > { %v1902_v59 = vadd.f32 1.0, %v2128_v30  ;;  %v1862_v55 = vmul.f32 %v2214_v22, %v1861_v62  ;;  %2215 = vrcp.f32 %v1738_v10  ;;  %v1726_v56 = vmul.f32 %v1725_v33, %v3389_v27 }
 0x1c1   : > { %v1777_v21 = vmul.f32 %v1776_v40, %v3405_v15  ;;  %v1765_v46 = vadd.f32 0.18741608, %v1764_v63  ;;  %v1748_v28 = vand.u32 2147483647, %v1738_v10  ;;  %v1750_v6 = vand.u32 2147483648, %v1738_v10 }
 0x1c2   : > { %v1930_v31 = vmul.f32 %v1902_v59, %v726_v39  ;;  %v1863_v45 = vadd.f32 %v2214_v22, %v1862_v55  ;;  %v1727_v14 = vadd.f32 1.1283791, %v1726_v56  ;;  %vm1744_vm12 = vweird.f32 %v1738_v10 }
 0x1c3   : > { %v1778_v51 = vadd.f32 1.0, %v1777_v21  ;;  %v1766_v9 = vmul.f32 %v1765_v46, %v3405_v15  ;;  %v1751_v53 = vor.u32 1.1754944e-38, %v1750_v6  ;;  %vm1749_vm14 = vcmp.eq.f32.partialorder %v1748_v28, 8.507059e+37 }
 0x1c4   : > { %1959 = vst [vmem:[%s2588_s10 + $0xd0] sm:$0xff] %v1930_v31  ;;  %v1867_v44 = vsel %vm1866_vm8, %v2214_v22, %v1863_v45  ;;  %v1728_v35 = vmul.f32 %v1727_v14, %v3373_v19  ;;  %v724_v18 = vmul.f32 0.5, %v3362_v58  ;;  %v725_v13 = vmul.f32 0.5, %v3379_v29 }
 0x1c5   : > { %v1872_v16 = vsel %vm1869_vm10, %v1871_v54, %v1867_v44  ;;  %2217 = vrcp.f32 %v1778_v51  ;;  %v1767_v49 = vadd.f32 1.1283791, %v1766_v9  ;;  %v1790_v20 = vand.u32 2147483648, %v1778_v51 }
 0x1c6   : > { %v1873_v34 = vmul.f32 %v1872_v16, %v1848_v47  ;;  %v2216_v4 = vpop.eup %2215  ;;  %v1788_v38 = vand.u32 2147483647, %v1778_v51  ;;  %vm1784_vm0 = vweird.f32 %v1778_v51 }
 0x1c7   : > { %v1740_v0 = vmul.f32 %v2216_v4, %v1738_v10  ;;  %vm1745_vm11 = vweird.f32 %v2216_v4  ;;  %v1791_v7 = vor.u32 1.1754944e-38, %v1790_v20  ;;  %v1768_v19 = vmul.f32 %v1767_v49, %v3392_v61 }
 0x1c8   : > { %v2129_v5 = vclamps-f32 %v1873_v34, 1.0  ;;  %vm1746_vm13 = vmor %vm1744_vm12, %vm1745_vm11  ;;  %vm1789_vm1 = vcmp.eq.f32.partialorder %v1788_v38, 8.507059e+37 }
 0x1c9   : > { %v1741_v42 = vsub.f32 1.0, %v1740_v0 }
 0x1ca   : > { %v1903_v50 = vadd.f32 1.0, %v2129_v5 }
 0x1cb   : > { %v2218_v36 = vpop.eup %2217  ;;  %v1742_v2 = vmul.f32 %v2216_v4, %v1741_v42 }
 0x1cc   : > { %v1931_v43 = vmul.f32 %v1903_v50, %v727_v25  ;;  %v1780_v3 = vmul.f32 %v2218_v36, %v1778_v51  ;;  %vm1785_vm15 = vweird.f32 %v2218_v36 }
 0x1cd   : > { %v1743_v27 = vadd.f32 %v2216_v4, %v1742_v2 }
 0x1ce   : > { %1960 = vst.msk [vmem:[%s2588_s10 + $0xd8] sm:$0xff] %vm1945_vm9, %v1931_v43  ;;  %v1781_v11 = vsub.f32 1.0, %v1780_v3  ;;  %vm1786_vm9 = vmor %vm1784_vm0, %vm1785_vm15 }
 0x1cf   : > { %v1747_v12 = vsel %vm1746_vm13, %v2216_v4, %v1743_v27 }
 0x1d0   : > { %v1752_v1 = vsel %vm1749_vm14, %v1751_v53, %v1747_v12  ;;  %v1782_v57 = vmul.f32 %v2218_v36, %v1781_v11 }
 0x1d1   : > { %v1753_v15 = vmul.f32 %v1752_v1, %v1728_v35 }
 0x1d2   : > { %v1783_v52 = vadd.f32 %v2218_v36, %v1782_v57 }
 0x1d3   : > { %v2126_v48 = vclamps-f32 %v1753_v15, 1.0 }
 0x1d4   : > { %v1787_v22 = vsel %vm1786_vm9, %v2218_v36, %v1783_v52 }
 0x1d5   : > { %v1900_v17 = vadd.f32 1.0, %v2126_v48  ;;  %v1792_v30 = vsel %vm1789_vm1, %v1791_v7, %v1787_v22 }
 0x1d6   : > { %v1793_v37 = vmul.f32 %v1792_v30, %v1768_v19 }
 0x1d7   : > { %v1928_v32 = vmul.f32 %v1900_v17, %v724_v18 }
 0x1d8   : > { %v2127_v39 = vclamps-f32 %v1793_v37, 1.0 }
 0x1d9   : > { %1957 = vst [vmem:[%s2588_s10 + $0xc0] sm:$0xff] %v1928_v32 }
 0x1da   : > { %v1901_v24 = vadd.f32 1.0, %v2127_v39 }
 0x1dc   : > { %v1929_v59 = vmul.f32 %v1901_v24, %v725_v13 }
 0x1de   : > { %1958 = vst [vmem:[%s2588_s10 + $0xc8] sm:$0xff] %v1929_v59 }
 0x1df PF: > { %s14_s17 = sadd.s32 1, %s2241_s17   ;;  %s3496_s15 = smov %s2237_s16 }
 0x1e0   : > { %p11_p5 = scmp.ge.s32.totalorder %s14_s17, 4   ;;  %s3497_s16 = smov %s3499_s18 }
 0x1e2   :  { %13 = sbr.rel (!%p11_p5) target bundleno = 2 (0x2), region = 69 }

// kernel: fno3d_encoder_forward.9
= control target key start
LH: loop header
LB: loop body
LE: loop exit
PB: predicated region body
PF: predicated region fallthrough
CT: control target
= control target key end

     0   :  { %s953_s15 = smov 0   ;;  %s955_s16 = smov 0   ;;  %s1190_s0 = inlined_call_operand.vmem [shape: f32[2,16,1728], index: 0, kind: input, shape index: {}]   ;;  %s1191_s1 = inlined_call_operand.vmem [shape: f32[16,16], index: 1, kind: input, shape index: {}]   ;;  %s1192_s2 = inlined_call_operand.vmem [shape: f32[16,1], index: 2, kind: input, shape index: {}]   ;;  %s1193_s3 = inlined_call_operand.vmem [shape: f32[2,16,1728], index: 3, kind: input, shape index: {}]   ;;  %s1194_s4 = inlined_call_operand.vmem [shape: f32[2,16,1728], index: 4, kind: output, shape index: {}]  }
   0x1   :  { %s957_s17 = smov 0  }
   0x2 LB: > { %s26_s18 = sadd.s32 1, %s921_s16  ;;  %p838_p0 = scmp.ge.s32.totalorder %s925_s17, 1  ;;  %s925_s17 = sphi %s957_s17, %s14_s17   ;;  %s921_s16 = sphi %s955_s16, %s1196_s16   ;;  %s917_s15 = sphi %s953_s15, %s1195_s15  }
   0x3   : > { %p28_p1 = scmp.ge.s32.totalorder %s26_s18, 2  ;;  %p200_p2 = scmp.lt.s32.totalorder %s925_s17, 3 }
   0x5   : > { %s1198_s18 = smov (%p28_p1, %s26_s18), 0  ;;  %p201_p3 = pnand %p838_p0, %p200_p2 }
   0x6   : > { %p244_p4 = scmp.lt.s32.totalorder (!%p201_p3), %s917_s15, 1 }
   0x7   : > { %204 = sbr.rel (%p201_p3) target bundleno = 207 (0xcf), region = 36 }
   0xc   : > { %v303_v0 = vld [vmem:[%s1192_s2] sm:$0xff]  ;;  %v927_v1 = vmov 0   ;;  %s1200_s15 = smov (!%p244_p4, %s917_s15), 1  ;;  %vm315_vm0 = vcmask 130048   ;;  %v994_v7 = vld [vmem:[%s1191_s1 + $0x8] sm:$0xff]  ;;  %vm713_vm1 = vcmask 523264  }
   0xd   : > { %902 = vset.pattern.permute.xlu0 %v927_v1  ;;  %s974_s21 = smul.u32 224, %s1200_s15  ;;  %v989_v6 = vld [vmem:[%s1191_s1] sm:$0xff]  ;;  %v304_v22 = vld [vmem:[%s1192_s2 + $0x8] sm:$0xff] }
   0xe   : > { %307 = vperm.xlu0 %902, %v303_v0  }
   0xf   : > { %s980_s24 = scalar_lea.vmem %s1190_s0, %s974_s21  ;;  %s1085_s7 = scalar_lea.vmem %s1193_s3, %s974_s21 }
  0x10   : > { %v289_v2 = vld [vmem:[%s980_s24 + $0x70] sm:$0xff]  ;;  %v290_v3 = vld [vmem:[%s980_s24 + $0x78] sm:$0xff]  ;;  %v275_v4 = vld [vmem:[%s980_s24] sm:$0xff]  ;;  %s1094_s10 = scalar_lea.vmem %s1194_s4, %s974_s21 }
  0x11   : > { %336 = vmatpush.msra.mxu0 %v289_v2  ;;  %872 = vmatpush.msra.mxu2 %v289_v2  ;;  %v276_v5 = vld [vmem:[%s980_s24 + $0x8] sm:$0xff]  ;;  %v291_v8 = vld [vmem:[%s980_s24 + $0x80] sm:$0xff]  ;;  %v293_v10 = vld [vmem:[%s980_s24 + $0x90] sm:$0xff] }
  0x12   : > { %359 = vmatpush.msra.mxu1 %v290_v3  ;;  %874 = vmatpush.msra.mxu3 %v290_v3  ;;  %v292_v9 = vld [vmem:[%s980_s24 + $0x88] sm:$0xff]  ;;  %v294_v11 = vld [vmem:[%s980_s24 + $0x98] sm:$0xff]  ;;  %v277_v12 = vld [vmem:[%s980_s24 + $0x10] sm:$0xff] }
  0x13   : > { %337 = vmatpush.msra.mxu0 %v275_v4  ;;  %873 = vmatpush.msra.mxu2 %v275_v4  ;;  %v278_v13 = vld [vmem:[%s980_s24 + $0x18] sm:$0xff]  ;;  %v279_v14 = vld [vmem:[%s980_s24 + $0x20] sm:$0xff]  ;;  %v280_v15 = vld [vmem:[%s980_s24 + $0x28] sm:$0xff] }
  0x14   : > { %360 = vmatpush.msra.mxu1 %v276_v5  ;;  %875 = vmatpush.msra.mxu3 %v276_v5  ;;  %v295_v16 = vld [vmem:[%s980_s24 + $0xa0] sm:$0xff]  ;;  %v296_v17 = vld [vmem:[%s980_s24 + $0xa8] sm:$0xff]  ;;  %v297_v18 = vld [vmem:[%s980_s24 + $0xb0] sm:$0xff] }
  0x15   : > { %842 = vmatmul.msk.f32.vlgmr.msra.gmra.mxu0 %vm315_vm0, %v989_v6  ;;  %843 = vmatmul.msk.f32.vlgmr.msra.gmra.mxu2 %vm315_vm0, %v994_v7  ;;  %v298_v19 = vld [vmem:[%s980_s24 + $0xb8] sm:$0xff]  ;;  %v281_v20 = vld [vmem:[%s980_s24 + $0x30] sm:$0xff]  ;;  %v283_v23 = vld [vmem:[%s980_s24 + $0x40] sm:$0xff] }
  0x16   : > { %844 = vmatmul.msk.f32.vlgmr.msra.gmra.mxu1 %vm315_vm0, %v989_v6  ;;  %845 = vmatmul.msk.f32.vlgmr.msra.gmra.mxu3 %vm315_vm0, %v994_v7  ;;  %v282_v21 = vld [vmem:[%s980_s24 + $0x38] sm:$0xff]  ;;  %v284_v24 = vld [vmem:[%s980_s24 + $0x48] sm:$0xff]  ;;  %v299_v25 = vld [vmem:[%s980_s24 + $0xc0] sm:$0xff] }
  0x17   : > { %382 = vmatpush.msrb.mxu2 %v291_v8  ;;  %405 = vmatpush.msrb.mxu3 %v292_v9  ;;  %v300_v26 = vld [vmem:[%s980_s24 + $0xc8] sm:$0xff]  ;;  %v301_v27 = vld [vmem:[%s980_s24 + $0xd0] sm:$0xff]  ;;  %v302_v28 = vld [vmem:[%s980_s24 + $0xd8] sm:$0xff] }
  0x18   : > { %428 = vmatpush.msrb.mxu0 %v293_v10  ;;  %451 = vmatpush.msrb.mxu1 %v294_v11  ;;  %v285_v29 = vld [vmem:[%s980_s24 + $0x50] sm:$0xff]  ;;  %v286_v30 = vld [vmem:[%s980_s24 + $0x58] sm:$0xff]  ;;  %v287_v31 = vld [vmem:[%s980_s24 + $0x60] sm:$0xff] }
  0x19   : > { %383 = vmatpush.msrb.mxu2 %v277_v12  ;;  %406 = vmatpush.msrb.mxu3 %v278_v13  ;;  %v288_v32 = vld [vmem:[%s980_s24 + $0x68] sm:$0xff]  ;;  %v644_v35 = vld [vmem:[%s1085_s7] sm:$0xff]  ;;  %v658_v44 = vld [vmem:[%s1085_s7 + $0x70] sm:$0xff] }
  0x1a   : > { %429 = vmatpush.msrb.mxu0 %v279_v14  ;;  %452 = vmatpush.msrb.mxu1 %v280_v15  ;;  %v645_v38 = vld [vmem:[%s1085_s7 + $0x8] sm:$0xff]  ;;  %v659_v47 = vld [vmem:[%s1085_s7 + $0x78] sm:$0xff]  ;;  %v648_v50 = vld [vmem:[%s1085_s7 + $0x20] sm:$0xff] }
  0x1b   : > { %474 = vmatpush.msra.mxu2 %v295_v16  ;;  %497 = vmatpush.msra.mxu3 %v296_v17  ;;  %v649_v54 = vld [vmem:[%s1085_s7 + $0x28] sm:$0xff]  ;;  %v646_v60 = vld [vmem:[%s1085_s7 + $0x10] sm:$0xff]  ;;  %v647_v63 = vld [vmem:[%s1085_s7 + $0x18] sm:$0xff] }
  0x1c   : > { %520 = vmatpush.msra.mxu0 %v297_v18  ;;  %543 = vmatpush.msra.mxu1 %v298_v19  ;;  %v662_v2 = vld [vmem:[%s1085_s7 + $0x90] sm:$0xff]  ;;  %v660_v12 = vld [vmem:[%s1085_s7 + $0x80] sm:$0xff]  ;;  %v661_v15 = vld [vmem:[%s1085_s7 + $0x88] sm:$0xff] }
  0x1d   : > { %846 = vmatmul.msk.f32.vlgmr.msrb.gmra.mxu2 %vm315_vm0, %v989_v6  ;;  %850 = vmatmul.msk.f32.vlgmr.msrb.gmra.mxu0 %vm315_vm0, %v989_v6  ;;  %v652_v18 = vld [vmem:[%s1085_s7 + $0x40] sm:$0xff] }
  0x1e   : > { %848 = vmatmul.msk.f32.vlgmr.msrb.gmra.mxu3 %vm315_vm0, %v989_v6  ;;  %852 = vmatmul.msk.f32.vlgmr.msrb.gmra.mxu1 %vm315_vm0, %v989_v6 }
  0x1f   : > { %475 = vmatpush.msra.mxu2 %v281_v20  ;;  %498 = vmatpush.msra.mxu3 %v282_v21 }
  0x20   : > { %312 = vperm.xlu0 %902, %v304_v22   ;;  %521 = vmatpush.msra.mxu0 %v283_v23  ;;  %v653_v22 = vld [vmem:[%s1085_s7 + $0x48] sm:$0xff] }
  0x21   : > { %544 = vmatpush.msra.mxu1 %v284_v24  ;;  %566 = vmatpush.msrb.mxu2 %v299_v25 }
  0x22   : > { %589 = vmatpush.msrb.mxu3 %v300_v26  ;;  %612 = vmatpush.msrb.mxu0 %v301_v27 }
  0x23   : > { %635 = vmatpush.msrb.mxu1 %v302_v28  ;;  %567 = vmatpush.msrb.mxu2 %v285_v29  ;;  %v650_v28 = vld [vmem:[%s1085_s7 + $0x30] sm:$0xff] }
  0x24   : > { %590 = vmatpush.msrb.mxu3 %v286_v30  ;;  %613 = vmatpush.msrb.mxu0 %v287_v31  ;;  %v651_v31 = vld [vmem:[%s1085_s7 + $0x38] sm:$0xff] }
  0x25   : > { %847 = vmatmul.msk.f32.gmra.mxu2 %vm315_vm0, %v994_v7  ;;  %851 = vmatmul.msk.f32.gmra.mxu0 %vm315_vm0, %v994_v7 }
  0x26   : > { %849 = vmatmul.msk.f32.gmra.mxu3 %vm315_vm0, %v994_v7  ;;  %853 = vmatmul.msk.f32.gmra.mxu1 %vm315_vm0, %v994_v7 }
  0x27   : > { %636 = vmatpush.msrb.mxu1 %v288_v32 }
  0x2d   : > { %854 = vmatmul.msk.f32.vlgmr.msra.gmra.mxu2 %vm315_vm0, %v989_v6  ;;  %858 = vmatmul.msk.f32.vlgmr.msra.gmra.mxu0 %vm315_vm0, %v989_v6 }
  0x2e   : > { %856 = vmatmul.msk.f32.vlgmr.msra.gmra.mxu3 %vm315_vm0, %v989_v6  ;;  %860 = vmatmul.msk.f32.vlgmr.msra.gmra.mxu1 %vm315_vm0, %v989_v6 }
  0x35   : > { %855 = vmatmul.msk.f32.gmra.mxu2 %vm315_vm0, %v994_v7  ;;  %859 = vmatmul.msk.f32.gmra.mxu0 %vm315_vm0, %v994_v7 }
  0x36   : > { %857 = vmatmul.msk.f32.gmra.mxu3 %vm315_vm0, %v994_v7  ;;  %861 = vmatmul.msk.f32.gmra.mxu1 %vm315_vm0, %v994_v7 }
  0x3d   : > { %862 = vmatmul.msk.f32.vlgmr.msrb.gmra.mxu2 %vm315_vm0, %v989_v6  ;;  %866 = vmatmul.msk.f32.vlgmr.msrb.gmra.mxu0 %vm315_vm0, %v989_v6 }
  0x3e   : > { %864 = vmatmul.msk.f32.vlgmr.msrb.gmra.mxu3 %vm315_vm0, %v989_v6  ;;  %868 = vmatmul.msk.f32.vlgmr.msrb.gmra.mxu1 %vm315_vm0, %v989_v6  ;;  %v663_v6 = vld [vmem:[%s1085_s7 + $0x98] sm:$0xff] }
  0x45   : > { %863 = vmatmul.msk.f32.gmra.mxu2 %vm315_vm0, %v994_v7  ;;  %867 = vmatmul.msk.f32.gmra.mxu0 %vm315_vm0, %v994_v7 }
  0x46   : > { %865 = vmatmul.msk.f32.gmra.mxu3 %vm315_vm0, %v994_v7  ;;  %869 = vmatmul.msk.f32.gmra.mxu1 %vm315_vm0, %v994_v7 }
  0x80   : > { %v1079_v33 = vpop.permute.xlu0 %307 }
  0x92   : > { %v339_v34 = vpop.f32.mrf.mxu0  ;;  %v1097_v42 = vpop.permute.xlu0 %312 }
  0x93   : > { %v340_v36 = vadd.f32 %v339_v34, %v1079_v33  ;;  %v362_v37 = vpop.f32.mrf.mxu1 }
  0x94   : > { %v363_v39 = vadd.f32 %v362_v37, %v1079_v33 }
  0x95   : > { %v672_v40 = vadd.f32 %v644_v35, %v340_v36  ;;  %v666_v35 = vld [vmem:[%s1085_s7 + $0xb0] sm:$0xff] }
  0x96   : > { %v673_v41 = vadd.f32 %v645_v38, %v363_v39  ;;  %v667_v39 = vld [vmem:[%s1085_s7 + $0xb8] sm:$0xff] }
  0x97   : > { %700 = vst [vmem:[%s1094_s10] sm:$0xff] %v672_v40 }
  0x98   : > { %701 = vst [vmem:[%s1094_s10 + $0x8] sm:$0xff] %v673_v41  ;;  %v342_v43 = vpop.f32.mrf.mxu2 }
  0x99   : > { %v343_v45 = vadd.f32 %v342_v43, %v1097_v42  ;;  %v365_v46 = vpop.f32.mrf.mxu3 }
  0x9a   : > { %v366_v48 = vadd.f32 %v365_v46, %v1097_v42  ;;  %v431_v49 = vpop.f32.mrf.mxu0  ;;  %v664_v46 = vld [vmem:[%s1085_s7 + $0xa0] sm:$0xff] }
  0x9b   : > { %v686_v51 = vadd.f32 %v658_v44, %v343_v45  ;;  %v432_v52 = vadd.f32 %v431_v49, %v1079_v33  ;;  %v454_v53 = vpop.f32.mrf.mxu1  ;;  %v665_v49 = vld [vmem:[%s1085_s7 + $0xa8] sm:$0xff] }
  0x9c   : > { %v687_v55 = vadd.f32 %v659_v47, %v366_v48  ;;  %v455_v56 = vadd.f32 %v454_v53, %v1079_v33 }
  0x9d   : > { %715 = vst [vmem:[%s1094_s10 + $0x70] sm:$0xff] %v686_v51  ;;  %v676_v57 = vadd.f32 %v648_v50, %v432_v52  ;;  %v656_v52 = vld [vmem:[%s1085_s7 + $0x60] sm:$0xff] }
  0x9e   : > { %716 = vst [vmem:[%s1094_s10 + $0x78] sm:$0xff] %v687_v55  ;;  %v677_v58 = vadd.f32 %v649_v54, %v455_v56  ;;  %v657_v56 = vld [vmem:[%s1085_s7 + $0x68] sm:$0xff] }
  0x9f   : > { %704 = vst [vmem:[%s1094_s10 + $0x20] sm:$0xff] %v676_v57 }
  0xa0   : > { %705 = vst [vmem:[%s1094_s10 + $0x28] sm:$0xff] %v677_v58  ;;  %v385_v59 = vpop.f32.mrf.mxu2 }
  0xa1   : > { %v386_v61 = vadd.f32 %v385_v59, %v1079_v33  ;;  %v408_v62 = vpop.f32.mrf.mxu3 }
  0xa2   : > { %v409_v0 = vadd.f32 %v408_v62, %v1079_v33  ;;  %v434_v1 = vpop.f32.mrf.mxu0  ;;  %v654_v62 = vld [vmem:[%s1085_s7 + $0x50] sm:$0xff] }
  0xa3   : > { %v674_v3 = vadd.f32 %v646_v60, %v386_v61  ;;  %v435_v4 = vadd.f32 %v434_v1, %v1097_v42  ;;  %v457_v5 = vpop.f32.mrf.mxu1  ;;  %v655_v1 = vld [vmem:[%s1085_s7 + $0x58] sm:$0xff] }
  0xa4   : > { %v675_v7 = vadd.f32 %v647_v63, %v409_v0  ;;  %v458_v8 = vadd.f32 %v457_v5, %v1097_v42 }
  0xa5   : > { %702 = vst [vmem:[%s1094_s10 + $0x10] sm:$0xff] %v674_v3  ;;  %v690_v9 = vadd.f32 %v662_v2, %v435_v4  ;;  %v670_v4 = vld [vmem:[%s1085_s7 + $0xd0] sm:$0xff] }
  0xa6   : > { %703 = vst [vmem:[%s1094_s10 + $0x18] sm:$0xff] %v675_v7  ;;  %v691_v10 = vadd.f32 %v663_v6, %v458_v8  ;;  %v671_v8 = vld [vmem:[%s1085_s7 + $0xd8] sm:$0xff] }
  0xa7   : > { %719 = vst [vmem:[%s1094_s10 + $0x90] sm:$0xff] %v690_v9 }
  0xa8   : > { %720 = vst [vmem:[%s1094_s10 + $0x98] sm:$0xff] %v691_v10  ;;  %v388_v11 = vpop.f32.mrf.mxu2 }
  0xa9   : > { %v389_v13 = vadd.f32 %v388_v11, %v1097_v42  ;;  %v411_v14 = vpop.f32.mrf.mxu3 }
  0xaa   : > { %v412_v16 = vadd.f32 %v411_v14, %v1097_v42  ;;  %v523_v17 = vpop.f32.mrf.mxu0 }
  0xab   : > { %v688_v19 = vadd.f32 %v660_v12, %v389_v13  ;;  %v524_v20 = vadd.f32 %v523_v17, %v1079_v33  ;;  %v546_v21 = vpop.f32.mrf.mxu1  ;;  %v668_v13 = vld [vmem:[%s1085_s7 + $0xc0] sm:$0xff] }
  0xac   : > { %v689_v23 = vadd.f32 %v661_v15, %v412_v16  ;;  %v547_v24 = vadd.f32 %v546_v21, %v1079_v33  ;;  %v669_v16 = vld [vmem:[%s1085_s7 + $0xc8] sm:$0xff] }
  0xad   : > { %717 = vst [vmem:[%s1094_s10 + $0x80] sm:$0xff] %v688_v19  ;;  %v680_v25 = vadd.f32 %v652_v18, %v524_v20 }
  0xae   : > { %718 = vst [vmem:[%s1094_s10 + $0x88] sm:$0xff] %v689_v23  ;;  %v681_v26 = vadd.f32 %v653_v22, %v547_v24 }
  0xaf   : > { %708 = vst [vmem:[%s1094_s10 + $0x40] sm:$0xff] %v680_v25 }
  0xb0   : > { %709 = vst [vmem:[%s1094_s10 + $0x48] sm:$0xff] %v681_v26  ;;  %v477_v27 = vpop.f32.mrf.mxu2 }
  0xb1   : > { %v478_v29 = vadd.f32 %v477_v27, %v1079_v33  ;;  %v500_v30 = vpop.f32.mrf.mxu3 }
  0xb2   : > { %v501_v32 = vadd.f32 %v500_v30, %v1079_v33  ;;  %v526_v34 = vpop.f32.mrf.mxu0 }
  0xb3   : > { %v678_v36 = vadd.f32 %v650_v28, %v478_v29  ;;  %v527_v37 = vadd.f32 %v526_v34, %v1097_v42  ;;  %v549_v38 = vpop.f32.mrf.mxu1 }
  0xb4   : > { %v679_v40 = vadd.f32 %v651_v31, %v501_v32  ;;  %v550_v41 = vadd.f32 %v549_v38, %v1097_v42 }
  0xb5   : > { %706 = vst [vmem:[%s1094_s10 + $0x30] sm:$0xff] %v678_v36  ;;  %v694_v43 = vadd.f32 %v666_v35, %v527_v37 }
  0xb6   : > { %707 = vst [vmem:[%s1094_s10 + $0x38] sm:$0xff] %v679_v40  ;;  %v695_v44 = vadd.f32 %v667_v39, %v550_v41 }
  0xb7   : > { %723 = vst [vmem:[%s1094_s10 + $0xb0] sm:$0xff] %v694_v43 }
  0xb8   : > { %724 = vst [vmem:[%s1094_s10 + $0xb8] sm:$0xff] %v695_v44  ;;  %v480_v45 = vpop.f32.mrf.mxu2 }
  0xb9   : > { %v481_v47 = vadd.f32 %v480_v45, %v1097_v42  ;;  %v503_v48 = vpop.f32.mrf.mxu3 }
  0xba   : > { %v504_v50 = vadd.f32 %v503_v48, %v1097_v42  ;;  %v615_v51 = vpop.f32.mrf.mxu0 }
  0xbb   : > { %v692_v53 = vadd.f32 %v664_v46, %v481_v47  ;;  %v616_v54 = vadd.f32 %v615_v51, %v1079_v33  ;;  %v638_v55 = vpop.f32.mrf.mxu1 }
  0xbc   : > { %v693_v57 = vadd.f32 %v665_v49, %v504_v50  ;;  %v639_v58 = vadd.f32 %v638_v55, %v1079_v33 }
  0xbd   : > { %721 = vst [vmem:[%s1094_s10 + $0xa0] sm:$0xff] %v692_v53  ;;  %v684_v59 = vadd.f32 %v656_v52, %v616_v54 }
  0xbe   : > { %722 = vst [vmem:[%s1094_s10 + $0xa8] sm:$0xff] %v693_v57  ;;  %v685_v60 = vadd.f32 %v657_v56, %v639_v58 }
  0xbf   : > { %712 = vst [vmem:[%s1094_s10 + $0x60] sm:$0xff] %v684_v59 }
  0xc0   : > { %714 = vst.msk [vmem:[%s1094_s10 + $0x68] sm:$0xff] %vm713_vm1, %v685_v60  ;;  %v569_v61 = vpop.f32.mrf.mxu2 }
  0xc1   : > { %v570_v63 = vadd.f32 %v569_v61, %v1079_v33  ;;  %v592_v0 = vpop.f32.mrf.mxu3 }
  0xc2   : > { %v593_v2 = vadd.f32 %v592_v0, %v1079_v33  ;;  %v618_v3 = vpop.f32.mrf.mxu0 }
  0xc3   : > { %v682_v5 = vadd.f32 %v654_v62, %v570_v63  ;;  %v619_v6 = vadd.f32 %v618_v3, %v1097_v42  ;;  %v641_v7 = vpop.f32.mrf.mxu1 }
  0xc4   : > { %v683_v9 = vadd.f32 %v655_v1, %v593_v2  ;;  %v642_v10 = vadd.f32 %v641_v7, %v1097_v42 }
  0xc5   : > { %710 = vst [vmem:[%s1094_s10 + $0x50] sm:$0xff] %v682_v5  ;;  %v698_v11 = vadd.f32 %v670_v4, %v619_v6 }
  0xc6   : > { %711 = vst [vmem:[%s1094_s10 + $0x58] sm:$0xff] %v683_v9  ;;  %v699_v12 = vadd.f32 %v671_v8, %v642_v10 }
  0xc7   : > { %727 = vst [vmem:[%s1094_s10 + $0xd0] sm:$0xff] %v698_v11 }
  0xc8   : > { %728 = vst.msk [vmem:[%s1094_s10 + $0xd8] sm:$0xff] %vm713_vm1, %v699_v12  ;;  %v572_v33 = vpop.f32.mrf.mxu2 }
  0xc9   : > { %v573_v14 = vadd.f32 %v572_v33, %v1097_v42  ;;  %v595_v15 = vpop.f32.mrf.mxu3 }
  0xca   : > { %v596_v17 = vadd.f32 %v595_v15, %v1097_v42 }
  0xcb   : > { %v696_v18 = vadd.f32 %v668_v13, %v573_v14 }
  0xcc   : > { %v697_v19 = vadd.f32 %v669_v16, %v596_v17 }
  0xcd   : > { %725 = vst [vmem:[%s1094_s10 + $0xc0] sm:$0xff] %v696_v18 }
  0xce   : > { %726 = vst [vmem:[%s1094_s10 + $0xc8] sm:$0xff] %v697_v19 }
  0xcf PF: > { %s14_s17 = sadd.s32 1, %s925_s17   ;;  %s1195_s15 = smov %s921_s16 }
  0xd0   : > { %p11_p5 = scmp.ge.s32.totalorder %s14_s17, 4   ;;  %s1196_s16 = smov %s1198_s18 }
  0xd2   :  { %13 = sbr.rel (!%p11_p5) target bundleno = 2 (0x2), region = 69 }

</bundles_post_ra>
